<compile_context>
chip_gen: v7x
topology: tpu7x:2x2x1
jax: 0.10.0
libtpu: 0.0.40
codegen_flags: <defaults>
</compile_context>

<pallas_src>
import numpy as np
import jax
import jax.numpy as jnp
from jax.experimental import pallas as pl
from jax.experimental.pallas import tpu as pltpu

CNN_EMB_DIM = 4      # in_channels (P)
GPT_EMB_DIM = 32     # out_channels
NEG_SLOPE = 0.01     # nn.LeakyReLU default
EPS = 1e-5           # nn.InstanceNorm2d default (affine=False, no running stats)


def _hex_mask(k: int) -> np.ndarray:
    """Hexagonal mask on a k x k kernel (axial coordinates)."""
    # TODO(synk): exact HexConv mask convention (axial vs. offset / skew sign) depends on
    # the original HexConv implementation; |dq + dr| <= r axial hexagon is used here.
    r = k // 2
    q = np.arange(k) - r
    Q, S = np.meshgrid(q, q, indexing="ij")
    return (np.abs(Q + S) <= r).astype(np.float32)


def _round_up(a: int, b: int) -> int:
    return (a + b - 1) // b * b


# ---------------------------------------------------------------------------
# Fused Pallas kernel: 3 x (bf16 GEMM + bias + LeakyReLU [+ InstanceNorm]) per batch tile
# ---------------------------------------------------------------------------
def _make_kernel(inv_s1: float, inv_s2: float):
    """inv_s* = 1/(spatial size) of layer-1 / layer-2 outputs (statically known)."""

    def kernel(x_ref,
               w1_ref, b1_ref, p1_ref, q1_ref,
               w2_ref, b2_ref, p2_ref, q2_ref,
               w3_ref, b3_ref,
               o_ref):
        # x_ref: (Nb, Cin*H*W) bf16.   w*_ref: dense unrolled-conv matrices (bf16).
        # p*_ref: (Dp, C) 0/1 channel-sum map (bf16).  q*_ref: (C, Dp) 0/1 broadcast map.
        # b*_ref: (1, Dp) f32.  All elementwise math in f32; only dot operands are bf16.
        def leaky(v):
            return jnp.where(v > 0, v, NEG_SLOPE * v)

        def inorm(v, pool_ref, bcast_ref, inv_s):
            # v: (Nb, Dp) f32 (post-LeakyReLU).  Per-(sample, channel) norm over spatial.
            pool = pool_ref[...]
            vb = v.astype(jnp.bfloat16)
            v2b = (v * v).astype(jnp.bfloat16)           # square in f32, cast for MXU
            # two *independent* channel-sum GEMMs (var = E[x^2] - mean^2, no serial chain)
            s1 = jnp.dot(vb, pool, preferred_element_type=jnp.float32)    # (Nb, C)
            s2 = jnp.dot(v2b, pool, preferred_element_type=jnp.float32)   # (Nb, C)
            mean_c = s1 * inv_s
            var_c = jnp.maximum(s2 * inv_s - mean_c * mean_c, 0.0)        # guard cancellation
            inv_c = jax.lax.rsqrt(var_c + EPS)
            off_c = -mean_c * inv_c
            bcast = bcast_ref[...]
            # broadcast C -> Dp (mutually independent GEMMs, tiny K)
            scale_b = jnp.dot(inv_c.astype(jnp.bfloat16), bcast,
                              preferred_element_type=jnp.float32)         # (Nb, Dp)
            shift_b = jnp.dot(off_c.astype(jnp.bfloat16), bcast,
                              preferred_element_type=jnp.float32)         # (Nb, Dp)
            return v * scale_b + shift_b

        h = jnp.dot(x_ref[...], w1_ref[...],
                    preferred_element_type=jnp.float32) + b1_ref[...]
        h = inorm(leaky(h), p1_ref, q1_ref, inv_s1)

        h = jnp.dot(h.astype(jnp.bfloat16), w2_ref[...],
                    preferred_element_type=jnp.float32) + b2_ref[...]
        h = inorm(leaky(h), p2_ref, q2_ref, inv_s2)

        h = jnp.dot(h.astype(jnp.bfloat16), w3_ref[...],
                    preferred_element_type=jnp.float32) + b3_ref[...]
        o_ref[...] = leaky(h).astype(o_ref.dtype)

    return kernel


# ---------------------------------------------------------------------------
# JAX glue: im2col (used only for param prep + reference), dense-matrix prep
# ---------------------------------------------------------------------------
def _im2col(x, k):
    # x: (N, C, H, W) -> (N, Ho*Wo, C*k*k) with flatten order (ci, di, dj)
    N, C, H, W = x.shape
    Ho, Wo = H - k + 1, W - k + 1
    cols = []
    for di in range(k):
        for dj in range(k):
            cols.append(x[:, :, di:di + Ho, dj:dj + Wo])        # (N, C, Ho, Wo)
    p = jnp.stack(cols, axis=0).reshape(k, k, N, C, Ho, Wo)
    p = p.transpose(2, 4, 5, 3, 0, 1).reshape(N, Ho * Wo, C * k * k)
    return p, Ho, Wo


def init_params(key, in_channels=CNN_EMB_DIM, out_channels=GPT_EMB_DIM):
    def conv_init(k_, cin, cout, ksz):
        kw, kb = jax.random.split(k_)
        fan_in = cin * ksz * ksz
        bound = 1.0 / np.sqrt(fan_in)
        w = jax.random.uniform(kw, (cout, cin, ksz, ksz), jnp.float32, -bound, bound)
        w = w * jnp.asarray(_hex_mask(ksz))[None, None]          # hexagonal weight mask
        b = jax.random.uniform(kb, (cout,), jnp.float32, -bound, bound)
        return w, b

    k1, k2, k3 = jax.random.split(key, 3)
    return {
        "l1": conv_init(k1, in_channels, in_channels * 2, 7),
        "l2": conv_init(k2, in_channels * 2, in_channels * 4, 5),
        "l3": conv_init(k3, in_channels * 4, out_channels, 5),
    }


def prepare_dense_params(params, H=15, W=15):
    """One-time prep: lower each masked HexConv to a dense unrolled-conv matrix (bf16) plus
    bias row (f32), pad feature dims to lane multiples, and build the 0/1 InstanceNorm
    channel-sum / broadcast matrices (bf16, exact)."""

    def dense_layer(w, b, Hin, Win):
        Cout, Cin, k, _ = w.shape
        Ho, Wo = Hin - k + 1, Win - k + 1
        S = Ho * Wo
        # Columns of the linear map via the identity basis through the same conv math
        # used by the reference (valid conv, stride 1, (ci,di,dj) tap order).
        eye = jnp.eye(Cin * Hin * Win, dtype=jnp.float32).reshape(-1, Cin, Hin, Win)
        p, _, _ = _im2col(eye, k)                                 # (CinHW, S, Cin*k*k)
        M = jnp.einsum("nsk,ok->nos", p, w.reshape(Cout, -1))     # (CinHW, Cout, S)
        M = M.reshape(Cin * Hin * Win, Cout * S)                  # y_flat = x_flat @ M
        bb = jnp.repeat(b, S).reshape(1, Cout * S)
        ch_of = np.repeat(np.arange(Cout), S)                     # channel of each column
        onehot = (ch_of[:, None] == np.arange(Cout)[None, :]).astype(np.float32)
        return M, bb, onehot, Ho, Wo, S

    def pad_cols(a, to):
        return jnp.pad(jnp.asarray(a), ((0, 0), (0, to - a.shape[1])))

    def pad_rows(a, to):
        return jnp.pad(jnp.asarray(a), ((0, to - a.shape[0]), (0, 0)))

    (w1, b1), (w2, b2), (w3, b3) = params["l1"], params["l2"], params["l3"]
    M1, bb1, oh1, H1, W1, S1 = dense_layer(w1, b1, H, W)
    M2, bb2, oh2, H2, W2, S2 = dense_layer(w2, b2, H1, W1)
    M3, bb3, _, H3, W3, _ = dense_layer(w3, b3, H2, W2)           # layer 3: no norm
    assert (H3, W3) == (1, 1), (H3, W3)

    D1, D2, D3 = M1.shape[1], M2.shape[1], M3.shape[1]            # 648, 400, 32
    D1p, D2p, D3p = _round_up(D1, 128), _round_up(D2, 128), _round_up(D3, 128)

    return {
        # conv GEMM / norm operands stored bf16 (MXU); zero-padded to lane multiples so
        # the padded columns stay exactly zero through every layer.
        "w1": pad_cols(M1, D1p).astype(jnp.bfloat16),
        "b1": pad_cols(bb1, D1p),                                  # f32
        "pool1": pad_rows(oh1, D1p).astype(jnp.bfloat16),          # (D1p, C1) 0/1
        "bcast1": pad_cols(oh1.T, D1p).astype(jnp.bfloat16),       # (C1, D1p) 0/1
        "w2": pad_cols(pad_rows(M2, D1p), D2p).astype(jnp.bfloat16),
        "b2": pad_cols(bb2, D2p),
        "pool2": pad_rows(oh2, D2p).astype(jnp.bfloat16),
        "bcast2": pad_cols(oh2.T, D2p).astype(jnp.bfloat16),
        "w3": pad_cols(pad_rows(M3, D2p), D3p).astype(jnp.bfloat16),
        "b3": pad_cols(bb3, D3p),
        "s1": S1, "s2": S2, "out_dim": D3,
    }


def shallow_follower_state_cnn(dense_params, x, batch_tile=512):
    # x: (B, T, P, H, W)  ->  (B, T, out_channels)   (spatial 15 -> 9 -> 5 -> 1)
    d = dense_params
    B, T = x.shape[0], x.shape[1]
    N = B * T
    D_in = d["w1"].shape[0]
    D3p = d["w3"].shape[1]
    out_dim = d["out_dim"]

    # bf16 input: halves input HBM traffic and feeds the bf16 MXU GEMM directly.
    x_flat = x.reshape(N, -1).astype(jnp.bfloat16)                # (N, Cin*H*W) lane-dense
    assert x_flat.shape[1] == D_in, (x_flat.shape, D_in)

    # Tile sizing: rows are a multiple of 16 (bf16 sublane packing); aim for >=4 grid
    # steps when the batch allows (pipelining + v7x megacore), capped at batch_tile.
    # batch_tile=512 keeps per-tile VMEM ~16 MB incl. resident bf16 weights (~2.4 MB).
    bt = max(16, (batch_tile // 16) * 16)
    Nb = max(16, min(bt, _round_up(-(-N // 4), 16)))
    N_pad = _round_up(N, Nb)
    if N_pad != N:
        x_flat = jnp.pad(x_flat, ((0, N_pad - N), (0, 0)))        # zero pad: sliced off below

    def const_spec(shape):
        idx = lambda n: (0, 0)   # weights / pools stay resident across grid steps
        if hasattr(pl, "Buffered"):
            try:
                # Constant operands: single VMEM buffer (block never changes) — saves
                # ~2.4 MB resident VMEM, which matters on v7x's 64 MiB part.
                return pl.BlockSpec(shape, idx, pipeline_mode=pl.Buffered(1))
            except Exception:
                pass
        return pl.BlockSpec(shape, idx)

    out = pl.pallas_call(
        _make_kernel(1.0 / float(d["s1"]), 1.0 / float(d["s2"])),
        out_shape=jax.ShapeDtypeStruct((N_pad, D3p), jnp.float32),
        grid=(N_pad // Nb,),
        in_specs=[
            pl.BlockSpec((Nb, D_in), lambda n: (n, 0)),
            const_spec(d["w1"].shape), const_spec(d["b1"].shape),
            const_spec(d["pool1"].shape), const_spec(d["bcast1"].shape),
            const_spec(d["w2"].shape), const_spec(d["b2"].shape),
            const_spec(d["pool2"].shape), const_spec(d["bcast2"].shape),
            const_spec(d["w3"].shape), const_spec(d["b3"].shape),
        ],
        out_specs=pl.BlockSpec((Nb, D3p), lambda n: (n, 0)),
        compiler_params=pltpu.CompilerParams(
            dimension_semantics=("parallel",),
            # Computed peak is ~16 MB at Nb=512 with bf16 weights; 32 MiB leaves headroom
            # for Mosaic scratch and is safe even on v7x's 64 MiB physical VMEM.
            vmem_limit_bytes=32 * 1024 * 1024,
        ),
    )(x_flat,
      d["w1"], d["b1"], d["pool1"], d["bcast1"],
      d["w2"], d["b2"], d["pool2"], d["bcast2"],
      d["w3"], d["b3"])

    return out[:N, :out_dim].reshape(B, T, out_dim)


# ---------------------------------------------------------------------------
# Pure-JAX f32 reference (same math, no Pallas) for a sanity check
# ---------------------------------------------------------------------------
def _ref_layer(x, w, b, apply_norm):
    k = w.shape[-1]
    p, Ho, Wo = _im2col(x, k)
    y = jnp.einsum("nsk,ok->nso", p, w.reshape(w.shape[0], -1)) + b[None, None, :]
    y = jnp.where(y > 0, y, NEG_SLOPE * y)
    if apply_norm:
        mean = jnp.mean(y, axis=1, keepdims=True)
        var = jnp.mean((y - mean) ** 2, axis=1, keepdims=True)
        y = (y - mean) * jax.lax.rsqrt(var + EPS)
    return y.reshape(x.shape[0], Ho, Wo, -1).transpose(0, 3, 1, 2)


def _ref_forward(params, x):
    B, T, P, H, W = x.shape
    h = x.reshape(B * T, P, H, W)
    h = _ref_layer(h, *params["l1"], True)
    h = _ref_layer(h, *params["l2"], True)
    h = _ref_layer(h, *params["l3"], False)
    return h.reshape(B, T, -1)


if __name__ == "__main__":
    key = jax.random.PRNGKey(0)
    k_param, k_x = jax.random.split(key)

    B, T, P, H, W = 4, 15, CNN_EMB_DIM, 15, 15   # H=W=15 required by the 7/5/5 valid convs
    x = jax.random.normal(k_x, (B, T, P, H, W), jnp.float32)
    params = init_params(k_param)
    dense_params = prepare_dense_params(params, H, W)

    # N=60 -> Nb=16, N_pad=64: exercises a 4-step grid plus batch padding.
    out = shallow_follower_state_cnn(dense_params, x)
    out = jax.block_until_ready(out)

    assert out.shape == (B, T, GPT_EMB_DIM), out.shape
    ref = jax.block_until_ready(_ref_forward(params, x))
    # Tolerance sized for the deliberate bf16 MXU operands (the underlying f32 dense
    # lowering matches the im2col reference to ~1e-5).
    np.testing.assert_allclose(np.asarray(out), np.asarray(ref), rtol=5e-2, atol=5e-2)

    print("KERNEL_OK")
</pallas_src>

<mosaic_0001>
module attributes {stable_mosaic.version = 11 : i64} {
  func.func @kernel(%arg0: i32, %arg1: memref<16x900xbf16, #tpu.memory_space<vmem>>, %arg2: memref<900x768xbf16, #tpu.memory_space<vmem>>, %arg3: memref<1x768xf32, #tpu.memory_space<vmem>>, %arg4: memref<768x8xbf16, #tpu.memory_space<vmem>>, %arg5: memref<8x768xbf16, #tpu.memory_space<vmem>>, %arg6: memref<768x512xbf16, #tpu.memory_space<vmem>>, %arg7: memref<1x512xf32, #tpu.memory_space<vmem>>, %arg8: memref<512x16xbf16, #tpu.memory_space<vmem>>, %arg9: memref<16x512xbf16, #tpu.memory_space<vmem>>, %arg10: memref<512x128xbf16, #tpu.memory_space<vmem>>, %arg11: memref<1x128xf32, #tpu.memory_space<vmem>>, %arg12: memref<16x128xf32, #tpu.memory_space<vmem>>) attributes {dimension_semantics = [#tpu.dimension_semantics<parallel>], iteration_bounds = array<i64: 4>, scalar_prefetch = 0 : i64, scratch_operands = 0 : i64, tpu.core_type = #tpu.core_type<tc>, window_params = [{transform_indices = @transform_0, window_bounds = array<i64: 16, 900>}, {pipeline_mode = #tpu.pipeline_mode<synchronous>, transform_indices = @transform_1, window_bounds = array<i64: 900, 768>}, {pipeline_mode = #tpu.pipeline_mode<synchronous>, transform_indices = @transform_2, window_bounds = array<i64: 1, 768>}, {pipeline_mode = #tpu.pipeline_mode<synchronous>, transform_indices = @transform_3, window_bounds = array<i64: 768, 8>}, {pipeline_mode = #tpu.pipeline_mode<synchronous>, transform_indices = @transform_4, window_bounds = array<i64: 8, 768>}, {pipeline_mode = #tpu.pipeline_mode<synchronous>, transform_indices = @transform_5, window_bounds = array<i64: 768, 512>}, {pipeline_mode = #tpu.pipeline_mode<synchronous>, transform_indices = @transform_6, window_bounds = array<i64: 1, 512>}, {pipeline_mode = #tpu.pipeline_mode<synchronous>, transform_indices = @transform_7, window_bounds = array<i64: 512, 16>}, {pipeline_mode = #tpu.pipeline_mode<synchronous>, transform_indices = @transform_8, window_bounds = array<i64: 16, 512>}, {pipeline_mode = #tpu.pipeline_mode<synchronous>, transform_indices = @transform_9, window_bounds = array<i64: 512, 128>}, {pipeline_mode = #tpu.pipeline_mode<synchronous>, transform_indices = @transform_10, window_bounds = array<i64: 1, 128>}, {transform_indices = @transform_11, window_bounds = array<i64: 16, 128>}]} {
    %c0 = arith.constant 0 : index
    %c0_0 = arith.constant 0 : index
    %0 = vector.load %arg1[%c0, %c0_0] : memref<16x900xbf16, #tpu.memory_space<vmem>>, vector<16x900xbf16>
    %c0_1 = arith.constant 0 : index
    %c0_2 = arith.constant 0 : index
    %1 = vector.load %arg2[%c0_1, %c0_2] : memref<900x768xbf16, #tpu.memory_space<vmem>>, vector<900x768xbf16>
    %cst = arith.constant dense<0.000000e+00> : vector<16x768xf32>
    %2 = tpu.matmul %0, %1, %cst {dimension_numbers = #tpu.dot_dimension_numbers<[1], [0], [0], [1], [0, 0, 1, 1], [], []>} : vector<16x900xbf16>, vector<900x768xbf16>, vector<16x768xf32> -> vector<16x768xf32>
    %c0_3 = arith.constant 0 : index
    %c0_4 = arith.constant 0 : index
    %3 = vector.load %arg3[%c0_3, %c0_4] : memref<1x768xf32, #tpu.memory_space<vmem>>, vector<1x768xf32>
    %4 = vector.broadcast %3 : vector<1x768xf32> to vector<16x768xf32>
    %5 = arith.addf %2, %4 : vector<16x768xf32>
    %cst_5 = arith.constant 0.000000e+00 : f32
    %6 = vector.broadcast %cst_5 : f32 to vector<16x768xf32>
    %7 = arith.cmpf ogt, %5, %6 : vector<16x768xf32>
    %cst_6 = arith.constant 0.00999999977 : f32
    %8 = vector.broadcast %cst_6 : f32 to vector<16x768xf32>
    %9 = arith.mulf %8, %5 : vector<16x768xf32>
    %10 = arith.select %7, %5, %9 : vector<16x768xi1>, vector<16x768xf32>
    %c0_7 = arith.constant 0 : index
    %c0_8 = arith.constant 0 : index
    %11 = vector.load %arg4[%c0_7, %c0_8] : memref<768x8xbf16, #tpu.memory_space<vmem>>, vector<768x8xbf16>
    %12 = arith.truncf %10 : vector<16x768xf32> to vector<16x768xbf16>
    %13 = arith.mulf %10, %10 : vector<16x768xf32>
    %14 = arith.truncf %13 : vector<16x768xf32> to vector<16x768xbf16>
    %cst_9 = arith.constant dense<0.000000e+00> : vector<16x8xf32>
    %15 = tpu.matmul %12, %11, %cst_9 {dimension_numbers = #tpu.dot_dimension_numbers<[1], [0], [0], [1], [0, 0, 1, 1], [], []>} : vector<16x768xbf16>, vector<768x8xbf16>, vector<16x8xf32> -> vector<16x8xf32>
    %cst_10 = arith.constant dense<0.000000e+00> : vector<16x8xf32>
    %16 = tpu.matmul %14, %11, %cst_10 {dimension_numbers = #tpu.dot_dimension_numbers<[1], [0], [0], [1], [0, 0, 1, 1], [], []>} : vector<16x768xbf16>, vector<768x8xbf16>, vector<16x8xf32> -> vector<16x8xf32>
    %cst_11 = arith.constant 0.0123456791 : f32
    %17 = vector.broadcast %cst_11 : f32 to vector<16x8xf32>
    %18 = arith.mulf %15, %17 : vector<16x8xf32>
    %cst_12 = arith.constant 0.0123456791 : f32
    %19 = vector.broadcast %cst_12 : f32 to vector<16x8xf32>
    %20 = arith.mulf %16, %19 : vector<16x8xf32>
    %21 = arith.mulf %18, %18 : vector<16x8xf32>
    %22 = arith.subf %20, %21 : vector<16x8xf32>
    %cst_13 = arith.constant 0.000000e+00 : f32
    %23 = vector.broadcast %cst_13 : f32 to vector<16x8xf32>
    %24 = arith.maximumf %22, %23 : vector<16x8xf32>
    %cst_14 = arith.constant 9.99999974E-6 : f32
    %25 = vector.broadcast %cst_14 : f32 to vector<16x8xf32>
    %26 = arith.addf %24, %25 : vector<16x8xf32>
    %27 = math.rsqrt %26 : vector<16x8xf32>
    %cst_15 = arith.constant 0.000000e+00 : f32
    %28 = vector.broadcast %cst_15 : f32 to vector<16x8xf32>
    %29 = arith.subf %28, %18 : vector<16x8xf32>
    %30 = arith.mulf %29, %27 : vector<16x8xf32>
    %c0_16 = arith.constant 0 : index
    %c0_17 = arith.constant 0 : index
    %31 = vector.load %arg5[%c0_16, %c0_17] : memref<8x768xbf16, #tpu.memory_space<vmem>>, vector<8x768xbf16>
    %32 = arith.truncf %27 : vector<16x8xf32> to vector<16x8xbf16>
    %cst_18 = arith.constant dense<0.000000e+00> : vector<16x768xf32>
    %33 = tpu.matmul %32, %31, %cst_18 {dimension_numbers = #tpu.dot_dimension_numbers<[1], [0], [0], [1], [0, 0, 1, 1], [], []>} : vector<16x8xbf16>, vector<8x768xbf16>, vector<16x768xf32> -> vector<16x768xf32>
    %34 = arith.truncf %30 : vector<16x8xf32> to vector<16x8xbf16>
    %cst_19 = arith.constant dense<0.000000e+00> : vector<16x768xf32>
    %35 = tpu.matmul %34, %31, %cst_19 {dimension_numbers = #tpu.dot_dimension_numbers<[1], [0], [0], [1], [0, 0, 1, 1], [], []>} : vector<16x8xbf16>, vector<8x768xbf16>, vector<16x768xf32> -> vector<16x768xf32>
    %36 = arith.mulf %10, %33 : vector<16x768xf32>
    %37 = arith.addf %36, %35 : vector<16x768xf32>
    %38 = arith.truncf %37 : vector<16x768xf32> to vector<16x768xbf16>
    %c0_20 = arith.constant 0 : index
    %c0_21 = arith.constant 0 : index
    %39 = vector.load %arg6[%c0_20, %c0_21] : memref<768x512xbf16, #tpu.memory_space<vmem>>, vector<768x512xbf16>
    %cst_22 = arith.constant dense<0.000000e+00> : vector<16x512xf32>
    %40 = tpu.matmul %38, %39, %cst_22 {dimension_numbers = #tpu.dot_dimension_numbers<[1], [0], [0], [1], [0, 0, 1, 1], [], []>} : vector<16x768xbf16>, vector<768x512xbf16>, vector<16x512xf32> -> vector<16x512xf32>
    %c0_23 = arith.constant 0 : index
    %c0_24 = arith.constant 0 : index
    %41 = vector.load %arg7[%c0_23, %c0_24] : memref<1x512xf32, #tpu.memory_space<vmem>>, vector<1x512xf32>
    %42 = vector.broadcast %41 : vector<1x512xf32> to vector<16x512xf32>
    %43 = arith.addf %40, %42 : vector<16x512xf32>
    %cst_25 = arith.constant 0.000000e+00 : f32
    %44 = vector.broadcast %cst_25 : f32 to vector<16x512xf32>
    %45 = arith.cmpf ogt, %43, %44 : vector<16x512xf32>
    %cst_26 = arith.constant 0.00999999977 : f32
    %46 = vector.broadcast %cst_26 : f32 to vector<16x512xf32>
    %47 = arith.mulf %46, %43 : vector<16x512xf32>
    %48 = arith.select %45, %43, %47 : vector<16x512xi1>, vector<16x512xf32>
    %c0_27 = arith.constant 0 : index
    %c0_28 = arith.constant 0 : index
    %49 = vector.load %arg8[%c0_27, %c0_28] : memref<512x16xbf16, #tpu.memory_space<vmem>>, vector<512x16xbf16>
    %50 = arith.truncf %48 : vector<16x512xf32> to vector<16x512xbf16>
    %51 = arith.mulf %48, %48 : vector<16x512xf32>
    %52 = arith.truncf %51 : vector<16x512xf32> to vector<16x512xbf16>
    %cst_29 = arith.constant dense<0.000000e+00> : vector<16x16xf32>
    %53 = tpu.matmul %50, %49, %cst_29 {dimension_numbers = #tpu.dot_dimension_numbers<[1], [0], [0], [1], [0, 0, 1, 1], [], []>} : vector<16x512xbf16>, vector<512x16xbf16>, vector<16x16xf32> -> vector<16x16xf32>
    %cst_30 = arith.constant dense<0.000000e+00> : vector<16x16xf32>
    %54 = tpu.matmul %52, %49, %cst_30 {dimension_numbers = #tpu.dot_dimension_numbers<[1], [0], [0], [1], [0, 0, 1, 1], [], []>} : vector<16x512xbf16>, vector<512x16xbf16>, vector<16x16xf32> -> vector<16x16xf32>
    %cst_31 = arith.constant 4.000000e-02 : f32
    %55 = vector.broadcast %cst_31 : f32 to vector<16x16xf32>
    %56 = arith.mulf %53, %55 : vector<16x16xf32>
    %cst_32 = arith.constant 4.000000e-02 : f32
    %57 = vector.broadcast %cst_32 : f32 to vector<16x16xf32>
    %58 = arith.mulf %54, %57 : vector<16x16xf32>
    %59 = arith.mulf %56, %56 : vector<16x16xf32>
    %60 = arith.subf %58, %59 : vector<16x16xf32>
    %cst_33 = arith.constant 0.000000e+00 : f32
    %61 = vector.broadcast %cst_33 : f32 to vector<16x16xf32>
    %62 = arith.maximumf %60, %61 : vector<16x16xf32>
    %cst_34 = arith.constant 9.99999974E-6 : f32
    %63 = vector.broadcast %cst_34 : f32 to vector<16x16xf32>
    %64 = arith.addf %62, %63 : vector<16x16xf32>
    %65 = math.rsqrt %64 : vector<16x16xf32>
    %cst_35 = arith.constant 0.000000e+00 : f32
    %66 = vector.broadcast %cst_35 : f32 to vector<16x16xf32>
    %67 = arith.subf %66, %56 : vector<16x16xf32>
    %68 = arith.mulf %67, %65 : vector<16x16xf32>
    %c0_36 = arith.constant 0 : index
    %c0_37 = arith.constant 0 : index
    %69 = vector.load %arg9[%c0_36, %c0_37] : memref<16x512xbf16, #tpu.memory_space<vmem>>, vector<16x512xbf16>
    %70 = arith.truncf %65 : vector<16x16xf32> to vector<16x16xbf16>
    %cst_38 = arith.constant dense<0.000000e+00> : vector<16x512xf32>
    %71 = tpu.matmul %70, %69, %cst_38 {dimension_numbers = #tpu.dot_dimension_numbers<[1], [0], [0], [1], [0, 0, 1, 1], [], []>} : vector<16x16xbf16>, vector<16x512xbf16>, vector<16x512xf32> -> vector<16x512xf32>
    %72 = arith.truncf %68 : vector<16x16xf32> to vector<16x16xbf16>
    %cst_39 = arith.constant dense<0.000000e+00> : vector<16x512xf32>
    %73 = tpu.matmul %72, %69, %cst_39 {dimension_numbers = #tpu.dot_dimension_numbers<[1], [0], [0], [1], [0, 0, 1, 1], [], []>} : vector<16x16xbf16>, vector<16x512xbf16>, vector<16x512xf32> -> vector<16x512xf32>
    %74 = arith.mulf %48, %71 : vector<16x512xf32>
    %75 = arith.addf %74, %73 : vector<16x512xf32>
    %76 = arith.truncf %75 : vector<16x512xf32> to vector<16x512xbf16>
    %c0_40 = arith.constant 0 : index
    %c0_41 = arith.constant 0 : index
    %77 = vector.load %arg10[%c0_40, %c0_41] : memref<512x128xbf16, #tpu.memory_space<vmem>>, vector<512x128xbf16>
    %cst_42 = arith.constant dense<0.000000e+00> : vector<16x128xf32>
    %78 = tpu.matmul %76, %77, %cst_42 {dimension_numbers = #tpu.dot_dimension_numbers<[1], [0], [0], [1], [0, 0, 1, 1], [], []>} : vector<16x512xbf16>, vector<512x128xbf16>, vector<16x128xf32> -> vector<16x128xf32>
    %c0_43 = arith.constant 0 : index
    %c0_44 = arith.constant 0 : index
    %79 = vector.load %arg11[%c0_43, %c0_44] : memref<1x128xf32, #tpu.memory_space<vmem>>, vector<1x128xf32>
    %80 = vector.broadcast %79 : vector<1x128xf32> to vector<16x128xf32>
    %81 = arith.addf %78, %80 : vector<16x128xf32>
    %cst_45 = arith.constant 0.000000e+00 : f32
    %82 = vector.broadcast %cst_45 : f32 to vector<16x128xf32>
    %83 = arith.cmpf ogt, %81, %82 : vector<16x128xf32>
    %cst_46 = arith.constant 0.00999999977 : f32
    %84 = vector.broadcast %cst_46 : f32 to vector<16x128xf32>
    %85 = arith.mulf %84, %81 : vector<16x128xf32>
    %86 = arith.select %83, %81, %85 : vector<16x128xi1>, vector<16x128xf32>
    %c0_47 = arith.constant 0 : index
    %c0_48 = arith.constant 0 : index
    %87 = vector.load %arg12[%c0_47, %c0_48] : memref<16x128xf32, #tpu.memory_space<vmem>>, vector<16x128xf32>
    tpu.vector_store %arg12[%c0_47, %c0_48], %86 {strides = array<i32>} : memref<16x128xf32, #tpu.memory_space<vmem>>, vector<16x128xf32>,
    return
  }
  func.func @transform_0(%arg0: i32) -> (i32, i32) {
    %c0_i32 = arith.constant 0 : i32
    %c0_i32_0 = arith.constant 0 : i32
    return %arg0, %c0_i32 : i32, i32
  }
  func.func @transform_1(%arg0: i32) -> (i32, i32) {
    %c0_i32 = arith.constant 0 : i32
    %c0_i32_0 = arith.constant 0 : i32
    %c0_i32_1 = arith.constant 0 : i32
    return %c0_i32, %c0_i32_0 : i32, i32
  }
  func.func @transform_2(%arg0: i32) -> (i32, i32) {
    %c0_i32 = arith.constant 0 : i32
    %c0_i32_0 = arith.constant 0 : i32
    %c0_i32_1 = arith.constant 0 : i32
    return %c0_i32, %c0_i32_0 : i32, i32
  }
  func.func @transform_3(%arg0: i32) -> (i32, i32) {
    %c0_i32 = arith.constant 0 : i32
    %c0_i32_0 = arith.constant 0 : i32
    %c0_i32_1 = arith.constant 0 : i32
    return %c0_i32, %c0_i32_0 : i32, i32
  }
  func.func @transform_4(%arg0: i32) -> (i32, i32) {
    %c0_i32 = arith.constant 0 : i32
    %c0_i32_0 = arith.constant 0 : i32
    %c0_i32_1 = arith.constant 0 : i32
    return %c0_i32, %c0_i32_0 : i32, i32
  }
  func.func @transform_5(%arg0: i32) -> (i32, i32) {
    %c0_i32 = arith.constant 0 : i32
    %c0_i32_0 = arith.constant 0 : i32
    %c0_i32_1 = arith.constant 0 : i32
    return %c0_i32, %c0_i32_0 : i32, i32
  }
  func.func @transform_6(%arg0: i32) -> (i32, i32) {
    %c0_i32 = arith.constant 0 : i32
    %c0_i32_0 = arith.constant 0 : i32
    %c0_i32_1 = arith.constant 0 : i32
    return %c0_i32, %c0_i32_0 : i32, i32
  }
  func.func @transform_7(%arg0: i32) -> (i32, i32) {
    %c0_i32 = arith.constant 0 : i32
    %c0_i32_0 = arith.constant 0 : i32
    %c0_i32_1 = arith.constant 0 : i32
    return %c0_i32, %c0_i32_0 : i32, i32
  }
  func.func @transform_8(%arg0: i32) -> (i32, i32) {
    %c0_i32 = arith.constant 0 : i32
    %c0_i32_0 = arith.constant 0 : i32
    %c0_i32_1 = arith.constant 0 : i32
    return %c0_i32, %c0_i32_0 : i32, i32
  }
  func.func @transform_9(%arg0: i32) -> (i32, i32) {
    %c0_i32 = arith.constant 0 : i32
    %c0_i32_0 = arith.constant 0 : i32
    %c0_i32_1 = arith.constant 0 : i32
    return %c0_i32, %c0_i32_0 : i32, i32
  }
  func.func @transform_10(%arg0: i32) -> (i32, i32) {
    %c0_i32 = arith.constant 0 : i32
    %c0_i32_0 = arith.constant 0 : i32
    %c0_i32_1 = arith.constant 0 : i32
    return %c0_i32, %c0_i32_0 : i32, i32
  }
  func.func @transform_11(%arg0: i32) -> (i32, i32) {
    %c0_i32 = arith.constant 0 : i32
    %c0_i32_0 = arith.constant 0 : i32
    return %arg0, %c0_i32 : i32, i32
  }
}

</mosaic_0001>

<bundles_post_ra>
// kernel: tpu_custom_call.1
= control target key start
LH: loop header
LB: loop body
LE: loop exit
PB: predicated region body
PF: predicated region fallthrough
CT: control target
= control target key end

     0   :  { %s10661_s0 = inlined_call_operand.hbm [shape: bf16[64,900], index: 0, kind: input, shape index: {}]   ;;  %s10662_s1 = inlined_call_operand.hbm [shape: bf16[900,768], index: 1, kind: input, shape index: {}]   ;;  %s10663_s2 = inlined_call_operand.hbm [shape: f32[1,768], index: 2, kind: input, shape index: {}]   ;;  %s10664_s3 = inlined_call_operand.vmem [shape: bf16[768,8], index: 3, kind: input, shape index: {}]   ;;  %s10665_s4 = inlined_call_operand.hbm [shape: bf16[8,768], index: 4, kind: input, shape index: {}]   ;;  %s10666_s5 = inlined_call_operand.hbm [shape: bf16[768,512], index: 5, kind: input, shape index: {}]   ;;  %s10667_s6 = inlined_call_operand.hbm [shape: f32[1,512], index: 6, kind: input, shape index: {}]   ;;  %s10668_s7 = inlined_call_operand.vmem [shape: bf16[512,16], index: 7, kind: input, shape index: {}]   ;;  %s10669_s8 = inlined_call_operand.hbm [shape: bf16[16,512], index: 8, kind: input, shape index: {}]   ;;  %s10670_s9 = inlined_call_operand.hbm [shape: bf16[512,128], index: 9, kind: input, shape index: {}]   ;;  %s10671_s10 = inlined_call_operand.hbm [shape: f32[1,128], index: 10, kind: input, shape index: {}]   ;;  %s10672_s11 = inlined_call_operand.hbm [shape: f32[64,128], index: 11, kind: output, shape index: {}]  }
   0x1   :  { %10686 = sst [smem:[#allocation26_spill]] %s10661_s0 }
   0x2   :  { %10687 = sst [smem:[#allocation27_spill]] %s10664_s3 }
   0x3   :  { %10688 = sst [smem:[#allocation28_spill]] %s10668_s7 }
   0x4   :  { %10689 = sst [smem:[#allocation29_spill]] %s10672_s11 }
   0x5   :  { %16 = vsyncpa [#allocation3], 0 }
   0x6   :  { %18 = vsyncpa [#allocation3 + $0x1], 0 }
   0x7   :  { %19 = vsyncpa [#allocation6], 0 }
   0x8   :  { %20 = vsyncpa [#allocation9], 0 }
   0x9   :  { %21 = vsyncpa [#allocation12], 0 }
   0xa   :  { %22 = vsyncpa [#allocation15], 0 }
   0xb   :  { %23 = vsyncpa [#allocation4], 0 }
   0xc   :  { %25 = vsyncpa [#allocation4 + $0x1], 0  ;;  %s9418_s17 = smov 0   ;;  %s9420_s18 = smov 0  }
   0xd   :  { %s9422_s19 = smov 0   ;;  %s9424_s20 = smov 0  }
   0xe LB: > { %s9337_s21 = smov [#allocation5]   ;;  %s9439_s23 = sadd.s32 4294967295, %s9335_s20   ;;  %s9335_s20 = sphi %s9424_s20, %s10725_s20   ;;  %s9331_s19 = sphi %s9422_s19, %s10724_s19   ;;  %s9327_s18 = sphi %s9420_s18, %s10723_s18   ;;  %s9323_s17 = sphi %s9418_s17, %s10722_s17  }
   0xf   : > { %s310_s22 = sshll.u32 %s9337_s21, 4  ;;  %p6863_p0 = scmp.ge.s32.totalorder %s9335_s20, 1  ;;  %s9444_s22 = int_to_ptr.vmem [resolvable:$true] %s310_s22 }
  0x10   : > { %p10676_p1 = scmp.eq.s32.totalorder %s9439_s23, 0  ;;  %p298_p2 = scmp.lt.s32.totalorder %s9335_s20, 5 }
  0x11   : > { %s9338_s25 = smov [#allocation8]   ;;  %s9339_s28 = smov [#allocation11]  }
  0x12   : > { %p9446_p3 = pnand %p6863_p0, %p298_p2  ;;  %s338_s26 = sshll.u32 %s9338_s25, 4  ;;  %s9458_s26 = int_to_ptr.vmem [resolvable:$true] %s338_s26 }
  0x13   : > { %s362_s29 = sshll.u32 %s9339_s28, 4  ;;  %s8999_s13 = scalar_lea.hbm %s10662_s1, 43392  ;;  %s9460_s29 = int_to_ptr.vmem [resolvable:$true] %s362_s29 }
  0x14   : > { %s10690_s24 = scalar_select %p9446_p3, 1, 0 }
  0x15   : > { %p7955_p4 = pneg %p9446_p3  ;;  %p9000_p6 = scmp.ne.s32.totalorder %s10662_s1, %s8999_s13 }
  0x16   : > { %p9006_p10 = scmp.lt.u32.totalorder %s8999_s13, %s10662_s1 }
  0x17   : > { %p9454_p5 = pnand %p7955_p4, %p10676_p1 }
  0x19   : > { %p9470_p7 = pneg %p9454_p5 }
  0x1b   : > { %p9002_p8 = pnand %p9470_p7, %p9000_p6 }
  0x1d   : > { %p9003_p9 = pneg %p9002_p8 }
  0x1f   : > { %p9008_p11 = pnand %p9006_p10, %p9003_p9 }
  0x21   : > { %9011 = shalt.err (!%p9008_p11)
}
  0x22   : > { %s9012_s28 = scalar_lea.vmem %s9444_s22, 43392  ;;  %p9020_p2 = scmp.lt.s32.totalorder %s9444_s22, %s9444_s22 }
  0x23   : > { %p9013_p12 = scmp.ne.s32.totalorder %s9444_s22, %s9012_s28  ;;  %p9021_p4 = scmp.lt.s32.totalorder %s9012_s28, %s9012_s28 }
  0x25   : > { %p9015_p13 = pnand %p9013_p12, %p9470_p7  ;;  %p9022_p6 = por %p9021_p4, %p9020_p2 }
  0x27   : > { %p9016_p0 = pneg %p9015_p13 }
  0x29   : > { %p9023_p8 = pnand %p9022_p6, %p9016_p0 }
  0x2b   : > { %9026 = shalt.err (!%p9023_p8)
}
  0x2c   : > { %s9340_s30 = smov 384   ;;  %s9341_s12 = smov 24  }
  0x2d   : > { %7958 = dma.hbm_to_vmem [thread:$0]  (!%p9454_p5), %s10662_s1, 43392, %s9444_s22, [#allocation6], %s9340_s30, %s9340_s30, %s9341_s12  }
  0x2e   : > { %s9027_s25 = scalar_lea.hbm %s10665_s4, 384 }
  0x2f   : > { %p9028_p9 = scmp.ne.s32.totalorder %s10665_s4, %s9027_s25  ;;  %p9034_p12 = scmp.lt.u32.totalorder %s9027_s25, %s10665_s4 }
  0x31   : > { %p9030_p10 = pnand %p9028_p9, %p9470_p7 }
  0x33   : > { %p9031_p11 = pneg %p9030_p10 }
  0x35   : > { %p9036_p13 = pnand %p9034_p12, %p9031_p11 }
  0x37   : > { %9039 = shalt.err (!%p9036_p13)
}
  0x38   : > { %s9040_s22 = scalar_lea.vmem %s9458_s26, 384  ;;  %p9048_p6 = scmp.lt.s32.totalorder %s9458_s26, %s9458_s26 }
  0x39   : > { %p9041_p0 = scmp.ne.s32.totalorder %s9458_s26, %s9040_s22  ;;  %p9049_p8 = scmp.lt.s32.totalorder %s9040_s22, %s9040_s22 }
  0x3b   : > { %p9043_p2 = pnand %p9041_p0, %p9470_p7  ;;  %p9050_p9 = por %p9049_p8, %p9048_p6 }
  0x3d   : > { %p9044_p4 = pneg %p9043_p2 }
  0x3f   : > { %p9051_p10 = pnand %p9050_p9, %p9044_p4 }
  0x41   : > { %9054 = shalt.err (!%p9051_p10)
}
  0x42   : > { %7964 = dma.hbm_to_vmem [thread:$0]  (!%p9454_p5), %s10665_s4, 384, %s9458_s26, [#allocation9]  }
  0x43   : > { %s9055_s12 = scalar_lea.hbm %s10667_s6, 64 }
  0x44   : > { %p9056_p11 = scmp.ne.s32.totalorder %s10667_s6, %s9055_s12  ;;  %p9062_p0 = scmp.lt.u32.totalorder %s9055_s12, %s10667_s6 }
  0x46   : > { %p9058_p12 = pnand %p9056_p11, %p9470_p7 }
  0x48   : > { %p9059_p13 = pneg %p9058_p12 }
  0x4a   : > { %p9064_p2 = pnand %p9062_p0, %p9059_p13 }
  0x4c   : > { %9067 = shalt.err (!%p9064_p2)
}
  0x4d   : > { %s9068_s26 = scalar_lea.vmem %s9460_s29, 64  ;;  %p9076_p9 = scmp.lt.s32.totalorder %s9460_s29, %s9460_s29 }
  0x4e   : > { %p9069_p4 = scmp.ne.s32.totalorder %s9460_s29, %s9068_s26  ;;  %p9077_p10 = scmp.lt.s32.totalorder %s9068_s26, %s9068_s26 }
  0x50   : > { %p9071_p6 = pnand %p9069_p4, %p9470_p7  ;;  %p9078_p11 = por %p9077_p10, %p9076_p9 }
  0x52   : > { %p9072_p8 = pneg %p9071_p6 }
  0x54   : > { %p9079_p12 = pnand %p9078_p11, %p9072_p8 }
  0x56   : > { %9082 = shalt.err (!%p9079_p12)
}
  0x57   : > { %7970 = dma.hbm_to_vmem [thread:$0]  (!%p9454_p5), %s10667_s6, 64, %s9460_s29, [#allocation12]  }
  0x58   : > { %s9342_s22 = smov [#allocation14]   ;;  %s9083_s30 = scalar_lea.hbm %s10670_s9, 4096 }
  0x59   : > { %s388_s3 = sshll.u32 %s9342_s22, 4  ;;  %p9084_p13 = scmp.ne.s32.totalorder %s10670_s9, %s9083_s30  ;;  %s389_s3 = int_to_ptr.vmem [resolvable:$true] %s388_s3 }
  0x5a   : > { %p9090_p4 = scmp.lt.u32.totalorder %s9083_s30, %s10670_s9 }
  0x5b   : > { %p9086_p0 = pnand %p9084_p13, %p9470_p7 }
  0x5d   : > { %p9087_p2 = pneg %p9086_p0 }
  0x5f   : > { %p9092_p6 = pnand %p9090_p4, %p9087_p2 }
  0x61   : > { %9095 = shalt.err (!%p9092_p6)
}
  0x62   : > { %s9096_s29 = scalar_lea.vmem %s389_s3, 4096  ;;  %p9104_p11 = scmp.lt.s32.totalorder %s389_s3, %s389_s3 }
  0x63   : > { %p9097_p8 = scmp.ne.s32.totalorder %s389_s3, %s9096_s29  ;;  %p9105_p12 = scmp.lt.s32.totalorder %s9096_s29, %s9096_s29 }
  0x65   : > { %p9099_p9 = pnand %p9097_p8, %p9470_p7  ;;  %p9106_p1 = por %p9105_p12, %p9104_p11 }
  0x67   : > { %p9100_p10 = pneg %p9099_p9 }
  0x69   : > { %p9107_p3 = pnand %p9106_p1, %p9100_p10 }
  0x6b   : > { %9110 = shalt.err (!%p9107_p3)
}
  0x6c   : > { %s9343_s21 = smov 64   ;;  %s9344_s26 = smov 4  }
  0x6d   : > { %7976 = dma.hbm_to_vmem [thread:$0]  (!%p9454_p5), %s10670_s9, 4096, %s389_s3, [#allocation15], %s9343_s21, %s9343_s21, %s9344_s26  }
  0x6e   : > { %s9345_s22 = smov [#allocation7]   ;;  %s9346_s11 = smov [#allocation10]  }
  0x6f   : > { %s324_s7 = sshll.u32 %s9345_s22, 4  ;;  %s348_s30 = sshll.u32 %s9346_s11, 4  ;;  %s325_s7 = int_to_ptr.vmem [resolvable:$true] %s324_s7  ;;  %s9555_s30 = int_to_ptr.vmem [resolvable:$true] %s348_s30 }
  0x70   : > { %s9111_s14 = scalar_lea.hbm %s10663_s2, 96 }
  0x71   : > { %p9112_p1 = scmp.ne.s32.totalorder %s10663_s2, %s9111_s14  ;;  %p9118_p0 = scmp.lt.u32.totalorder %s9111_s14, %s10663_s2 }
  0x73   : > { %p9114_p3 = pnand %p9112_p1, %p9470_p7 }
  0x75   : > { %p9115_p13 = pneg %p9114_p3 }
  0x77   : > { %p9120_p2 = pnand %p9118_p0, %p9115_p13 }
  0x79   : > { %9123 = shalt.err (!%p9120_p2)
}
  0x7a   : > { %s9124_s21 = scalar_lea.vmem %s325_s7, 96  ;;  %p9132_p9 = scmp.lt.s32.totalorder %s325_s7, %s325_s7 }
  0x7b   : > { %p9125_p4 = scmp.ne.s32.totalorder %s325_s7, %s9124_s21  ;;  %p9133_p10 = scmp.lt.s32.totalorder %s9124_s21, %s9124_s21 }
  0x7d   : > { %p9127_p6 = pnand %p9125_p4, %p9470_p7  ;;  %p9134_p11 = por %p9133_p10, %p9132_p9 }
  0x7f   : > { %p9128_p8 = pneg %p9127_p6 }
  0x81   : > { %p9135_p12 = pnand %p9134_p11, %p9128_p8 }
  0x83   : > { %9138 = shalt.err (!%p9135_p12)
}
  0x84   : > { %7961 = dma.hbm_to_vmem [thread:$0]  (!%p9454_p5), %s10663_s2, 96, %s325_s7, [#allocation6]  }
  0x85   : > { %s9139_s12 = scalar_lea.hbm %s10666_s5, 24576 }
  0x86   : > { %p9140_p1 = scmp.ne.s32.totalorder %s10666_s5, %s9139_s12  ;;  %p9146_p0 = scmp.lt.u32.totalorder %s9139_s12, %s10666_s5 }
  0x88   : > { %p9142_p3 = pnand %p9140_p1, %p9470_p7 }
  0x8a   : > { %p9143_p13 = pneg %p9142_p3 }
  0x8c   : > { %p9148_p2 = pnand %p9146_p0, %p9143_p13 }
  0x8e   : > { %9151 = shalt.err (!%p9148_p2)
}
  0x8f   : > { %s9152_s7 = scalar_lea.vmem %s9555_s30, 24576  ;;  %p9160_p9 = scmp.lt.s32.totalorder %s9555_s30, %s9555_s30 }
  0x90   : > { %p9153_p4 = scmp.ne.s32.totalorder %s9555_s30, %s9152_s7  ;;  %p9161_p10 = scmp.lt.s32.totalorder %s9152_s7, %s9152_s7 }
  0x92   : > { %p9155_p6 = pnand %p9153_p4, %p9470_p7  ;;  %p9162_p11 = por %p9161_p10, %p9160_p9 }
  0x94   : > { %p9156_p8 = pneg %p9155_p6 }
  0x96   : > { %p9163_p12 = pnand %p9162_p11, %p9156_p8 }
  0x98   : > { %9166 = shalt.err (!%p9163_p12)
}
  0x99   : > { %s9347_s25 = smov 256   ;;  %s9348_s3 = smov 16  }
  0x9a   : > { %7967 = dma.hbm_to_vmem [thread:$0]  (!%p9454_p5), %s10666_s5, 24576, %s9555_s30, [#allocation9], %s9347_s25, %s9347_s25, %s9348_s3  }
  0x9b   : > { %s9349_s28 = smov [#allocation13]   ;;  %s9350_s11 = smov [#allocation16]  }
  0x9c   : > { %s375_s22 = sshll.u32 %s9349_s28, 4  ;;  %s402_s12 = sshll.u32 %s9350_s11, 4  ;;  %s376_s22 = int_to_ptr.vmem [resolvable:$true] %s375_s22  ;;  %s9598_s12 = int_to_ptr.vmem [resolvable:$true] %s402_s12 }
  0x9d   : > { %s9167_s15 = scalar_lea.hbm %s10669_s8, 512 }
  0x9e   : > { %p9168_p1 = scmp.ne.s32.totalorder %s10669_s8, %s9167_s15  ;;  %p9174_p0 = scmp.lt.u32.totalorder %s9167_s15, %s10669_s8 }
  0xa0   : > { %p9170_p3 = pnand %p9168_p1, %p9470_p7 }
  0xa2   : > { %p9171_p13 = pneg %p9170_p3 }
  0xa4   : > { %p9176_p2 = pnand %p9174_p0, %p9171_p13 }
  0xa6   : > { %9179 = shalt.err (!%p9176_p2)
}
  0xa7   : > { %s9180_s26 = scalar_lea.vmem %s376_s22, 512  ;;  %p9188_p9 = scmp.lt.s32.totalorder %s376_s22, %s376_s22 }
  0xa8   : > { %p9181_p4 = scmp.ne.s32.totalorder %s376_s22, %s9180_s26  ;;  %p9189_p10 = scmp.lt.s32.totalorder %s9180_s26, %s9180_s26 }
  0xaa   : > { %p9183_p6 = pnand %p9181_p4, %p9470_p7  ;;  %p9190_p11 = por %p9189_p10, %p9188_p9 }
  0xac   : > { %p9184_p8 = pneg %p9183_p6 }
  0xae   : > { %p9191_p12 = pnand %p9190_p11, %p9184_p8 }
  0xb0   : > { %9194 = shalt.err (!%p9191_p12)
}
  0xb1   : > { %7973 = dma.hbm_to_vmem [thread:$0]  (!%p9454_p5), %s10669_s8, 512, %s376_s22, [#allocation12], %s9347_s25, %s9347_s25, %s9348_s3  }
  0xb2   : > { %s9195_s15 = scalar_lea.hbm %s10671_s10, 16 }
  0xb3   : > { %p9196_p1 = scmp.ne.s32.totalorder %s10671_s10, %s9195_s15  ;;  %p9202_p0 = scmp.lt.u32.totalorder %s9195_s15, %s10671_s10 }
  0xb5   : > { %p9198_p3 = pnand %p9196_p1, %p9470_p7 }
  0xb7   : > { %p9199_p13 = pneg %p9198_p3 }
  0xb9   : > { %p9204_p2 = pnand %p9202_p0, %p9199_p13 }
  0xbb   : > { %9207 = shalt.err (!%p9204_p2)
}
  0xbc   : > { %s9208_s25 = scalar_lea.vmem %s9598_s12, 16  ;;  %s9215_s3 = scalar_lea.vmem %s9598_s12, 32 }
  0xbd   : > { %p9209_p4 = scmp.ne.s32.totalorder %s9598_s12, %s9208_s25  ;;  %p9216_p9 = scmp.lt.s32.totalorder %s9598_s12, %s9598_s12 }
  0xbe   : > { %p9217_p10 = scmp.lt.s32.totalorder %s9215_s3, %s9208_s25 }
  0xbf   : > { %p9211_p6 = pnand %p9209_p4, %p9470_p7 }
  0xc0   : > { %p9218_p11 = por %p9217_p10, %p9216_p9 }
  0xc1   : > { %p9212_p8 = pneg %p9211_p6 }
  0xc3   : > { %p9219_p12 = pnand %p9218_p11, %p9212_p8 }
  0xc5   : > { %9222 = shalt.err (!%p9219_p12)
}
  0xc6   : > { %7979 = dma.hbm_to_vmem [thread:$0]  (!%p9454_p5), %s10671_s10, 16, %s9598_s12, [#allocation15]  }
  0xc7   : > { %s6862_s27 = sadd.s32 4294967294, %s9335_s20   ;;  %s9644_s16 = sadd.s32 1, %s9335_s20  }
  0xc8   : > { %s35_s28 = ssub.s32 %s9335_s20, %s9644_s16  ;;  %s38_s11 = sadd.s32 1, %s9331_s19 }
  0xc9   : > { %p36_p7 = scmp.eq.s32.totalorder %s35_s28, 0  ;;  %p45_p1 = scmp.ne.s32.totalorder %s9331_s19, %s9327_s18 }
  0xca   : > { %p46_p3 = scmp.eq.s32.totalorder %s9335_s20, 0  ;;  %p51_p13 = scmp.ne.s32.totalorder %s9327_s18, %s9323_s17 }
  0xcb   : > { %s9655_s13 = scalar_select %p36_p7, %s9331_s19, %s38_s11  }
  0xcc   : > { %p9657_p0 = por %p46_p3, %p45_p1  ;;  %p10694_p2 = scmp.eq.s32.totalorder %s9439_s23, 0 }
  0xcd   : > { %p285_p4 = scmp.eq.s32.totalorder %s9439_s23, 3  ;;  %p291_p6 = scmp.eq.s32.totalorder %s6862_s27, 3 }
  0xce   : > { %p9663_p5 = por %p10694_p2, %p51_p13  ;;  %p7996_p8 = scmp.lt.s32.totalorder %s9335_s20, 4 }
  0xcf   : > { %s413_s15 = sand.u32 1, %s9331_s19   ;;  %p9670_p9 = por %p285_p4, %p45_p1 }
  0xd0   : > { %p9674_p10 = por %p291_p6, %p51_p13  ;;  %s6873_s21 = sshll.u32 %s413_s15, 6 }
  0xd1   : > { %s10696_s29 = scalar_select %p9670_p9, 1, 0 }
  0xd2   : > { %s10697_s7 = scalar_select %p9674_p10, 1, 0 }
  0xd3   : > { %s7581_s30 = sshll.u32 %s9335_s20, 10  ;;  %s10698_s0 = sld [smem:[#allocation26_spill]] }
  0xd4   : > { %s417_s26 = scalar_lea.vmem [#allocation2], %s6873_s21  ;;  %p9688_p11 = pnand %p7996_p8, %p9657_p0 }
  0xd5   : > { %s425_s27 = sshll.u32 %s417_s26, 4  ;;  %s9692_s11 = scalar_lea.sflag [#allocation3], %s413_s15  ;;  %s9684_s27 = int_to_ptr.vmem [resolvable:$true] %s425_s27 }
  0xd6   : > { %p9225_p7 = pneg %p9688_p11 }
  0xd9   : > { %s9682_s22 = scalar_lea.hbm %s10698_s0, %s7581_s30  ;;  %s9228_s14 = scalar_lea.hbm %s10698_s0, 4096 }
  0xda   : > { %s9223_s25 = scalar_lea.hbm %s9682_s22, 1024  ;;  %p9229_p13 = scmp.lt.u32.totalorder %s9682_s22, %s10698_s0 }
  0xdb   : > { %p9224_p12 = scmp.ne.s32.totalorder %s9682_s22, %s9223_s25  ;;  %p9230_p0 = scmp.lt.u32.totalorder %s9228_s14, %s9223_s25 }
  0xdc   : > { %p9232_p4 = scmp.lt.u32.totalorder %s9223_s25, %s9682_s22 }
  0xdd   : > { %p9226_p1 = pnand %p9225_p7, %p9224_p12  ;;  %p9231_p2 = por %p9230_p0, %p9229_p13 }
  0xdf   : > { %p9227_p3 = pneg %p9226_p1  ;;  %p9233_p6 = por %p9232_p4, %p9231_p2 }
  0xe1   : > { %p9234_p8 = pnand %p9233_p6, %p9227_p3 }
  0xe3   : > { %9237 = shalt.err (!%p9234_p8)
}
  0xe4   : > { %s9238_s15 = scalar_lea.vmem %s9684_s27, 1024  ;;  %s9351_s21 = smov [#allocation2]  }
  0xe5   : > { %p9239_p12 = scmp.ne.s32.totalorder %s9684_s27, %s9238_s15  ;;  %s9243_s30 = sshll.u32 %s9351_s21, 4  ;;  %s9244_s30 = int_to_ptr.vmem [resolvable:$false] %s9243_s30 }
  0xe6   : > { %s9245_s3 = scalar_lea.vmem %s9244_s30, 2048  ;;  %p9246_p9 = scmp.lt.s32.totalorder %s9684_s27, %s9244_s30 }
  0xe7   : > { %p9241_p1 = pnand %p9239_p12, %p9225_p7  ;;  %p9247_p13 = scmp.lt.s32.totalorder %s9245_s3, %s9238_s15 }
  0xe9   : > { %p9242_p10 = pneg %p9241_p1  ;;  %p9248_p0 = por %p9247_p13, %p9246_p9 }
  0xeb   : > { %p9249_p2 = pnand %p9248_p0, %p9242_p10 }
  0xed   : > { %9252 = shalt.err (!%p9249_p2)
}
  0xee   : > { %s9352_s25 = smov 512   ;;  %s9353_s14 = smov 32  }
  0xef   : > { %7983 = dma.hbm_to_vmem [thread:$0]  (!%p9688_p11), %s9682_s22, 1024, %s9684_s27, %s9692_s11, %s9352_s25, %s9352_s25, %s9353_s14  }
  0xf0   : > { %p10700_p7 = scmp.ne.s32.totalorder %s10690_s24, 0 }
  0xf2   : > { %437 = sbr.rel (%p10700_p7) target bundleno = 2618 (0xa3a), region = 64 }
  0xf9   : > { %s9723_s26 = sand.u32 1, %s9327_s18  }
  0xfa   : > { %s6878_s15 = sshll.u32 %s9723_s26, 6  ;;  %s440_s21 = scalar_lea.sflag [#allocation3], %s9723_s26 }
  0xfb   : > { %s9727_s30 = scalar_lea.vmem [#allocation2], %s6878_s15 }
  0xfc   : > { %9298 = dma.done.wait (%p9663_p5), %s440_s21, 1024  }
  0xfd   : > { %9300 = vsyncadd (%p9663_p5), %s440_s21, 4294966272  ;;  %p10701_p9 = scmp.eq.s32.totalorder %s9439_s23, 0 }
  0xff   : > { %9302 = dma.done.wait (%p10701_p9), [#allocation6], 43488   ;;  %p10702_p10 = pmov %p10701_p9 }
 0x100   : > { %p10703_p11 = pmov %p10701_p9 }
 0x101   : > { %9304 = vsyncadd (%p10702_p10), [#allocation6], 4294923808 }
 0x102   : > { %9306 = dma.done.wait (%p10703_p11), [#allocation9], 24960   ;;  %p10704_p3 = pmov %p10701_p9 }
 0x104   : > { %9308 = vsyncadd (%p10704_p3), [#allocation9], 4294942336  ;;  %p10705_p4 = pmov %p10704_p3 }
 0x105   : > { %p10706_p6 = pmov %p10704_p3 }
 0x106   : > { %9310 = dma.done.wait (%p10705_p4), [#allocation12], 576  }
 0x107   : > { %9312 = vsyncadd (%p10706_p6), [#allocation12], 4294966720  ;;  %p10707_p5 = pmov %p10704_p3 }
 0x108   : > { %p10708_p8 = pmov %p10704_p3 }
 0x109   : > { %9314 = dma.done.wait (%p10707_p5), [#allocation15], 4112  }
 0x10a   : > { %9316 = vsyncadd (%p10708_p8), [#allocation15], 4294963184  ;;  %v8057_v0 = vld [vmem:[#allocation5 + $0x4] ss:$24 sps:$4 sm:$0xff]   ;;  %v8059_v1 = vld [vmem:[#allocation5] ss:$24 sps:$4 sm:$0xff]  }
 0x10b   : > { %2653 = vmatprep.subr.bf16.mxu0 %v8057_v0  ;;  %v8060_v2 = vld [vmem:[#allocation5 + $0x34] ss:$24 sps:$4 sm:$0xff]   ;;  %v8062_v3 = vld [vmem:[#allocation5 + $0x30] ss:$24 sps:$4 sm:$0xff]   ;;  %v8063_v4 = vld [vmem:[#allocation5 + $0x64] ss:$24 sps:$4 sm:$0xff]  }
 0x10c   : > { %2654 = vmatpush1.bf16.msra.mxu0 %v8059_v1  ;;  %v8065_v5 = vld [vmem:[#allocation5 + $0x60] ss:$24 sps:$4 sm:$0xff]   ;;  %v8066_v6 = vld [vmem:[#allocation5 + $0x94] ss:$24 sps:$4 sm:$0xff]   ;;  %v8068_v7 = vld [vmem:[#allocation5 + $0x90] ss:$24 sps:$4 sm:$0xff]  }
 0x10d   : > { %2655 = vmatprep.subr.bf16.mxu0 %v8060_v2  ;;  %v8080_v8 = vld [vmem:[#allocation5 + $0xc] ss:$24 sps:$4 sm:$0xff]   ;;  %v8083_v9 = vld [vmem:[#allocation5 + $0x8] ss:$24 sps:$4 sm:$0xff]   ;;  %v8086_v11 = vld [vmem:[#allocation5 + $0x3c] ss:$24 sps:$4 sm:$0xff]  }
 0x10e   : > { %v8069_v10 = vld [vmem:[#allocation5 + $0xc4] ss:$24 sps:$4 sm:$0xff]   ;;  %2825 = vmatprep.subr.bf16.mxu1 %v8080_v8  ;;  %v8089_v12 = vld [vmem:[#allocation5 + $0x38] ss:$24 sps:$4 sm:$0xff]   ;;  %v8072_v14 = vld [vmem:[#allocation5 + $0xf4] ss:$24 sps:$4 sm:$0xff]  }
 0x10f   : > { %2826 = vmatpush1.bf16.msra.mxu1 %v8083_v9  ;;  %v8071_v13 = vld [vmem:[#allocation5 + $0xc0] ss:$24 sps:$4 sm:$0xff]   ;;  %v8092_v15 = vld [vmem:[#allocation5 + $0x6c] ss:$24 sps:$4 sm:$0xff]   ;;  %v8074_v17 = vld [vmem:[#allocation5 + $0xf0] ss:$24 sps:$4 sm:$0xff]  }
 0x110   : > { %2656 = vmatpush1.bf16.msra.mxu0 %v8062_v3  ;;  %2827 = vmatprep.subr.bf16.mxu1 %v8086_v11  ;;  %v8095_v16 = vld [vmem:[#allocation5 + $0x68] ss:$24 sps:$4 sm:$0xff]   ;;  %v8098_v18 = vld [vmem:[#allocation5 + $0x9c] ss:$24 sps:$4 sm:$0xff]   ;;  %v8101_v21 = vld [vmem:[#allocation5 + $0x98] ss:$24 sps:$4 sm:$0xff]  }
 0x111   : > { %2657 = vmatprep.subr.bf16.mxu0 %v8063_v4  ;;  %v8075_v19 = vld [vmem:[#allocation5 + $0x124] ss:$24 sps:$4 sm:$0xff]   ;;  %v8077_v20 = vld [vmem:[#allocation5 + $0x120] ss:$24 sps:$4 sm:$0xff]   ;;  %v8078_v23 = vld [vmem:[#allocation5 + $0x154] ss:$24 sps:$4 sm:$0xff]  }
 0x112   : > { %v8104_v22 = vld [vmem:[#allocation5 + $0xcc] ss:$24 sps:$4 sm:$0xff]   ;;  %v8107_v24 = vld [vmem:[#allocation5 + $0xc8] ss:$24 sps:$4 sm:$0xff]   ;;  %v8110_v26 = vld [vmem:[#allocation5 + $0xfc] ss:$24 sps:$4 sm:$0xff]  }
 0x113   : > { %2828 = vmatpush1.bf16.msra.mxu1 %v8089_v12  ;;  %v8082_v25 = vld [vmem:[#allocation5 + $0x150] ss:$24 sps:$4 sm:$0xff]   ;;  %v8084_v27 = vld [vmem:[#allocation5 + $0x184] ss:$24 sps:$4 sm:$0xff]   ;;  %v8088_v28 = vld [vmem:[#allocation5 + $0x180] ss:$24 sps:$4 sm:$0xff]  }
 0x114   : > { %2658 = vmatpush1.bf16.msra.mxu0 %v8065_v5  ;;  %2829 = vmatprep.subr.bf16.mxu1 %v8092_v15  ;;  %v8113_v29 = vld [vmem:[#allocation5 + $0xf8] ss:$24 sps:$4 sm:$0xff]   ;;  %v8116_v30 = vld [vmem:[#allocation5 + $0x12c] ss:$24 sps:$4 sm:$0xff]   ;;  %v8119_v35 = vld [vmem:[#allocation5 + $0x128] ss:$24 sps:$4 sm:$0xff]  }
 0x115   : > { %2659 = vmatprep.subr.bf16.mxu0 %v8066_v6  ;;  %v8090_v31 = vld [vmem:[#allocation5 + $0x1b4] ss:$24 sps:$4 sm:$0xff]   ;;  %v8094_v32 = vld [vmem:[#allocation5 + $0x1b0] ss:$24 sps:$4 sm:$0xff]   ;;  %v517_v33 = vld [vmem:[%s9727_s30] sm:$0xff]  ;;  %vm2630_vm0 = vcmask 31744  }
 0x116   : > { %v521_v34 = vld [vmem:[%s9727_s30 + $0x20] sm:$0xff]  ;;  %v8122_v37 = vld [vmem:[#allocation5 + $0x15c] ss:$24 sps:$4 sm:$0xff]   ;;  %v8125_v40 = vld [vmem:[#allocation5 + $0x158] ss:$24 sps:$4 sm:$0xff]   ;;  %vm2634_vm1 = vcmask 1041408  }
 0x117   : > { %2830 = vmatpush1.bf16.msra.mxu1 %v8095_v16  ;;  %v9751_v36 = vcombine.high %v517_v33, %v521_v34  ;;  %v8096_v38 = vld [vmem:[#allocation5 + $0x1e4] ss:$24 sps:$4 sm:$0xff]   ;;  %v8100_v39 = vld [vmem:[#allocation5 + $0x1e0] ss:$24 sps:$4 sm:$0xff]   ;;  %v8102_v42 = vld [vmem:[#allocation5 + $0x214] ss:$24 sps:$4 sm:$0xff]   ;;  %v9755_v0 = vcombine.low %v517_v33, %v521_v34 }
 0x118   : > { %2660 = vmatpush1.bf16.msra.mxu0 %v8068_v7  ;;  %2831 = vmatprep.subr.bf16.mxu1 %v8098_v18  ;;  %v8128_v41 = vld [vmem:[#allocation5 + $0x18c] ss:$24 sps:$4 sm:$0xff]   ;;  %v8106_v43 = vld [vmem:[#allocation5 + $0x210] ss:$24 sps:$4 sm:$0xff]   ;;  %v8135_v45 = vld [vmem:[#allocation5 + $0x1bc] ss:$24 sps:$4 sm:$0xff]  }
 0x119   : > { %2661 = vmatprep.subr.bf16.mxu0 %v8069_v10  ;;  %2685 = vmatprep.mubr.bf16.mxu0 %v9751_v36  ;;  %v8131_v44 = vld [vmem:[#allocation5 + $0x188] ss:$24 sps:$4 sm:$0xff]   ;;  %v8108_v46 = vld [vmem:[#allocation5 + $0x244] ss:$24 sps:$4 sm:$0xff]   ;;  %v8137_v48 = vld [vmem:[#allocation5 + $0x1b8] ss:$24 sps:$4 sm:$0xff]  }
 0x11a   : > { %2857 = vmatprep.mubr.bf16.mxu1 %v9751_v36  ;;  %v8112_v47 = vld [vmem:[#allocation5 + $0x240] ss:$24 sps:$4 sm:$0xff]   ;;  %v8141_v49 = vld [vmem:[#allocation5 + $0x1ec] ss:$24 sps:$4 sm:$0xff]   ;;  %v8118_v51 = vld [vmem:[#allocation5 + $0x270] ss:$24 sps:$4 sm:$0xff]  }
 0x11b   : > { %2832 = vmatpush1.bf16.msra.mxu1 %v8101_v21  ;;  %v8114_v50 = vld [vmem:[#allocation5 + $0x274] ss:$24 sps:$4 sm:$0xff]   ;;  %v8143_v52 = vld [vmem:[#allocation5 + $0x1e8] ss:$24 sps:$4 sm:$0xff]   ;;  %v8120_v54 = vld [vmem:[#allocation5 + $0x2a4] ss:$24 sps:$4 sm:$0xff]  }
 0x11c   : > { %2662 = vmatpush1.bf16.msra.mxu0 %v8071_v13  ;;  %2833 = vmatprep.subr.bf16.mxu1 %v8104_v22  ;;  %v8147_v53 = vld [vmem:[#allocation5 + $0x21c] ss:$24 sps:$4 sm:$0xff]   ;;  %v8124_v55 = vld [vmem:[#allocation5 + $0x2a0] ss:$24 sps:$4 sm:$0xff]   ;;  %v8153_v57 = vld [vmem:[#allocation5 + $0x24c] ss:$24 sps:$4 sm:$0xff]  }
 0x11d   : > { %2663 = vmatprep.subr.bf16.mxu0 %v8072_v14  ;;  %v8149_v56 = vld [vmem:[#allocation5 + $0x218] ss:$24 sps:$4 sm:$0xff]   ;;  %v8126_v58 = vld [vmem:[#allocation5 + $0x2d4] ss:$24 sps:$4 sm:$0xff]   ;;  %v8155_v60 = vld [vmem:[#allocation5 + $0x248] ss:$24 sps:$4 sm:$0xff]  }
 0x11e   : > { %v8130_v59 = vld [vmem:[#allocation5 + $0x2d0] ss:$24 sps:$4 sm:$0xff]   ;;  %v8159_v61 = vld [vmem:[#allocation5 + $0x27c] ss:$24 sps:$4 sm:$0xff]   ;;  %v8132_v63 = vld [vmem:[#allocation5 + $0x300] ss:$24 sps:$4 sm:$0xff]  }
 0x11f   : > { %2834 = vmatpush1.bf16.msra.mxu1 %v8107_v24  ;;  %v8134_v62 = vld [vmem:[#allocation5 + $0x304] ss:$24 sps:$4 sm:$0xff]   ;;  %v8161_v1 = vld [vmem:[#allocation5 + $0x278] ss:$24 sps:$4 sm:$0xff]   ;;  %v8140_v3 = vld [vmem:[#allocation5 + $0x334] ss:$24 sps:$4 sm:$0xff]  }
 0x120   : > { %2664 = vmatpush1.bf16.msra.mxu0 %v8074_v17  ;;  %2835 = vmatprep.subr.bf16.mxu1 %v8110_v26  ;;  %v8165_v2 = vld [vmem:[#allocation5 + $0x2ac] ss:$24 sps:$4 sm:$0xff]   ;;  %v8138_v4 = vld [vmem:[#allocation5 + $0x330] ss:$24 sps:$4 sm:$0xff]   ;;  %v8171_v6 = vld [vmem:[#allocation5 + $0x2dc] ss:$24 sps:$4 sm:$0xff]  }
 0x121   : > { %2665 = vmatprep.subr.bf16.mxu0 %v8075_v19  ;;  %v8167_v5 = vld [vmem:[#allocation5 + $0x2a8] ss:$24 sps:$4 sm:$0xff]   ;;  %v8146_v7 = vld [vmem:[#allocation5 + $0x364] ss:$24 sps:$4 sm:$0xff]   ;;  %v8173_v9 = vld [vmem:[#allocation5 + $0x2d8] ss:$24 sps:$4 sm:$0xff]  }
 0x122   : > { %v8144_v8 = vld [vmem:[#allocation5 + $0x360] ss:$24 sps:$4 sm:$0xff]   ;;  %v8179_v10 = vld [vmem:[#allocation5 + $0x30c] ss:$24 sps:$4 sm:$0xff]   ;;  %v8150_v12 = vld [vmem:[#allocation5 + $0x390] ss:$24 sps:$4 sm:$0xff]  }
 0x123   : > { %2836 = vmatpush1.bf16.msra.mxu1 %v8113_v29  ;;  %v8152_v11 = vld [vmem:[#allocation5 + $0x394] ss:$24 sps:$4 sm:$0xff]   ;;  %v8177_v13 = vld [vmem:[#allocation5 + $0x308] ss:$24 sps:$4 sm:$0xff]   ;;  %v8158_v15 = vld [vmem:[#allocation5 + $0x3c4] ss:$24 sps:$4 sm:$0xff]  }
 0x124   : > { %2666 = vmatpush1.bf16.msra.mxu0 %v8077_v20  ;;  %2837 = vmatprep.subr.bf16.mxu1 %v8116_v30  ;;  %v8185_v14 = vld [vmem:[#allocation5 + $0x33c] ss:$24 sps:$4 sm:$0xff]   ;;  %v9759_v16 = vld [vmem:[%s9727_s30 + $0x8] sm:$0xff]  ;;  %v8183_v18 = vld [vmem:[#allocation5 + $0x338] ss:$24 sps:$4 sm:$0xff]   ;;  %s10709_s22 = sld [smem:[#allocation27_spill]] }
 0x125   : > { %2667 = vmatprep.subr.bf16.mxu0 %v8078_v23  ;;  %v9763_v17 = vld [vmem:[%s9727_s30 + $0x28] sm:$0xff]  ;;  %v8156_v20 = vld [vmem:[#allocation5 + $0x3c0] ss:$24 sps:$4 sm:$0xff]   ;;  %v8170_v26 = vld [vmem:[#allocation5 + $0x424] ss:$24 sps:$4 sm:$0xff]   ;;  %vm3900_vm14 = vcmask 1043456  }
 0x126   : > { %v9767_v19 = vcombine.high %v9759_v16, %v9763_v17  ;;  %v8191_v21 = vld [vmem:[#allocation5 + $0x36c] ss:$24 sps:$4 sm:$0xff]   ;;  %v8189_v23 = vld [vmem:[#allocation5 + $0x368] ss:$24 sps:$4 sm:$0xff]   ;;  %v8209_v33 = vld [vmem:[#allocation5 + $0x3fc] ss:$24 sps:$4 sm:$0xff]  }
 0x127   : > { %2838 = vmatpush1.bf16.msra.mxu1 %v8119_v35  ;;  %v8164_v22 = vld [vmem:[#allocation5 + $0x3f4] ss:$24 sps:$4 sm:$0xff]   ;;  %v8162_v24 = vld [vmem:[#allocation5 + $0x3f0] ss:$24 sps:$4 sm:$0xff]   ;;  %v8182_v34 = vld [vmem:[#allocation5 + $0x484] ss:$24 sps:$4 sm:$0xff]  }
 0x128   : > { %2668 = vmatpush1.bf16.msra.mxu0 %v8082_v25  ;;  %2839 = vmatprep.subr.bf16.mxu1 %v8122_v37  ;;  %v8197_v25 = vld [vmem:[#allocation5 + $0x39c] ss:$24 sps:$4 sm:$0xff]   ;;  %v8203_v29 = vld [vmem:[#allocation5 + $0x3cc] ss:$24 sps:$4 sm:$0xff]   ;;  %v8207_v35 = vld [vmem:[#allocation5 + $0x3f8] ss:$24 sps:$4 sm:$0xff]  }
 0x129   : > { %2669 = vmatprep.subr.bf16.mxu0 %v8084_v27  ;;  %v8195_v27 = vld [vmem:[#allocation5 + $0x398] ss:$24 sps:$4 sm:$0xff]   ;;  %v8176_v30 = vld [vmem:[#allocation5 + $0x454] ss:$24 sps:$4 sm:$0xff]   ;;  %vm3896_vm15 = vcmask 64512   ;;  %s10713_s12 = sld [smem:[#allocation28_spill]] }
 0x12a   : > { %v8180_v37 = vld [vmem:[#allocation5 + $0x480] ss:$24 sps:$4 sm:$0xff]   ;;  %s6887_s11 = sshll.u32 %s9723_s26, 4  ;;  %s7582_s14 = sshll.u32 %s9439_s23, 8 }
 0x12b   : > { %2840 = vmatpush1.bf16.msra.mxu1 %v8125_v40  ;;  %v8213_v40 = vld [vmem:[#allocation5 + $0x428] ss:$24 sps:$4 sm:$0xff]   ;;  %s513_s3 = scalar_lea.vmem [#allocation17], %s6887_s11  ;;  %s6700_s23 = scalar_lea.sflag [#allocation4], %s9723_s26 }
 0x12c   : > { %2670 = vmatpush1.bf16.msra.mxu0 %v8088_v28  ;;  %2841 = vmatprep.subr.bf16.mxu1 %v8128_v41  ;;  %v8168_v28 = vld [vmem:[#allocation5 + $0x420] ss:$24 sps:$4 sm:$0xff]   ;;  %v8186_v41 = vld [vmem:[#allocation5 + $0x4b0] ss:$24 sps:$4 sm:$0xff]   ;;  %s6713_s25 = sshll.u32 %s513_s3, 4  ;;  %p10720_p1 = scmp.ne.s32.totalorder %s10696_s29, 0  ;;  %s10613_s25 = int_to_ptr.vmem [resolvable:$true] %s6713_s25 }
 0x12d   : > { %2671 = vmatprep.subr.bf16.mxu0 %v8090_v31  ;;  %v8201_v31 = vld [vmem:[#allocation5 + $0x3c8] ss:$24 sps:$4 sm:$0xff]   ;;  %s9253_s27 = scalar_lea.vmem %s10613_s25, 256  ;;  %s9355_s28 = smov [#allocation17]  }
 0x12e   : > { %p9254_p12 = scmp.ne.s32.totalorder %s10613_s25, %s9253_s27  ;;  %s9257_s11 = sshll.u32 %s9355_s28, 4  ;;  %s9258_s11 = int_to_ptr.vmem [resolvable:$false] %s9257_s11 }
 0x12f   : > { %2842 = vmatpush1.bf16.msra.mxu1 %v8131_v44  ;;  %v8219_v44 = vld [vmem:[#allocation5 + $0x458] ss:$24 sps:$4 sm:$0xff]   ;;  %s9259_s0 = scalar_lea.vmem %s9258_s11, 512  ;;  %p9260_p2 = scmp.lt.s32.totalorder %s10613_s25, %s9258_s11 }
 0x130   : > { %2672 = vmatpush1.bf16.msra.mxu0 %v8094_v32  ;;  %2843 = vmatprep.subr.bf16.mxu1 %v8135_v45  ;;  %v8174_v32 = vld [vmem:[#allocation5 + $0x450] ss:$24 sps:$4 sm:$0xff]   ;;  %v8192_v45 = vld [vmem:[#allocation5 + $0x4e0] ss:$24 sps:$4 sm:$0xff]   ;;  %p9255_p13 = pnand %p9254_p12, %p10720_p1  ;;  %p9261_p7 = scmp.lt.s32.totalorder %s9259_s0, %s9253_s27 }
 0x131   : > { %2673 = vmatprep.subr.bf16.mxu0 %v8096_v38  ;;  %v8215_v38 = vld [vmem:[#allocation5 + $0x42c] ss:$24 sps:$4 sm:$0xff]  }
 0x132   : > { %p9256_p0 = pneg %p9255_p13  ;;  %p9262_p9 = por %p9261_p7, %p9260_p2 }
 0x133   : > { %2844 = vmatpush1.bf16.msra.mxu1 %v8137_v48  ;;  %v8225_v48 = vld [vmem:[#allocation5 + $0x488] ss:$24 sps:$4 sm:$0xff]  }
 0x134   : > { %2674 = vmatpush1.bf16.msra.mxu0 %v8100_v39  ;;  %2845 = vmatprep.subr.bf16.mxu1 %v8141_v49  ;;  %v8188_v39 = vld [vmem:[#allocation5 + $0x4b4] ss:$24 sps:$4 sm:$0xff]   ;;  %v8198_v49 = vld [vmem:[#allocation5 + $0x510] ss:$24 sps:$4 sm:$0xff]   ;;  %p9263_p10 = pnand %p9262_p9, %p9256_p0 }
 0x135   : > { %2675 = vmatprep.subr.bf16.mxu0 %v8102_v42  ;;  %v8221_v42 = vld [vmem:[#allocation5 + $0x45c] ss:$24 sps:$4 sm:$0xff]  }
 0x137   : > { %2846 = vmatpush1.bf16.msra.mxu1 %v8143_v52  ;;  %v8231_v52 = vld [vmem:[#allocation5 + $0x4b8] ss:$24 sps:$4 sm:$0xff]  }
 0x138   : > { %2676 = vmatpush1.bf16.msra.mxu0 %v8106_v43  ;;  %2847 = vmatprep.subr.bf16.mxu1 %v8147_v53  ;;  %v8194_v43 = vld [vmem:[#allocation5 + $0x4e4] ss:$24 sps:$4 sm:$0xff]   ;;  %v8204_v53 = vld [vmem:[#allocation5 + $0x540] ss:$24 sps:$4 sm:$0xff]  }
 0x139   : > { %2677 = vmatprep.subr.bf16.mxu0 %v8108_v46  ;;  %v8227_v46 = vld [vmem:[#allocation5 + $0x48c] ss:$24 sps:$4 sm:$0xff]  }
 0x13b   : > { %2848 = vmatpush1.bf16.msra.mxu1 %v8149_v56  ;;  %v8237_v56 = vld [vmem:[#allocation5 + $0x4e8] ss:$24 sps:$4 sm:$0xff]  }
 0x13c   : > { %2678 = vmatpush1.bf16.msra.mxu0 %v8112_v47  ;;  %2849 = vmatprep.subr.bf16.mxu1 %v8153_v57  ;;  %v8200_v47 = vld [vmem:[#allocation5 + $0x514] ss:$24 sps:$4 sm:$0xff]   ;;  %v8210_v57 = vld [vmem:[#allocation5 + $0x570] ss:$24 sps:$4 sm:$0xff]  }
 0x13d   : > { %2679 = vmatprep.subr.bf16.mxu0 %v8114_v50  ;;  %v8233_v50 = vld [vmem:[#allocation5 + $0x4bc] ss:$24 sps:$4 sm:$0xff]  }
 0x13f   : > { %2850 = vmatpush1.bf16.msra.mxu1 %v8155_v60  ;;  %v8243_v60 = vld [vmem:[#allocation5 + $0x518] ss:$24 sps:$4 sm:$0xff]  }
 0x140   : > { %2680 = vmatpush1.bf16.msra.mxu0 %v8118_v51  ;;  %2851 = vmatprep.subr.bf16.mxu1 %v8159_v61  ;;  %v8206_v51 = vld [vmem:[#allocation5 + $0x544] ss:$24 sps:$4 sm:$0xff]   ;;  %v8216_v61 = vld [vmem:[#allocation5 + $0x5a0] ss:$24 sps:$4 sm:$0xff]  }
 0x141   : > { %2681 = vmatprep.subr.bf16.mxu0 %v8120_v54  ;;  %v8239_v54 = vld [vmem:[#allocation5 + $0x4ec] ss:$24 sps:$4 sm:$0xff]  }
 0x143   : > { %2852 = vmatpush1.bf16.msra.mxu1 %v8161_v1  ;;  %v8222_v1 = vld [vmem:[#allocation5 + $0x5d0] ss:$24 sps:$4 sm:$0xff]  }
 0x144   : > { %2682 = vmatpush1.bf16.msra.mxu0 %v8124_v55  ;;  %2853 = vmatprep.subr.bf16.mxu1 %v8165_v2  ;;  %v8212_v55 = vld [vmem:[#allocation5 + $0x574] ss:$24 sps:$4 sm:$0xff]   ;;  %v8249_v2 = vld [vmem:[#allocation5 + $0x548] ss:$24 sps:$4 sm:$0xff]  }
 0x145   : > { %2683 = vmatprep.subr.bf16.mxu0 %v8126_v58  ;;  %v8245_v58 = vld [vmem:[#allocation5 + $0x51c] ss:$24 sps:$4 sm:$0xff]  }
 0x147   : > { %2854 = vmatpush1.bf16.msra.mxu1 %v8167_v5  ;;  %v8228_v5 = vld [vmem:[#allocation5 + $0x600] ss:$24 sps:$4 sm:$0xff]  }
 0x148   : > { %2684 = vmatpush1.bf16.msra.mxu0 %v8130_v59  ;;  %2855 = vmatprep.subr.bf16.mxu1 %v8171_v6  ;;  %v8218_v59 = vld [vmem:[#allocation5 + $0x5a4] ss:$24 sps:$4 sm:$0xff]   ;;  %v9772_v6 = vld [vmem:[%s9727_s30 + $0x10] sm:$0xff] }
 0x149   : > { %2696 = vmatprep.subr.bf16.mxu0 %v8134_v62  ;;  %v8251_v62 = vld [vmem:[#allocation5 + $0x54c] ss:$24 sps:$4 sm:$0xff]  }
 0x14b   : > { %2686 = vmatmul.mubr.bf16.vlgmr.msra.gmra.mrb[0].mxu0 %v9755_v0  ;;  %2856 = vmatpush1.bf16.msra.mxu1 %v8173_v9  ;;  %v8255_v9 = vld [vmem:[#allocation5 + $0x578] ss:$24 sps:$4 sm:$0xff]  }
 0x14c   : > { %2697 = vmatpush1.bf16.msra.mxu0 %v8132_v63  ;;  %2868 = vmatprep.subr.bf16.mxu1 %v8179_v10  ;;  %v8224_v63 = vld [vmem:[#allocation5 + $0x5d4] ss:$24 sps:$4 sm:$0xff]  }
 0x14d   : > { %2698 = vmatprep.subr.bf16.mxu0 %v8140_v3  ;;  %2728 = vmatprep.mubr.bf16.mxu0 %v9767_v19  ;;  %v8257_v3 = vld [vmem:[#allocation5 + $0x57c] ss:$24 sps:$4 sm:$0xff]   ;;  %v8263_v10 = vld [vmem:[#allocation5 + $0x5ac] ss:$24 sps:$4 sm:$0xff]  }
 0x14e   : > { %2858 = vmatmul.mubr.bf16.vlgmr.msra.gmra.mrb[0].mxu1 %v9755_v0 }
 0x14f   : > { %2869 = vmatpush1.bf16.msra.mxu1 %v8177_v13  ;;  %2900 = vmatprep.mubr.bf16.mxu1 %v9767_v19  ;;  %v8234_v13 = vld [vmem:[#allocation5 + $0x630] ss:$24 sps:$4 sm:$0xff]  }
 0x150   : > { %2699 = vmatpush1.bf16.msra.mxu0 %v8138_v4  ;;  %2870 = vmatprep.subr.bf16.mxu1 %v8185_v14  ;;  %v8230_v4 = vld [vmem:[#allocation5 + $0x604] ss:$24 sps:$4 sm:$0xff]   ;;  %v8261_v14 = vld [vmem:[#allocation5 + $0x5a8] ss:$24 sps:$4 sm:$0xff]  }
 0x151   : > { %2700 = vmatprep.subr.bf16.mxu0 %v8146_v7  ;;  %v9775_v7 = vld [vmem:[%s9727_s30 + $0x30] sm:$0xff] }
 0x153   : > { %2871 = vmatpush1.bf16.msra.mxu1 %v8183_v18  ;;  %v8267_v18 = vld [vmem:[#allocation5 + $0x5d8] ss:$24 sps:$4 sm:$0xff]  }
 0x154   : > { %2701 = vmatpush1.bf16.msra.mxu0 %v8144_v8  ;;  %2872 = vmatprep.subr.bf16.mxu1 %v8191_v21  ;;  %v9779_v8 = vcombine.low %v9759_v16, %v9763_v17  ;;  %v8242_v16 = vld [vmem:[#allocation5 + $0x664] ss:$24 sps:$4 sm:$0xff]   ;;  %v8240_v17 = vld [vmem:[#allocation5 + $0x660] ss:$24 sps:$4 sm:$0xff]   ;;  %v8248_v21 = vld [vmem:[#allocation5 + $0x694] ss:$24 sps:$4 sm:$0xff]  }
 0x155   : > { %2702 = vmatprep.subr.bf16.mxu0 %v8152_v11  ;;  %v8236_v11 = vld [vmem:[#allocation5 + $0x634] ss:$24 sps:$4 sm:$0xff]  }
 0x157   : > { %2873 = vmatpush1.bf16.msra.mxu1 %v8189_v23  ;;  %v8273_v23 = vld [vmem:[#allocation5 + $0x608] ss:$24 sps:$4 sm:$0xff]  }
 0x158   : > { %2703 = vmatpush1.bf16.msra.mxu0 %v8150_v12  ;;  %2874 = vmatprep.subr.bf16.mxu1 %v8197_v25  ;;  %v9783_v12 = vcombine.high %v9772_v6, %v9775_v7  ;;  %v8254_v25 = vld [vmem:[#allocation5 + $0x6c4] ss:$24 sps:$4 sm:$0xff]  }
 0x159   : > { %2704 = vmatprep.subr.bf16.mxu0 %v8158_v15  ;;  %v8269_v15 = vld [vmem:[#allocation5 + $0x5dc] ss:$24 sps:$4 sm:$0xff]  }
 0x15b   : > { %2875 = vmatpush1.bf16.msra.mxu1 %v8195_v27  ;;  %v8252_v27 = vld [vmem:[#allocation5 + $0x6c0] ss:$24 sps:$4 sm:$0xff]  }
 0x15c   : > { %2705 = vmatpush1.bf16.msra.mxu0 %v8156_v20  ;;  %2876 = vmatprep.subr.bf16.mxu1 %v8203_v29  ;;  %v8275_v20 = vld [vmem:[#allocation5 + $0x60c] ss:$24 sps:$4 sm:$0xff]  }
 0x15d   : > { %2706 = vmatprep.subr.bf16.mxu0 %v8164_v22  ;;  %v8246_v22 = vld [vmem:[#allocation5 + $0x690] ss:$24 sps:$4 sm:$0xff]   ;;  %v8260_v29 = vld [vmem:[#allocation5 + $0x6f4] ss:$24 sps:$4 sm:$0xff]  }
 0x15f   : > { %2877 = vmatpush1.bf16.msra.mxu1 %v8201_v31  ;;  %v8285_v31 = vld [vmem:[#allocation5 + $0x668] ss:$24 sps:$4 sm:$0xff]  }
 0x160   : > { %2707 = vmatpush1.bf16.msra.mxu0 %v8162_v24  ;;  %2878 = vmatprep.subr.bf16.mxu1 %v8209_v33  ;;  %v8281_v24 = vld [vmem:[#allocation5 + $0x63c] ss:$24 sps:$4 sm:$0xff]  }
 0x161   : > { %2708 = vmatprep.subr.bf16.mxu0 %v8170_v26  ;;  %v8279_v26 = vld [vmem:[#allocation5 + $0x638] ss:$24 sps:$4 sm:$0xff]   ;;  %v8266_v33 = vld [vmem:[#allocation5 + $0x724] ss:$24 sps:$4 sm:$0xff]  }
 0x163   : > { %2879 = vmatpush1.bf16.msra.mxu1 %v8207_v35  ;;  %v8291_v35 = vld [vmem:[#allocation5 + $0x698] ss:$24 sps:$4 sm:$0xff]  }
 0x164   : > { %2709 = vmatpush1.bf16.msra.mxu0 %v8168_v28  ;;  %2880 = vmatprep.subr.bf16.mxu1 %v8215_v38  ;;  %v8287_v28 = vld [vmem:[#allocation5 + $0x66c] ss:$24 sps:$4 sm:$0xff]  }
 0x165   : > { %2710 = vmatprep.subr.bf16.mxu0 %v8176_v30  ;;  %v8258_v30 = vld [vmem:[#allocation5 + $0x6f0] ss:$24 sps:$4 sm:$0xff]   ;;  %v8272_v38 = vld [vmem:[#allocation5 + $0x754] ss:$24 sps:$4 sm:$0xff]  }
 0x167   : > { %2881 = vmatpush1.bf16.msra.mxu1 %v8213_v40  ;;  %v8297_v40 = vld [vmem:[#allocation5 + $0x6c8] ss:$24 sps:$4 sm:$0xff]  }
 0x168   : > { %2711 = vmatpush1.bf16.msra.mxu0 %v8174_v32  ;;  %2882 = vmatprep.subr.bf16.mxu1 %v8221_v42  ;;  %v8293_v32 = vld [vmem:[#allocation5 + $0x69c] ss:$24 sps:$4 sm:$0xff]  }
 0x169   : > { %2712 = vmatprep.subr.bf16.mxu0 %v8182_v34  ;;  %v8264_v34 = vld [vmem:[#allocation5 + $0x720] ss:$24 sps:$4 sm:$0xff]   ;;  %v8278_v42 = vld [vmem:[#allocation5 + $0x784] ss:$24 sps:$4 sm:$0xff]  }
 0x16b   : > { %2883 = vmatpush1.bf16.msra.mxu1 %v8219_v44  ;;  %v8303_v44 = vld [vmem:[#allocation5 + $0x6f8] ss:$24 sps:$4 sm:$0xff]  }
 0x16c   : > { %2713 = vmatpush1.bf16.msra.mxu0 %v8180_v37  ;;  %2884 = vmatprep.subr.bf16.mxu1 %v8227_v46  ;;  %v8299_v37 = vld [vmem:[#allocation5 + $0x6cc] ss:$24 sps:$4 sm:$0xff]  }
 0x16d   : > { %2714 = vmatprep.subr.bf16.mxu0 %v8188_v39  ;;  %v8270_v39 = vld [vmem:[#allocation5 + $0x750] ss:$24 sps:$4 sm:$0xff]   ;;  %v8284_v46 = vld [vmem:[#allocation5 + $0x7b4] ss:$24 sps:$4 sm:$0xff]  }
 0x16f   : > { %2885 = vmatpush1.bf16.msra.mxu1 %v8225_v48  ;;  %v8309_v48 = vld [vmem:[#allocation5 + $0x728] ss:$24 sps:$4 sm:$0xff]  }
 0x170   : > { %2715 = vmatpush1.bf16.msra.mxu0 %v8186_v41  ;;  %2886 = vmatprep.subr.bf16.mxu1 %v8233_v50  ;;  %v8305_v41 = vld [vmem:[#allocation5 + $0x6fc] ss:$24 sps:$4 sm:$0xff]  }
 0x171   : > { %2716 = vmatprep.subr.bf16.mxu0 %v8194_v43  ;;  %v8276_v43 = vld [vmem:[#allocation5 + $0x780] ss:$24 sps:$4 sm:$0xff]   ;;  %v8290_v50 = vld [vmem:[#allocation5 + $0x7e4] ss:$24 sps:$4 sm:$0xff]  }
 0x173   : > { %2887 = vmatpush1.bf16.msra.mxu1 %v8231_v52  ;;  %v8315_v52 = vld [vmem:[#allocation5 + $0x758] ss:$24 sps:$4 sm:$0xff]  }
 0x174   : > { %2717 = vmatpush1.bf16.msra.mxu0 %v8192_v45  ;;  %2888 = vmatprep.subr.bf16.mxu1 %v8239_v54  ;;  %v8311_v45 = vld [vmem:[#allocation5 + $0x72c] ss:$24 sps:$4 sm:$0xff]  }
 0x175   : > { %2718 = vmatprep.subr.bf16.mxu0 %v8200_v47  ;;  %v8282_v47 = vld [vmem:[#allocation5 + $0x7b0] ss:$24 sps:$4 sm:$0xff]   ;;  %v8296_v54 = vld [vmem:[#allocation5 + $0x814] ss:$24 sps:$4 sm:$0xff]  }
 0x177   : > { %2889 = vmatpush1.bf16.msra.mxu1 %v8237_v56  ;;  %v8321_v56 = vld [vmem:[#allocation5 + $0x788] ss:$24 sps:$4 sm:$0xff]  }
 0x178   : > { %2719 = vmatpush1.bf16.msra.mxu0 %v8198_v49  ;;  %2890 = vmatprep.subr.bf16.mxu1 %v8245_v58  ;;  %v8317_v49 = vld [vmem:[#allocation5 + $0x75c] ss:$24 sps:$4 sm:$0xff]  }
 0x179   : > { %2720 = vmatprep.subr.bf16.mxu0 %v8206_v51  ;;  %v8288_v51 = vld [vmem:[#allocation5 + $0x7e0] ss:$24 sps:$4 sm:$0xff]   ;;  %v8302_v58 = vld [vmem:[#allocation5 + $0x844] ss:$24 sps:$4 sm:$0xff]  }
 0x17b   : > { %2891 = vmatpush1.bf16.msra.mxu1 %v8243_v60  ;;  %v8327_v60 = vld [vmem:[#allocation5 + $0x7b8] ss:$24 sps:$4 sm:$0xff]  }
 0x17c   : > { %2721 = vmatpush1.bf16.msra.mxu0 %v8204_v53  ;;  %2892 = vmatprep.subr.bf16.mxu1 %v8251_v62  ;;  %v8323_v53 = vld [vmem:[#allocation5 + $0x78c] ss:$24 sps:$4 sm:$0xff]  }
 0x17d   : > { %2722 = vmatprep.subr.bf16.mxu0 %v8212_v55  ;;  %v8294_v55 = vld [vmem:[#allocation5 + $0x810] ss:$24 sps:$4 sm:$0xff]   ;;  %v8308_v62 = vld [vmem:[#allocation5 + $0x874] ss:$24 sps:$4 sm:$0xff]  }
 0x17f   : > { %2893 = vmatpush1.bf16.msra.mxu1 %v8249_v2  ;;  %v8341_v2 = vld [vmem:[#allocation5 + $0x81c] ss:$24 sps:$4 sm:$0xff]  }
 0x180   : > { %2723 = vmatpush1.bf16.msra.mxu0 %v8210_v57  ;;  %2894 = vmatprep.subr.bf16.mxu1 %v8257_v3  ;;  %v8329_v57 = vld [vmem:[#allocation5 + $0x7bc] ss:$24 sps:$4 sm:$0xff]  }
 0x181   : > { %2724 = vmatprep.subr.bf16.mxu0 %v8218_v59  ;;  %v8300_v59 = vld [vmem:[#allocation5 + $0x840] ss:$24 sps:$4 sm:$0xff]   ;;  %v8314_v3 = vld [vmem:[#allocation5 + $0x8a4] ss:$24 sps:$4 sm:$0xff]  }
 0x183   : > { %2895 = vmatpush1.bf16.msra.mxu1 %v8255_v9  ;;  %v8320_v9 = vld [vmem:[#allocation5 + $0x8d4] ss:$24 sps:$4 sm:$0xff]  }
 0x184   : > { %2725 = vmatpush1.bf16.msra.mxu0 %v8216_v61  ;;  %2896 = vmatprep.subr.bf16.mxu1 %v8263_v10  ;;  %v8335_v61 = vld [vmem:[#allocation5 + $0x7ec] ss:$24 sps:$4 sm:$0xff]  }
 0x185   : > { %2726 = vmatprep.subr.bf16.mxu0 %v8224_v63  ;;  %v8306_v63 = vld [vmem:[#allocation5 + $0x870] ss:$24 sps:$4 sm:$0xff]   ;;  %v8347_v10 = vld [vmem:[#allocation5 + $0x84c] ss:$24 sps:$4 sm:$0xff]  }
 0x187   : > { %2897 = vmatpush1.bf16.msra.mxu1 %v8261_v14  ;;  %v8353_v14 = vld [vmem:[#allocation5 + $0x87c] ss:$24 sps:$4 sm:$0xff]  }
 0x188   : > { %2727 = vmatpush1.bf16.msra.mxu0 %v8222_v1  ;;  %2898 = vmatprep.subr.bf16.mxu1 %v8269_v15  ;;  %v8333_v1 = vld [vmem:[#allocation5 + $0x7e8] ss:$24 sps:$4 sm:$0xff]   ;;  %v8326_v15 = vld [vmem:[#allocation5 + $0x904] ss:$24 sps:$4 sm:$0xff]  }
 0x189   : > { %2739 = vmatprep.subr.bf16.mxu0 %v8230_v4  ;;  %v8339_v4 = vld [vmem:[#allocation5 + $0x818] ss:$24 sps:$4 sm:$0xff]  }
 0x18b   : > { %2729 = vmatmul.mubr.bf16.vlgmr.msra.gmra.mrb[0].mxu0 %v9779_v8  ;;  %2899 = vmatpush1.bf16.msra.mxu1 %v8267_v18  ;;  %v8351_v18 = vld [vmem:[#allocation5 + $0x878] ss:$24 sps:$4 sm:$0xff]  }
 0x18c   : > { %2740 = vmatpush1.bf16.msra.mxu0 %v8228_v5  ;;  %2771 = vmatprep.mubr.bf16.mxu0 %v9783_v12  ;;  %v8312_v5 = vld [vmem:[#allocation5 + $0x8a0] ss:$24 sps:$4 sm:$0xff]  }
 0x18d   : > { %2741 = vmatprep.subr.bf16.mxu0 %v8236_v11  ;;  %2911 = vmatprep.subr.bf16.mxu1 %v8275_v20  ;;  %v8345_v11 = vld [vmem:[#allocation5 + $0x848] ss:$24 sps:$4 sm:$0xff]  }
 0x18e   : > { %2901 = vmatmul.mubr.bf16.vlgmr.msra.gmra.mrb[0].mxu1 %v9779_v8  ;;  %v8324_v20 = vld [vmem:[#allocation5 + $0x900] ss:$24 sps:$4 sm:$0xff]  }
 0x18f   : > { %2912 = vmatpush1.bf16.msra.mxu1 %v8273_v23  ;;  %2943 = vmatprep.mubr.bf16.mxu1 %v9783_v12  ;;  %v8359_v23 = vld [vmem:[#allocation5 + $0x8ac] ss:$24 sps:$4 sm:$0xff]  }
 0x190   : > { %2742 = vmatpush1.bf16.msra.mxu0 %v8234_v13  ;;  %2913 = vmatprep.subr.bf16.mxu1 %v8281_v24  ;;  %v8318_v13 = vld [vmem:[#allocation5 + $0x8d0] ss:$24 sps:$4 sm:$0xff]  }
 0x191   : > { %2743 = vmatprep.subr.bf16.mxu0 %v8242_v16  ;;  %v9790_v16 = vld [vmem:[%s9727_s30 + $0x18] sm:$0xff]  ;;  %v8357_v24 = vld [vmem:[#allocation5 + $0x8a8] ss:$24 sps:$4 sm:$0xff]  }
 0x193   : > { %2914 = vmatpush1.bf16.msra.mxu1 %v8279_v26  ;;  %v8330_v26 = vld [vmem:[#allocation5 + $0x930] ss:$24 sps:$4 sm:$0xff]  }
 0x194   : > { %2744 = vmatpush1.bf16.msra.mxu0 %v8240_v17  ;;  %2915 = vmatprep.subr.bf16.mxu1 %v8287_v28  ;;  %v9793_v17 = vld [vmem:[%s9727_s30 + $0x38] sm:$0xff]  ;;  %s10719_s30 = sld [smem:[#allocation29_spill]] }
 0x195   : > { %2745 = vmatprep.subr.bf16.mxu0 %v8248_v21  ;;  %v9797_v21 = vcombine.low %v9772_v6, %v9775_v7  ;;  %v8365_v6 = vld [vmem:[#allocation5 + $0x8dc] ss:$24 sps:$4 sm:$0xff]   ;;  %v8363_v7 = vld [vmem:[#allocation5 + $0x8d8] ss:$24 sps:$4 sm:$0xff]  }
 0x196   : > { %v8336_v28 = vld [vmem:[#allocation5 + $0x960] ss:$24 sps:$4 sm:$0xff]  }
 0x197   : > { %2916 = vmatpush1.bf16.msra.mxu1 %v8285_v31  ;;  %v8369_v31 = vld [vmem:[#allocation5 + $0x908] ss:$24 sps:$4 sm:$0xff]  }
 0x198   : > { %2746 = vmatpush1.bf16.msra.mxu0 %v8246_v22  ;;  %2917 = vmatprep.subr.bf16.mxu1 %v8293_v32  ;;  %v8332_v22 = vld [vmem:[#allocation5 + $0x934] ss:$24 sps:$4 sm:$0xff]   ;;  %v8342_v32 = vld [vmem:[#allocation5 + $0x990] ss:$24 sps:$4 sm:$0xff]  }
 0x199   : > { %2747 = vmatprep.subr.bf16.mxu0 %v8254_v25  ;;  %v9801_v25 = vcombine.high %v9790_v16, %v9793_v17 }
 0x19a   : > { %s10618_s24 = scalar_lea.hbm %s10719_s30, %s7582_s14 }
 0x19b   : > { %2918 = vmatpush1.bf16.msra.mxu1 %v8291_v35  ;;  %v8373_v35 = vld [vmem:[#allocation5 + $0x938] ss:$24 sps:$4 sm:$0xff]  }
 0x19c   : > { %2748 = vmatpush1.bf16.msra.mxu0 %v8252_v27  ;;  %2919 = vmatprep.subr.bf16.mxu1 %v8299_v37  ;;  %v8338_v27 = vld [vmem:[#allocation5 + $0x964] ss:$24 sps:$4 sm:$0xff]   ;;  %v8348_v37 = vld [vmem:[#allocation5 + $0x9c0] ss:$24 sps:$4 sm:$0xff]  }
 0x19d   : > { %2749 = vmatprep.subr.bf16.mxu0 %v8260_v29  ;;  %v8344_v29 = vld [vmem:[#allocation5 + $0x994] ss:$24 sps:$4 sm:$0xff]  }
 0x19f   : > { %2920 = vmatpush1.bf16.msra.mxu1 %v8297_v40  ;;  %v8377_v40 = vld [vmem:[#allocation5 + $0x968] ss:$24 sps:$4 sm:$0xff]  }
 0x1a0   : > { %2750 = vmatpush1.bf16.msra.mxu0 %v8258_v30  ;;  %2921 = vmatprep.subr.bf16.mxu1 %v8305_v41  ;;  %v8371_v30 = vld [vmem:[#allocation5 + $0x90c] ss:$24 sps:$4 sm:$0xff]   ;;  %v8354_v41 = vld [vmem:[#allocation5 + $0x9f0] ss:$24 sps:$4 sm:$0xff]  }
 0x1a1   : > { %2751 = vmatprep.subr.bf16.mxu0 %v8266_v33  ;;  %v8350_v33 = vld [vmem:[#allocation5 + $0x9c4] ss:$24 sps:$4 sm:$0xff]  }
 0x1a3   : > { %2922 = vmatpush1.bf16.msra.mxu1 %v8303_v44  ;;  %v861_v44 = vld [vmem:[#allocation5 + $0xa80] sm:$0x33] }
 0x1a4   : > { %2752 = vmatpush1.bf16.msra.mxu0 %v8264_v34  ;;  %2923 = vmatprep.subr.bf16.mxu1 %v8311_v45  ;;  %v8375_v34 = vld [vmem:[#allocation5 + $0x93c] ss:$24 sps:$4 sm:$0xff]   ;;  %v8383_v45 = vld [vmem:[#allocation5 + $0x998] ss:$24 sps:$4 sm:$0xff]  }
 0x1a5   : > { %2753 = vmatprep.subr.bf16.mxu0 %v8272_v38  ;;  %v8356_v38 = vld [vmem:[#allocation5 + $0x9f4] ss:$24 sps:$4 sm:$0xff]  }
 0x1a7   : > { %2924 = vmatpush1.bf16.msra.mxu1 %v8309_v48  ;;  %v8391_v48 = vld [vmem:[#allocation5 + $0x9cc] ss:$24 sps:$4 sm:$0xff]  }
 0x1a8   : > { %2754 = vmatpush1.bf16.msra.mxu0 %v8270_v39  ;;  %2925 = vmatprep.subr.bf16.mxu1 %v8317_v49  ;;  %v8379_v39 = vld [vmem:[#allocation5 + $0x96c] ss:$24 sps:$4 sm:$0xff]   ;;  %v8389_v49 = vld [vmem:[#allocation5 + $0x9c8] ss:$24 sps:$4 sm:$0xff]  }
 0x1a9   : > { %2755 = vmatprep.subr.bf16.mxu0 %v8278_v42  ;;  %v8362_v42 = vld [vmem:[#allocation5 + $0xa24] ss:$24 sps:$4 sm:$0xff]  }
 0x1ab   : > { %2926 = vmatpush1.bf16.msra.mxu1 %v8315_v52  ;;  %v8397_v52 = vld [vmem:[#allocation5 + $0x9fc] ss:$24 sps:$4 sm:$0xff]  }
 0x1ac   : > { %2756 = vmatpush1.bf16.msra.mxu0 %v8276_v43  ;;  %2927 = vmatprep.subr.bf16.mxu1 %v8323_v53  ;;  %v8385_v43 = vld [vmem:[#allocation5 + $0x99c] ss:$24 sps:$4 sm:$0xff]   ;;  %v7233_v53 = vcombine.high %v861_v44, %v861_v44 }
 0x1ad   : > { %2757 = vmatprep.subr.bf16.mxu0 %v8284_v46  ;;  %v8360_v46 = vld [vmem:[#allocation5 + $0xa20] ss:$24 sps:$4 sm:$0xff]  }
 0x1af   : > { %2928 = vmatpush1.bf16.msra.mxu1 %v8321_v56  ;;  %v8382_v56 = vld [vmem:[#allocation5 + $0x14] ss:$24 sps:$4 sm:$0xff]  }
 0x1b0   : > { %2758 = vmatpush1.bf16.msra.mxu0 %v8282_v47  ;;  %2929 = vmatprep.subr.bf16.mxu1 %v8329_v57  ;;  %v8368_v47 = vld [vmem:[#allocation5 + $0xa54] ss:$24 sps:$4 sm:$0xff]  }
 0x1b1   : > { %2759 = vmatprep.subr.bf16.mxu0 %v8290_v50  ;;  %v7232_v50 = vcombine.low %v861_v44, %v861_v44  ;;  %v8403_v57 = vld [vmem:[#allocation5 + $0xa2c] ss:$24 sps:$4 sm:$0xff]  }
 0x1b2   : > { %v8546_v44 = vld [vmem:[%s10709_s22 + $0x48] sm:$0xff]  }
 0x1b3   : > { %2930 = vmatpush1.bf16.msra.mxu1 %v8327_v60  ;;  %v9813_v60 = vcombine.low %v9790_v16, %v9793_v17  ;;  %v8412_v16 = vld [vmem:[#allocation5 + $0x104] ss:$24 sps:$4 sm:$0xff]   ;;  %v8416_v17 = vld [vmem:[#allocation5 + $0x134] ss:$24 sps:$4 sm:$0xff]  }
 0x1b4   : > { %2760 = vmatpush1.bf16.msra.mxu0 %v8288_v51  ;;  %2931 = vmatprep.subr.bf16.mxu1 %v8335_v61  ;;  %v8366_v51 = vld [vmem:[#allocation5 + $0xa50] ss:$24 sps:$4 sm:$0xff]   ;;  %v8388_v61 = vld [vmem:[#allocation5 + $0x44] ss:$24 sps:$4 sm:$0xff]  }
 0x1b5   : > { %2761 = vmatprep.subr.bf16.mxu0 %v8296_v54  ;;  %v8395_v54 = vld [vmem:[#allocation5 + $0x9f8] ss:$24 sps:$4 sm:$0xff]  }
 0x1b7   : > { %2932 = vmatpush1.bf16.msra.mxu1 %v8333_v1  ;;  %v8407_v1 = vld [vmem:[#allocation5 + $0xa58] ss:$24 sps:$4 sm:$0xff]  }
 0x1b8   : > { %2762 = vmatpush1.bf16.msra.mxu0 %v8294_v55  ;;  %2933 = vmatprep.subr.bf16.mxu1 %v8341_v2  ;;  %v2636_v55 = vsel %vm2634_vm1, %v7232_v50, 0  ;;  %v8386_v2 = vld [vmem:[#allocation5 + $0x40] ss:$24 sps:$4 sm:$0xff]   ;;  %v8552_v50 = vld [vmem:[%s10709_s22 + $0x10] sm:$0xff]  }
 0x1b9   : > { %2763 = vmatprep.subr.bf16.mxu0 %v8302_v58  ;;  %v8401_v58 = vld [vmem:[#allocation5 + $0xa28] ss:$24 sps:$4 sm:$0xff]  }
 0x1bb   : > { %2934 = vmatpush1.bf16.msra.mxu1 %v8339_v4 }
 0x1bc   : > { %2764 = vmatpush1.bf16.msra.mxu0 %v8300_v59  ;;  %2935 = vmatprep.subr.bf16.mxu1 %v8347_v10  ;;  %v8380_v59 = vld [vmem:[#allocation5 + $0x10] ss:$24 sps:$4 sm:$0xff]   ;;  %v8400_v10 = vld [vmem:[#allocation5 + $0xa4] ss:$24 sps:$4 sm:$0xff]  }
 0x1bd   : > { %2765 = vmatprep.subr.bf16.mxu0 %v8308_v62  ;;  %v8409_v62 = vld [vmem:[#allocation5 + $0xa5c] ss:$24 sps:$4 sm:$0xff]  }
 0x1bf   : > { %2936 = vmatpush1.bf16.msra.mxu1 %v8345_v11 }
 0x1c0   : > { %2766 = vmatpush1.bf16.msra.mxu0 %v8306_v63  ;;  %2937 = vmatprep.subr.bf16.mxu1 %v8353_v14  ;;  %v862_v63 = vld [vmem:[#allocation5 + $0xa88] sm:$0x33] }
 0x1c1   : > { %2767 = vmatprep.subr.bf16.mxu0 %v8314_v3  ;;  %v8394_v3 = vld [vmem:[#allocation5 + $0x74] ss:$24 sps:$4 sm:$0xff]   ;;  %v7235_v4 = vcombine.high %v862_v63, %v862_v63 }
 0x1c2   : > { %v8406_v14 = vld [vmem:[#allocation5 + $0xd4] ss:$24 sps:$4 sm:$0xff]  }
 0x1c3   : > { %2938 = vmatpush1.bf16.msra.mxu1 %v8351_v18  ;;  %v8414_v18 = vld [vmem:[#allocation5 + $0x130] ss:$24 sps:$4 sm:$0xff]  }
 0x1c4   : > { %2768 = vmatpush1.bf16.msra.mxu0 %v8312_v5  ;;  %2939 = vmatprep.subr.bf16.mxu1 %v8359_v23  ;;  %v7234_v5 = vcombine.low %v862_v63, %v862_v63  ;;  %v8423_v23 = vld [vmem:[#allocation5 + $0x194] ss:$24 sps:$4 sm:$0xff]   ;;  %v8463_v63 = vld [vmem:[#allocation5 + $0x430] ss:$24 sps:$4 sm:$0xff]  }
 0x1c5   : > { %2769 = vmatprep.subr.bf16.mxu0 %v8320_v9  ;;  %v8392_v9 = vld [vmem:[#allocation5 + $0x70] ss:$24 sps:$4 sm:$0xff]  }
 0x1c6   : > { %v2642_v11 = vsel %vm2634_vm1, %v7234_v5, 0  ;;  %v9873_v5 = vld [vmem:[%s10709_s22 + $0x78] sm:$0xff]  }
 0x1c7   : > { %2940 = vmatpush1.bf16.msra.mxu1 %v8357_v24  ;;  %v8421_v24 = vld [vmem:[#allocation5 + $0x190] ss:$24 sps:$4 sm:$0xff]  }
 0x1c8   : > { %2770 = vmatpush1.bf16.msra.mxu0 %v8318_v13  ;;  %2941 = vmatprep.subr.bf16.mxu1 %v8365_v6  ;;  %v8398_v13 = vld [vmem:[#allocation5 + $0xa0] ss:$24 sps:$4 sm:$0xff]   ;;  %v8429_v6 = vld [vmem:[#allocation5 + $0x1f4] ss:$24 sps:$4 sm:$0xff]  }
 0x1c9   : > { %2782 = vmatprep.subr.bf16.mxu0 %v8326_v15  ;;  %v8404_v15 = vld [vmem:[#allocation5 + $0xd0] ss:$24 sps:$4 sm:$0xff]  }
 0x1cb   : > { %2772 = vmatmul.mubr.bf16.vlgmr.msra.gmra.mrb[0].mxu0 %v9797_v21  ;;  %2942 = vmatpush1.bf16.msra.mxu1 %v8363_v7  ;;  %v8427_v7 = vld [vmem:[#allocation5 + $0x1f0] ss:$24 sps:$4 sm:$0xff]  }
 0x1cc   : > { %2783 = vmatpush1.bf16.msra.mxu0 %v8324_v20  ;;  %7239 = vmatprep.mubr.msk.bf16.mxu0 %vm2630_vm0, %v9801_v25  ;;  %v8420_v20 = vld [vmem:[#allocation5 + $0x164] ss:$24 sps:$4 sm:$0xff]  }
 0x1cd   : > { %2784 = vmatprep.subr.bf16.mxu0 %v8332_v22  ;;  %2954 = vmatprep.subr.bf16.mxu1 %v8371_v30  ;;  %v8418_v22 = vld [vmem:[#allocation5 + $0x160] ss:$24 sps:$4 sm:$0xff]   ;;  %v8435_v30 = vld [vmem:[#allocation5 + $0x254] ss:$24 sps:$4 sm:$0xff]  }
 0x1ce   : > { %2944 = vmatmul.mubr.bf16.vlgmr.msra.gmra.mrb[0].mxu1 %v9797_v21 }
 0x1cf   : > { %2955 = vmatpush1.bf16.msra.mxu1 %v8369_v31  ;;  %7241 = vmatprep.mubr.msk.bf16.mxu1 %vm2630_vm0, %v9801_v25  ;;  %v8433_v31 = vld [vmem:[#allocation5 + $0x250] ss:$24 sps:$4 sm:$0xff]  }
 0x1d0   : > { %2785 = vmatpush1.bf16.msra.mxu0 %v8330_v26  ;;  %2956 = vmatprep.subr.bf16.mxu1 %v8375_v34  ;;  %v8426_v26 = vld [vmem:[#allocation5 + $0x1c4] ss:$24 sps:$4 sm:$0xff]   ;;  %v8441_v34 = vld [vmem:[#allocation5 + $0x2b4] ss:$24 sps:$4 sm:$0xff]  }
 0x1d1   : > { %2786 = vmatprep.subr.bf16.mxu0 %v8338_v27  ;;  %v8424_v27 = vld [vmem:[#allocation5 + $0x1c0] ss:$24 sps:$4 sm:$0xff]  }
 0x1d3   : > { %2957 = vmatpush1.bf16.msra.mxu1 %v8373_v35  ;;  %v8439_v35 = vld [vmem:[#allocation5 + $0x2b0] ss:$24 sps:$4 sm:$0xff]  }
 0x1d4   : > { %2787 = vmatpush1.bf16.msra.mxu0 %v8336_v28  ;;  %2958 = vmatprep.subr.bf16.mxu1 %v8379_v39  ;;  %v8432_v28 = vld [vmem:[#allocation5 + $0x224] ss:$24 sps:$4 sm:$0xff]   ;;  %v8447_v39 = vld [vmem:[#allocation5 + $0x314] ss:$24 sps:$4 sm:$0xff]  }
 0x1d5   : > { %2788 = vmatprep.subr.bf16.mxu0 %v8344_v29  ;;  %v8430_v29 = vld [vmem:[#allocation5 + $0x220] ss:$24 sps:$4 sm:$0xff]  }
 0x1d7   : > { %2959 = vmatpush1.bf16.msra.mxu1 %v8377_v40  ;;  %v8541_v40 = vld [vmem:[%s10709_s22 + $0x40] sm:$0xff]  }
 0x1d8   : > { %2789 = vmatpush1.bf16.msra.mxu0 %v8342_v32  ;;  %2960 = vmatprep.subr.bf16.mxu1 %v8385_v43  ;;  %v8438_v32 = vld [vmem:[#allocation5 + $0x284] ss:$24 sps:$4 sm:$0xff]  }
 0x1d9   : > { %2790 = vmatprep.subr.bf16.mxu0 %v8350_v33  ;;  %v8436_v33 = vld [vmem:[#allocation5 + $0x280] ss:$24 sps:$4 sm:$0xff]  }
 0x1da   : > { %v8542_v43 = vld [vmem:[%s10709_s22] sm:$0xff]  }
 0x1db   : > { %2961 = vmatpush1.bf16.msra.mxu1 %v8383_v45  ;;  %v8448_v45 = vld [vmem:[#allocation5 + $0x340] ss:$24 sps:$4 sm:$0xff]  }
 0x1dc   : > { %2791 = vmatpush1.bf16.msra.mxu0 %v8348_v37  ;;  %2962 = vmatprep.subr.bf16.mxu1 %v8391_v48  ;;  %v8444_v37 = vld [vmem:[#allocation5 + $0x2e4] ss:$24 sps:$4 sm:$0xff]   ;;  %v8451_v48 = vld [vmem:[#allocation5 + $0x370] ss:$24 sps:$4 sm:$0xff]  }
 0x1dd   : > { %2792 = vmatprep.subr.bf16.mxu0 %v8356_v38  ;;  %v8442_v38 = vld [vmem:[#allocation5 + $0x2e0] ss:$24 sps:$4 sm:$0xff]  }
 0x1df   : > { %2963 = vmatpush1.bf16.msra.mxu1 %v8389_v49  ;;  %v8456_v49 = vld [vmem:[#allocation5 + $0x3a4] ss:$24 sps:$4 sm:$0xff]  }
 0x1e0   : > { %2793 = vmatpush1.bf16.msra.mxu0 %v8354_v41  ;;  %2964 = vmatprep.subr.bf16.mxu1 %v8397_v52  ;;  %v8445_v41 = vld [vmem:[#allocation5 + $0x310] ss:$24 sps:$4 sm:$0xff]   ;;  %v8459_v52 = vld [vmem:[#allocation5 + $0x3d4] ss:$24 sps:$4 sm:$0xff]  }
 0x1e1   : > { %2794 = vmatprep.subr.bf16.mxu0 %v8362_v42  ;;  %v8450_v42 = vld [vmem:[#allocation5 + $0x344] ss:$24 sps:$4 sm:$0xff]  }
 0x1e3   : > { %2965 = vmatpush1.bf16.msra.mxu1 %v8395_v54  ;;  %v8561_v54 = vld [vmem:[%s10709_s22 + $0x60] sm:$0xff]  }
 0x1e4   : > { %2795 = vmatpush1.bf16.msra.mxu0 %v8360_v46  ;;  %2966 = vmatprep.subr.bf16.mxu1 %v8403_v57  ;;  %v8453_v46 = vld [vmem:[#allocation5 + $0x374] ss:$24 sps:$4 sm:$0xff]   ;;  %v8562_v57 = vld [vmem:[%s10709_s22 + $0x20] sm:$0xff]  }
 0x1e5   : > { %2796 = vmatprep.subr.bf16.mxu0 %v8368_v47  ;;  %v8547_v47 = vld [vmem:[%s10709_s22 + $0x8] sm:$0xff]  }
 0x1e7   : > { %2967 = vmatpush1.bf16.msra.mxu1 %v8401_v58  ;;  %v8566_v58 = vld [vmem:[%s10709_s22 + $0x68] sm:$0xff]  }
 0x1e8   : > { %2797 = vmatpush1.bf16.msra.mxu0 %v8366_v51  ;;  %2968 = vmatprep.subr.bf16.mxu1 %v8409_v62  ;;  %v8454_v51 = vld [vmem:[#allocation5 + $0x3a0] ss:$24 sps:$4 sm:$0xff]   ;;  %v8465_v62 = vld [vmem:[#allocation5 + $0x434] ss:$24 sps:$4 sm:$0xff]  }
 0x1e9   : > { %7238 = vmatprep.subr.msk.bf16.mxu0 %vm2634_vm1, %v7233_v53  ;;  %v8557_v53 = vld [vmem:[%s10709_s22 + $0x18] sm:$0xff]  }
 0x1eb   : > { %2969 = vmatpush1.bf16.msra.mxu1 %v8407_v1  ;;  %v9861_v1 = vld [vmem:[%s10709_s22 + $0x70] sm:$0xff]  }
 0x1ec   : > { %2799 = vmatpush1.bf16.msra.mxu0 %v2636_v55  ;;  %7240 = vmatprep.subr.msk.bf16.mxu1 %vm2634_vm1, %v7235_v4  ;;  %v8457_v55 = vld [vmem:[#allocation5 + $0x3d0] ss:$24 sps:$4 sm:$0xff]   ;;  %v8466_v4 = vld [vmem:[#allocation5 + $0x460] ss:$24 sps:$4 sm:$0xff]  }
 0x1ed   : > { %2997 = vmatprep.subr.bf16.mxu0 %v8382_v56  ;;  %v8462_v56 = vld [vmem:[#allocation5 + $0x404] ss:$24 sps:$4 sm:$0xff]  }
 0x1ef   : > { %2815 = vmatmul.mubr.bf16.vlgmr.msra.gmra.mrb[0].mxu0 %v9813_v60  ;;  %2971 = vmatpush1.bf16.msra.mxu1 %v2642_v11  ;;  %v9885_v11 = vld [vmem:[%s10709_s22 + $0xc0] sm:$0xff]  }
 0x1f0   : > { %2998 = vmatpush1.bf16.msra.mxu0 %v8380_v59  ;;  %3029 = vmatprep.mubr.bf16.mxu0 %v9751_v36  ;;  %v8410_v36 = vld [vmem:[#allocation5 + $0x100] ss:$24 sps:$4 sm:$0xff]  }
 0x1f1   : > { %2999 = vmatprep.subr.bf16.mxu0 %v8388_v61  ;;  %7583 = vmatprep.subr.bf16.mxu1 %v8541_v40  ;;  %v8460_v59 = vld [vmem:[#allocation5 + $0x400] ss:$24 sps:$4 sm:$0xff]   ;;  %v8567_v61 = vld [vmem:[%s10709_s22 + $0x28] sm:$0xff]  }
 0x1f2   : > { %2987 = vmatmul.mubr.bf16.vlgmr.msra.gmra.mrb[0].mxu1 %v9813_v60  ;;  %v8508_v40 = vld [vmem:[#allocation5 + $0x700] ss:$24 sps:$4 sm:$0xff]  }
 0x1f3   : > { %7584 = vmatpush3.bf16.msra.mxu1 %v8542_v43  ;;  %v8519_v43 = vld [vmem:[#allocation5 + $0x794] ss:$24 sps:$4 sm:$0xff]  }
 0x1f4   : > { %3000 = vmatpush1.bf16.msra.mxu0 %v8386_v2  ;;  %7585 = vmatprep.subr.bf16.mxu1 %v8546_v44  ;;  %v9866_v2 = vld [vmem:[%s10709_s22 + $0x30] sm:$0xff]  }
 0x1f5   : > { %3001 = vmatprep.subr.bf16.mxu0 %v8394_v3  ;;  %v8468_v3 = vld [vmem:[#allocation5 + $0x464] ss:$24 sps:$4 sm:$0xff]   ;;  %v8517_v44 = vld [vmem:[#allocation5 + $0x790] ss:$24 sps:$4 sm:$0xff]  }
 0x1f7   : > { %7586 = vmatpush3.bf16.msra.mxu1 %v8547_v47  ;;  %v8525_v47 = vld [vmem:[#allocation5 + $0x7f4] ss:$24 sps:$4 sm:$0xff]  }
 0x1f8   : > { %3002 = vmatpush1.bf16.msra.mxu0 %v8392_v9  ;;  %v9878_v9 = vld [vmem:[%s10709_s22 + $0x38] sm:$0xff]  }
 0x1f9   : > { %3003 = vmatprep.subr.bf16.mxu0 %v8400_v10  ;;  %v8471_v10 = vld [vmem:[#allocation5 + $0x494] ss:$24 sps:$4 sm:$0xff]  }
 0x1fc   : > { %3004 = vmatpush1.bf16.msra.mxu0 %v8398_v13  ;;  %v8469_v13 = vld [vmem:[#allocation5 + $0x490] ss:$24 sps:$4 sm:$0xff]  }
 0x1fd   : > { %3005 = vmatprep.subr.bf16.mxu0 %v8406_v14  ;;  %v8474_v14 = vld [vmem:[#allocation5 + $0x4c4] ss:$24 sps:$4 sm:$0xff]  }
 0x200   : > { %3006 = vmatpush1.bf16.msra.mxu0 %v8404_v15  ;;  %v8472_v15 = vld [vmem:[#allocation5 + $0x4c0] ss:$24 sps:$4 sm:$0xff]  }
 0x201   : > { %3007 = vmatprep.subr.bf16.mxu0 %v8412_v16  ;;  %v8477_v16 = vld [vmem:[#allocation5 + $0x4f4] ss:$24 sps:$4 sm:$0xff]  }
 0x204   : > { %3008 = vmatpush1.bf16.msra.mxu0 %v8410_v36  ;;  %v8475_v36 = vld [vmem:[#allocation5 + $0x4f0] ss:$24 sps:$4 sm:$0xff]  }
 0x205   : > { %3009 = vmatprep.subr.bf16.mxu0 %v8416_v17  ;;  %v8480_v17 = vld [vmem:[#allocation5 + $0x524] ss:$24 sps:$4 sm:$0xff]  }
 0x208   : > { %3010 = vmatpush1.bf16.msra.mxu0 %v8414_v18  ;;  %v8478_v18 = vld [vmem:[#allocation5 + $0x520] ss:$24 sps:$4 sm:$0xff]  }
 0x209   : > { %3011 = vmatprep.subr.bf16.mxu0 %v8420_v20  ;;  %v8483_v20 = vld [vmem:[#allocation5 + $0x554] ss:$24 sps:$4 sm:$0xff]  }
 0x20c   : > { %3012 = vmatpush1.bf16.msra.mxu0 %v8418_v22  ;;  %v8481_v22 = vld [vmem:[#allocation5 + $0x550] ss:$24 sps:$4 sm:$0xff]  }
 0x20d   : > { %3013 = vmatprep.subr.bf16.mxu0 %v8423_v23  ;;  %v8486_v23 = vld [vmem:[#allocation5 + $0x584] ss:$24 sps:$4 sm:$0xff]  }
 0x210   : > { %3014 = vmatpush1.bf16.msra.mxu0 %v8421_v24  ;;  %v8484_v24 = vld [vmem:[#allocation5 + $0x580] ss:$24 sps:$4 sm:$0xff]  }
 0x211   : > { %3015 = vmatprep.subr.bf16.mxu0 %v8426_v26  ;;  %v8489_v26 = vld [vmem:[#allocation5 + $0x5b4] ss:$24 sps:$4 sm:$0xff]  }
 0x214   : > { %3016 = vmatpush1.bf16.msra.mxu0 %v8424_v27  ;;  %v8487_v27 = vld [vmem:[#allocation5 + $0x5b0] ss:$24 sps:$4 sm:$0xff]  }
 0x215   : > { %3017 = vmatprep.subr.bf16.mxu0 %v8429_v6  ;;  %v8492_v6 = vld [vmem:[#allocation5 + $0x5e4] ss:$24 sps:$4 sm:$0xff]  }
 0x218   : > { %3018 = vmatpush1.bf16.msra.mxu0 %v8427_v7  ;;  %v8490_v7 = vld [vmem:[#allocation5 + $0x5e0] ss:$24 sps:$4 sm:$0xff]  }
 0x219   : > { %3019 = vmatprep.subr.bf16.mxu0 %v8432_v28  ;;  %v8495_v28 = vld [vmem:[#allocation5 + $0x614] ss:$24 sps:$4 sm:$0xff]  }
 0x21c   : > { %3020 = vmatpush1.bf16.msra.mxu0 %v8430_v29  ;;  %v8493_v29 = vld [vmem:[#allocation5 + $0x610] ss:$24 sps:$4 sm:$0xff]  }
 0x21d   : > { %3021 = vmatprep.subr.bf16.mxu0 %v8435_v30  ;;  %v8498_v30 = vld [vmem:[#allocation5 + $0x644] ss:$24 sps:$4 sm:$0xff]  }
 0x220   : > { %3022 = vmatpush1.bf16.msra.mxu0 %v8433_v31  ;;  %v8496_v31 = vld [vmem:[#allocation5 + $0x640] ss:$24 sps:$4 sm:$0xff]  }
 0x221   : > { %3023 = vmatprep.subr.bf16.mxu0 %v8438_v32  ;;  %v8501_v32 = vld [vmem:[#allocation5 + $0x674] ss:$24 sps:$4 sm:$0xff]  }
 0x224   : > { %3024 = vmatpush1.bf16.msra.mxu0 %v8436_v33  ;;  %v8499_v33 = vld [vmem:[#allocation5 + $0x670] ss:$24 sps:$4 sm:$0xff]  }
 0x225   : > { %3025 = vmatprep.subr.bf16.mxu0 %v8441_v34  ;;  %v8504_v34 = vld [vmem:[#allocation5 + $0x6a4] ss:$24 sps:$4 sm:$0xff]  }
 0x228   : > { %3026 = vmatpush1.bf16.msra.mxu0 %v8439_v35  ;;  %v8502_v35 = vld [vmem:[#allocation5 + $0x6a0] ss:$24 sps:$4 sm:$0xff]  }
 0x229   : > { %3027 = vmatprep.subr.bf16.mxu0 %v8444_v37  ;;  %v8507_v37 = vld [vmem:[#allocation5 + $0x6d4] ss:$24 sps:$4 sm:$0xff]  }
 0x22c   : > { %3028 = vmatpush1.bf16.msra.mxu0 %v8442_v38  ;;  %v8505_v38 = vld [vmem:[#allocation5 + $0x6d0] ss:$24 sps:$4 sm:$0xff]  }
 0x22d   : > { %3040 = vmatprep.subr.bf16.mxu0 %v8447_v39  ;;  %v8510_v39 = vld [vmem:[#allocation5 + $0x704] ss:$24 sps:$4 sm:$0xff]  }
 0x22f   : > { %3030 = vmatmul.mubr.bf16.vlgmr.msra.gmra.mrb[4].mxu0 %v9755_v0  ;;  %v8551_v0 = vld [vmem:[%s10709_s22 + $0x50] sm:$0xff]  }
 0x230   : > { %3041 = vmatpush1.bf16.msra.mxu0 %v8445_v41  ;;  %3072 = vmatprep.mubr.bf16.mxu0 %v9767_v19  ;;  %v8556_v19 = vld [vmem:[%s10709_s22 + $0x58] sm:$0xff]   ;;  %v8511_v41 = vld [vmem:[#allocation5 + $0x730] ss:$24 sps:$4 sm:$0xff]  }
 0x231   : > { %3042 = vmatprep.subr.bf16.mxu0 %v8450_v42  ;;  %7587 = vmatprep.subr.bf16.mxu1 %v8551_v0  ;;  %v8516_v42 = vld [vmem:[#allocation5 + $0x764] ss:$24 sps:$4 sm:$0xff]   ;;  %v8523_v0 = vld [vmem:[#allocation5 + $0x7f0] ss:$24 sps:$4 sm:$0xff]  }
 0x232   : > { %7588 = vmatpush3.bf16.msra.mxu1 %v8552_v50  ;;  %v8531_v50 = vld [vmem:[#allocation5 + $0x854] ss:$24 sps:$4 sm:$0xff]  }
 0x233   : > { %7589 = vmatprep.subr.bf16.mxu1 %v8556_v19  ;;  %v8529_v19 = vld [vmem:[#allocation5 + $0x850] ss:$24 sps:$4 sm:$0xff]  }
 0x234   : > { %3043 = vmatpush1.bf16.msra.mxu0 %v8448_v45  ;;  %v8522_v45 = vld [vmem:[#allocation5 + $0x7c4] ss:$24 sps:$4 sm:$0xff]  }
 0x235   : > { %3044 = vmatprep.subr.bf16.mxu0 %v8453_v46  ;;  %v8520_v46 = vld [vmem:[#allocation5 + $0x7c0] ss:$24 sps:$4 sm:$0xff]  }
 0x236   : > { %7590 = vmatpush3.bf16.msra.mxu1 %v8557_v53  ;;  %v8537_v53 = vld [vmem:[#allocation5 + $0x8b4] ss:$24 sps:$4 sm:$0xff]  }
 0x237   : > { %7591 = vmatprep.subr.bf16.mxu1 %v8561_v54  ;;  %v8535_v54 = vld [vmem:[#allocation5 + $0x8b0] ss:$24 sps:$4 sm:$0xff]  }
 0x238   : > { %3045 = vmatpush1.bf16.msra.mxu0 %v8451_v48  ;;  %v8528_v48 = vld [vmem:[#allocation5 + $0x824] ss:$24 sps:$4 sm:$0xff]  }
 0x239   : > { %3046 = vmatprep.subr.bf16.mxu0 %v8456_v49  ;;  %v8526_v49 = vld [vmem:[#allocation5 + $0x820] ss:$24 sps:$4 sm:$0xff]  }
 0x23a   : > { %7592 = vmatpush3.bf16.msra.mxu1 %v8562_v57  ;;  %v8545_v57 = vld [vmem:[#allocation5 + $0x914] ss:$24 sps:$4 sm:$0xff]  }
 0x23b   : > { %7593 = vmatprep.subr.bf16.mxu1 %v8566_v58  ;;  %v8543_v58 = vld [vmem:[#allocation5 + $0x910] ss:$24 sps:$4 sm:$0xff]  }
 0x23c   : > { %3047 = vmatpush1.bf16.msra.mxu0 %v8454_v51  ;;  %v8534_v51 = vld [vmem:[#allocation5 + $0x884] ss:$24 sps:$4 sm:$0xff]  }
 0x23d   : > { %3048 = vmatprep.subr.bf16.mxu0 %v8459_v52  ;;  %v8532_v52 = vld [vmem:[#allocation5 + $0x880] ss:$24 sps:$4 sm:$0xff]  }
 0x23e   : > { %7594 = vmatpush3.bf16.msra.mxu1 %v8567_v61  ;;  %v8548_v61 = vld [vmem:[#allocation5 + $0x940] ss:$24 sps:$4 sm:$0xff]  }
 0x23f   : > { %7595 = vmatprep.subr.bf16.mxu1 %v9861_v1 }
 0x240   : > { %3049 = vmatpush1.bf16.msra.mxu0 %v8457_v55  ;;  %v8540_v55 = vld [vmem:[#allocation5 + $0x8e4] ss:$24 sps:$4 sm:$0xff]  }
 0x241   : > { %3050 = vmatprep.subr.bf16.mxu0 %v8462_v56  ;;  %v8538_v56 = vld [vmem:[#allocation5 + $0x8e0] ss:$24 sps:$4 sm:$0xff]  }
 0x242   : > { %7596 = vmatpush3.bf16.msra.mxu1 %v9866_v2 }
 0x243   : > { %7597 = vmatprep.subr.bf16.mxu1 %v9873_v5 }
 0x244   : > { %3051 = vmatpush1.bf16.msra.mxu0 %v8460_v59  ;;  %v8550_v59 = vld [vmem:[#allocation5 + $0x944] ss:$24 sps:$4 sm:$0xff]  }
 0x245   : > { %3052 = vmatprep.subr.bf16.mxu0 %v8465_v62  ;;  %v8555_v62 = vld [vmem:[#allocation5 + $0x974] ss:$24 sps:$4 sm:$0xff]  }
 0x246   : > { %7598 = vmatpush3.bf16.msra.mxu1 %v9878_v9 }
 0x247   : > { %7605 = vmatprep.subr.bf16.mxu1 %v9885_v11 }
 0x248   : > { %3053 = vmatpush1.bf16.msra.mxu0 %v8463_v63  ;;  %v866_v63 = vlaneseq }
 0x249   : > { %3054 = vmatprep.subr.bf16.mxu0 %v8468_v3  ;;  %v8553_v3 = vld [vmem:[#allocation5 + $0x970] ss:$24 sps:$4 sm:$0xff]  }
 0x24c   : > { %3055 = vmatpush1.bf16.msra.mxu0 %v8466_v4  ;;  %v8560_v4 = vld [vmem:[#allocation5 + $0x9a4] ss:$24 sps:$4 sm:$0xff]  }
 0x24d   : > { %3056 = vmatprep.subr.bf16.mxu0 %v8471_v10  ;;  %v9893_v10 = vshrl.u32 %v866_v63, 7  ;;  %v9968_v63 = vld [vmem:[%s10709_s22 + $0x98] sm:$0xff]  }
 0x24f   : > { %10710 = vst [vmem:[#allocation24_spill] sm:$0xff] %v9893_v10 }
 0x250   : > { %3057 = vmatpush1.bf16.msra.mxu0 %v8469_v13  ;;  %v8558_v13 = vld [vmem:[#allocation5 + $0x9a0] ss:$24 sps:$4 sm:$0xff]  }
 0x251   : > { %3058 = vmatprep.subr.bf16.mxu0 %v8474_v14  ;;  %v8565_v14 = vld [vmem:[#allocation5 + $0x9d4] ss:$24 sps:$4 sm:$0xff]  }
 0x254   : > { %3059 = vmatpush1.bf16.msra.mxu0 %v8472_v15  ;;  %v8563_v15 = vld [vmem:[#allocation5 + $0x9d0] ss:$24 sps:$4 sm:$0xff]  }
 0x255   : > { %3060 = vmatprep.subr.bf16.mxu0 %v8477_v16  ;;  %v9896_v16 = vld [vmem:[#allocation7] sm:$0x3f] }
 0x258   : > { %3061 = vmatpush1.bf16.msra.mxu0 %v8475_v36  ;;  %v8570_v36 = vld [vmem:[#allocation5 + $0xa04] ss:$24 sps:$4 sm:$0xff]  }
 0x259   : > { %3062 = vmatprep.subr.bf16.mxu0 %v8480_v17 }
 0x25c   : > { %3063 = vmatpush1.bf16.msra.mxu0 %v8478_v18 }
 0x25d   : > { %3064 = vmatprep.subr.bf16.mxu0 %v8483_v20  ;;  %v8568_v20 = vld [vmem:[#allocation5 + $0xa00] ss:$24 sps:$4 sm:$0xff]  }
 0x260   : > { %3065 = vmatpush1.bf16.msra.mxu0 %v8481_v22  ;;  %v8575_v22 = vld [vmem:[#allocation5 + $0xa34] ss:$24 sps:$4 sm:$0xff]  }
 0x261   : > { %3066 = vmatprep.subr.bf16.mxu0 %v8486_v23 }
 0x264   : > { %3067 = vmatpush1.bf16.msra.mxu0 %v8484_v24 }
 0x265   : > { %3068 = vmatprep.subr.bf16.mxu0 %v8489_v26 }
 0x268   : > { %3069 = vmatpush1.bf16.msra.mxu0 %v8487_v27 }
 0x269   : > { %3070 = vmatprep.subr.bf16.mxu0 %v8492_v6 }
 0x26c   : > { %3071 = vmatpush1.bf16.msra.mxu0 %v8490_v7  ;;  %v8573_v7 = vld [vmem:[#allocation5 + $0xa30] ss:$24 sps:$4 sm:$0xff]  }
 0x26d   : > { %3083 = vmatprep.subr.bf16.mxu0 %v8495_v28 }
 0x26f   : > { %3073 = vmatmul.mubr.bf16.vlgmr.msra.gmra.mrb[4].mxu0 %v9779_v8  ;;  %v8513_v8 = vld [vmem:[#allocation5 + $0x734] ss:$24 sps:$4 sm:$0xff]  }
 0x270   : > { %3084 = vmatpush1.bf16.msra.mxu0 %v8493_v29  ;;  %3115 = vmatprep.mubr.bf16.mxu0 %v9783_v12  ;;  %v8514_v12 = vld [vmem:[#allocation5 + $0x760] ss:$24 sps:$4 sm:$0xff]  }
 0x271   : > { %3085 = vmatprep.subr.bf16.mxu0 %v8498_v30  ;;  %v8580_v30 = vld [vmem:[#allocation5 + $0xa64] ss:$24 sps:$4 sm:$0xff]  }
 0x274   : > { %3086 = vmatpush1.bf16.msra.mxu0 %v8496_v31 }
 0x275   : > { %3087 = vmatprep.subr.bf16.mxu0 %v8501_v32 }
 0x278   : > { %3088 = vmatpush1.bf16.msra.mxu0 %v8499_v33  ;;  %v863_v33 = vld [vmem:[#allocation5 + $0xa90] sm:$0x33] }
 0x279   : > { %3089 = vmatprep.subr.bf16.mxu0 %v8504_v34  ;;  %v10679_v34 = vsub.s32 3, %v9893_v10 }
 0x27c   : > { %3090 = vmatpush1.bf16.msra.mxu0 %v8502_v35 }
 0x27d   : > { %3091 = vmatprep.subr.bf16.mxu0 %v8507_v37 }
 0x280   : > { %3092 = vmatpush1.bf16.msra.mxu0 %v8505_v38 }
 0x281   : > { %3093 = vmatprep.subr.bf16.mxu0 %v8510_v39  ;;  %v8578_v39 = vld [vmem:[#allocation5 + $0xa60] ss:$24 sps:$4 sm:$0xff]  }
 0x284   : > { %3094 = vmatpush1.bf16.msra.mxu0 %v8508_v40 }
 0x285   : > { %3095 = vmatprep.subr.bf16.mxu0 %v8513_v8  ;;  %v7237_v8 = vcombine.high %v863_v33, %v863_v33 }
 0x288   : > { %3096 = vmatpush1.bf16.msra.mxu0 %v8511_v41  ;;  %v7236_v41 = vcombine.low %v863_v33, %v863_v33  ;;  %v10056_v33 = vld [vmem:[%s10709_s22 + $0x150] sm:$0xff]  }
 0x289   : > { %3097 = vmatprep.subr.bf16.mxu0 %v8516_v42 }
 0x28c   : > { %3098 = vmatpush1.bf16.msra.mxu0 %v8514_v12 }
 0x28d   : > { %3099 = vmatprep.subr.bf16.mxu0 %v8519_v43 }
 0x290   : > { %3100 = vmatpush1.bf16.msra.mxu0 %v8517_v44 }
 0x291   : > { %3101 = vmatprep.subr.bf16.mxu0 %v8522_v45  ;;  %v9919_v45 = vld [vmem:[%s10709_s22 + $0x80] sm:$0xff]  }
 0x294   : > { %3102 = vmatpush1.bf16.msra.mxu0 %v8520_v46  ;;  %v881_v46 = vrot.slane %v9896_v16, %v10679_v34 }
 0x295   : > { %3103 = vmatprep.subr.bf16.mxu0 %v8525_v47 }
 0x298   : > { %3104 = vmatpush1.bf16.msra.mxu0 %v8523_v0  ;;  %v9929_v0 = vld [vmem:[%s10709_s22 + $0xc8] sm:$0xff]  }
 0x299   : > { %3105 = vmatprep.subr.bf16.mxu0 %v8528_v48  ;;  %v2648_v48 = vsel %vm2634_vm1, %v7236_v41, 0  ;;  %v10093_v41 = vld [vmem:[%s10709_s22 + $0x168] sm:$0xff]  }
 0x29c   : > { %3106 = vmatpush1.bf16.msra.mxu0 %v8526_v49 }
 0x29d   : > { %3107 = vmatprep.subr.bf16.mxu0 %v8531_v50 }
 0x2a0   : > { %3108 = vmatpush1.bf16.msra.mxu0 %v8529_v19  ;;  %v9937_v19 = vld [vmem:[%s10709_s22 + $0x88] sm:$0xff]  }
 0x2a1   : > { %3109 = vmatprep.subr.bf16.mxu0 %v8534_v51 }
 0x2a4   : > { %3110 = vmatpush1.bf16.msra.mxu0 %v8532_v52 }
 0x2a5   : > { %3111 = vmatprep.subr.bf16.mxu0 %v8537_v53  ;;  %v9943_v53 = vld [vmem:[%s10709_s22 + $0xd0] sm:$0xff]  }
 0x2a8   : > { %3112 = vmatpush1.bf16.msra.mxu0 %v8535_v54 }
 0x2a9   : > { %3113 = vmatprep.subr.bf16.mxu0 %v8540_v55 }
 0x2ac   : > { %3114 = vmatpush1.bf16.msra.mxu0 %v8538_v56 }
 0x2ad   : > { %3126 = vmatprep.subr.bf16.mxu0 %v8545_v57  ;;  %v9950_v57 = vld [vmem:[%s10709_s22 + $0x90] sm:$0xff]  }
 0x2af   : > { %3116 = vmatmul.mubr.bf16.vlgmr.msra.gmra.mrb[4].mxu0 %v9797_v21  ;;  %v10682_v21 = vsub.s32 0, %v9893_v10 }
 0x2b0   : > { %3127 = vmatpush1.bf16.msra.mxu0 %v8543_v58  ;;  %7243 = vmatprep.mubr.msk.bf16.mxu0 %vm2630_vm0, %v9801_v25  ;;  %v10681_v25 = vsub.s32 1, %v9893_v10 }
 0x2b1   : > { %3128 = vmatprep.subr.bf16.mxu0 %v8550_v59  ;;  %v869_v17 = vrot.slane %v9896_v16, %v10682_v21 }
 0x2b2   : > { %v873_v18 = vrot.slane %v9896_v16, %v10681_v25 }
 0x2b4   : > { %3129 = vmatpush1.bf16.msra.mxu0 %v8548_v61  ;;  %v9958_v61 = vld [vmem:[%s10709_s22 + $0xd8] sm:$0xff]  }
 0x2b5   : > { %3130 = vmatprep.subr.bf16.mxu0 %v8555_v62 }
 0x2b8   : > { %3131 = vmatpush1.bf16.msra.mxu0 %v8553_v3  ;;  %v9974_v3 = vld [vmem:[%s10709_s22 + $0xe0] sm:$0xff]  }
 0x2b9   : > { %3132 = vmatprep.subr.bf16.mxu0 %v8560_v4  ;;  %v10680_v4 = vsub.s32 2, %v9893_v10 }
 0x2bc   : > { %3133 = vmatpush1.bf16.msra.mxu0 %v8558_v13  ;;  %v9981_v13 = vld [vmem:[%s10709_s22 + $0xa0] sm:$0xff]  }
 0x2bd   : > { %3134 = vmatprep.subr.bf16.mxu0 %v8565_v14  ;;  %v9987_v14 = vld [vmem:[%s10709_s22 + $0xe8] sm:$0xff]  }
 0x2c0   : > { %3135 = vmatpush1.bf16.msra.mxu0 %v8563_v15  ;;  %v877_v15 = vrot.slane %v9896_v16, %v10680_v4 }
 0x2c1   : > { %3136 = vmatprep.subr.bf16.mxu0 %v8570_v36  ;;  %v9996_v36 = vld [vmem:[%s10709_s22 + $0xa8] sm:$0xff]  }
 0x2c2   : > { %v2816_v23 = vpop.f32.mrb[0].mxu0 }
 0x2c3   : > { %v7847_v24 = vadd.f32 %v2816_v23, %v869_v17  ;;  %v2818_v26 = vpop.f32.mrb[1].mxu0  ;;  %v10014_v23 = vld [vmem:[%s10709_s22 + $0xf8] sm:$0xff]  }
 0x2c4   : > { %v7848_v27 = vadd.f32 %v2818_v26, %v873_v18  ;;  %v2820_v6 = vpop.f32.mrb[2].mxu0  ;;  %3137 = vmatpush1.bf16.msra.mxu0 %v8568_v20 }
 0x2c5   : > { %v7849_v28 = vadd.f32 %v2820_v6, %v869_v17  ;;  %v2822_v29 = vpop.f32.mrb[3].mxu0  ;;  %3138 = vmatprep.subr.bf16.mxu0 %v8575_v22  ;;  %v3181_v35 = vmul.f32 0.01, %v7847_v24  ;;  %vm3169_vm4 = vcmp.gt.f32.partialorder %v7847_v24, 0.0  ;;  %v2988_v49 = vpop.f32.mrb[0].mxu1  ;;  %v10002_v17 = vld [vmem:[%s10709_s22 + $0xf0] sm:$0xff]  }
 0x2c6   : > { %v3182_v31 = vmul.f32 0.01, %v7848_v27  ;;  %v7850_v32 = vadd.f32 %v2822_v29, %v873_v18  ;;  %vm3170_vm2 = vcmp.gt.f32.partialorder %v7848_v27, 0.0  ;;  %v2990_v50 = vpop.f32.mrb[1].mxu1  ;;  %v7851_v18 = vadd.f32 %v2988_v49, %v877_v15  ;;  %v10008_v22 = vld [vmem:[%s10709_s22 + $0xb0] sm:$0xff]   ;;  %v10026_v6 = vld [vmem:[%s10709_s22 + $0x140] sm:$0xff]  }
 0x2c7   : > { %vm3175_vm3 = vcmp.gt.f32.partialorder %v7849_v28, 0.0  ;;  %v3187_v37 = vmul.f32 0.01, %v7849_v28  ;;  %v9912_v43 = vsel %vm3169_vm4, %v7847_v24, %v3181_v35  ;;  %v7852_v51 = vadd.f32 %v2990_v50, %v881_v46  ;;  %v2992_v52 = vpop.f32.mrb[2].mxu1  ;;  %v10036_v29 = vld [vmem:[%s10709_s22 + $0x100] sm:$0xff]   ;;  %v10062_v35 = vld [vmem:[%s10709_s22 + $0x110] sm:$0xff]  }
 0x2c8   : > { %vm3176_vm5 = vcmp.gt.f32.partialorder %v7850_v32, 0.0  ;;  %v3188_v38 = vmul.f32 0.01, %v7850_v32  ;;  %3139 = vmatpush1.bf16.msra.mxu0 %v8573_v7  ;;  %v9908_v42 = vsel %vm3170_vm2, %v7848_v27, %v3182_v31  ;;  %v2994_v54 = vpop.f32.mrb[3].mxu1  ;;  %v7853_v20 = vadd.f32 %v2992_v52, %v877_v15  ;;  %v10020_v27 = vld [vmem:[%s10709_s22 + $0xb8] sm:$0xff]   ;;  %v10044_v31 = vld [vmem:[%s10709_s22 + $0x148] sm:$0xff]  }
 0x2c9   : > { %v9906_v40 = vsel %vm3175_vm3, %v7849_v28, %v3187_v37  ;;  %3140 = vmatprep.subr.bf16.mxu0 %v8580_v30  ;;  %vm3172_vm6 = vcmp.gt.f32.partialorder %v7852_v51, 0.0  ;;  %v3184_v55 = vmul.f32 0.01, %v7852_v51  ;;  %v7854_v56 = vadd.f32 %v2994_v54, %v881_v46  ;;  %v10068_v37 = vld [vmem:[%s10709_s22 + $0x158] sm:$0xff]   ;;  %v10105_v46 = vld [vmem:[%s10709_s22 + $0x170] sm:$0xff]   ;;  %v8987_v50 = vld [vmem:[%s10709_s22 + $0x40] sm:$0xff]  }
 0x2ca   : > { %v9910_v12 = vsel %vm3176_vm5, %v7850_v32, %v3188_v38  ;;  %v3301_v47 = vpack.c.bf16 %v9906_v40, %v9912_v43  ;;  %v3183_v24 = vmul.f32 0.01, %v7851_v18  ;;  %v3189_v26 = vmul.f32 0.01, %v7853_v20  ;;  %v10050_v32 = vld [vmem:[%s10709_s22 + $0x108] sm:$0xff]   ;;  %v10074_v38 = vld [vmem:[%s10709_s22 + $0x118] sm:$0xff]  }
 0x2cb   : > { %v3302_v44 = vpack.c.bf16 %v9910_v12, %v9908_v42  ;;  %v9952_v58 = vsel %vm3172_vm6, %v7852_v51, %v3184_v55  ;;  %vm3178_vm7 = vcmp.gt.f32.partialorder %v7854_v56, 0.0  ;;  %v3190_v59 = vmul.f32 0.01, %v7854_v56  ;;  %v10122_v49 = vld [vmem:[%s10709_s22 + $0x138] sm:$0xff]  }
 0x2cc   : > { %3141 = vmatpush1.bf16.msra.mxu0 %v8578_v39  ;;  %vm3171_vm8 = vcmp.gt.f32.partialorder %v7851_v18, 0.0  ;;  %vm3177_vm9 = vcmp.gt.f32.partialorder %v7853_v20, 0.0  ;;  %v10081_v39 = vld [vmem:[%s10709_s22 + $0x160] sm:$0xff]   ;;  %10711 = vst [vmem:[#allocation25_spill] sm:$0xff] %v10122_v49  ;;  %v884_v51 = vsub.s32 4, %v9893_v10  ;;  %v888_v52 = vsub.s32 5, %v9893_v10 }
 0x2cd   : > { %3645 = vmatprep.mubr.bf16.mxu1 %v3302_v44  ;;  %7242 = vmatprep.subr.msk.bf16.mxu0 %vm2634_vm1, %v7237_v8  ;;  %v9960_v62 = vsel %vm3178_vm7, %v7854_v56, %v3190_v59  ;;  %v10028_v7 = vsel %vm3171_vm8, %v7851_v18, %v3183_v24  ;;  %v10030_v28 = vsel %vm3177_vm9, %v7853_v20, %v3189_v26  ;;  %v10086_v8 = vld [vmem:[%s10709_s22 + $0x120] sm:$0xff]   ;;  %v10098_v44 = vld [vmem:[%s10709_s22 + $0x128] sm:$0xff]   ;;  %vm6146_vm8 = vcmask 130048  }
 0x2ce   : > { %3646 = vmatmul.mubr.bf16.vlgmr.msra.gmra.mrb[4].mxu1 %v3301_v47  ;;  %v3303_v30 = vpack.c.bf16 %v10030_v28, %v10028_v7  ;;  %v10110_v47 = vld [vmem:[%s10709_s22 + $0x130] sm:$0xff]   ;;  %v889_v18 = vrot.slane %v9896_v16, %v888_v52 }
 0x2cf   : > { %7606 = vmatpush3.bf16.msra.mxu1 %v9919_v45 }
 0x2d0   : > { %3143 = vmatpush1.bf16.msra.mxu0 %v2648_v48  ;;  %7607 = vmatprep.subr.bf16.mxu1 %v9929_v0  ;;  %v10117_v48 = vld [vmem:[%s10709_s22 + $0x178] sm:$0xff]  }
 0x2d3   : > { %7608 = vmatpush3.bf16.msra.mxu1 %v9937_v19  ;;  %3159 = vmatmul.mubr.bf16.vlgmr.msra.gmra.mrb[4].mxu0 %v9813_v60  ;;  %v3304_v60 = vpack.c.bf16 %v9960_v62, %v9952_v58 }
 0x2d4   : > { %7609 = vmatprep.subr.bf16.mxu1 %v9943_v53 }
 0x2d5   : > { %3686 = vmatprep.mubr.bf16.mxu1 %v3304_v60  ;;  %v885_v60 = vrot.slane %v9896_v16, %v884_v51  ;;  %v3314_v16 = vmul.f32 %v9910_v12, %v9910_v12 }
 0x2d7   : > { %7610 = vmatpush3.bf16.msra.mxu1 %v9950_v57 }
 0x2d8   : > { %7611 = vmatprep.subr.bf16.mxu1 %v9958_v61 }
 0x2db   : > { %7612 = vmatpush3.bf16.msra.mxu1 %v9968_v63 }
 0x2dc   : > { %7613 = vmatprep.subr.bf16.mxu1 %v9974_v3 }
 0x2df   : > { %7614 = vmatpush3.bf16.msra.mxu1 %v9981_v13 }
 0x2e0   : > { %7615 = vmatprep.subr.bf16.mxu1 %v9987_v14 }
 0x2e3   : > { %7616 = vmatpush3.bf16.msra.mxu1 %v9996_v36 }
 0x2e4   : > { %7617 = vmatprep.subr.bf16.mxu1 %v10002_v17 }
 0x2e7   : > { %7618 = vmatpush3.bf16.msra.mxu1 %v10008_v22 }
 0x2e8   : > { %7619 = vmatprep.subr.bf16.mxu1 %v10014_v23 }
 0x2eb   : > { %7620 = vmatpush3.bf16.msra.mxu1 %v10020_v27 }
 0x2ec   : > { %7627 = vmatprep.subr.bf16.mxu1 %v10026_v6 }
 0x2ee   : > { %3687 = vmatmul.mubr.bf16.vlgmr.msra.gmra.mrb[8].mxu1 %v3303_v30 }
 0x2ef   : > { %7628 = vmatpush3.bf16.msra.mxu1 %v10036_v29 }
 0x2f0   : > { %7629 = vmatprep.subr.bf16.mxu1 %v10044_v31 }
 0x2f3   : > { %7630 = vmatpush3.bf16.msra.mxu1 %v10050_v32 }
 0x2f4   : > { %7631 = vmatprep.subr.bf16.mxu1 %v10056_v33 }
 0x2f7   : > { %7632 = vmatpush3.bf16.msra.mxu1 %v10062_v35 }
 0x2f8   : > { %7633 = vmatprep.subr.bf16.mxu1 %v10068_v37 }
 0x2fb   : > { %7634 = vmatpush3.bf16.msra.mxu1 %v10074_v38 }
 0x2fc   : > { %7635 = vmatprep.subr.bf16.mxu1 %v10081_v39 }
 0x2ff   : > { %7636 = vmatpush3.bf16.msra.mxu1 %v10086_v8 }
 0x300   : > { %7637 = vmatprep.subr.bf16.mxu1 %v10093_v41 }
 0x303   : > { %7638 = vmatpush3.bf16.msra.mxu1 %v10098_v44 }
 0x304   : > { %7639 = vmatprep.subr.bf16.mxu1 %v10105_v46 }
 0x307   : > { %7640 = vmatpush3.bf16.msra.mxu1 %v10110_v47 }
 0x308   : > { %7641 = vmatprep.subr.bf16.mxu1 %v10117_v48 }
 0x30b   : > { %7642 = vmatpush3.bf16.msra.mxu1 %v10122_v49 }
 0x30c   : > { %7649 = vmatprep.subr.bf16.mxu1 %v8987_v50 }
 0x3a1   : > { %v7599_v54 = vpop.f32.mrb[4].mxu1 }
 0x3a2   : > { %v7600_v55 = vpop.f32.mrb[5].mxu1 }
 0x3a3   : > { %v7601_v56 = vadd.f32 %v7600_v55, %v7599_v54  ;;  %v7602_v59 = vpop.f32.mrb[6].mxu1 }
 0x3a4   : > { %v7603_v15 = vpop.f32.mrb[7].mxu1 }
 0x3a5   : > { %v7604_v20 = vadd.f32 %v7603_v15, %v7602_v59 }
 0x3a6   : > { %v3160_v24 = vpop.f32.mrb[4].mxu0 }
 0x3a7   : > { %v7855_v26 = vadd.f32 %v3160_v24, %v885_v60  ;;  %v3162_v30 = vpop.f32.mrb[5].mxu0  ;;  %v8992_v24 = vld [vmem:[%s10709_s22 + $0x10] sm:$0xff]  }
 0x3a8   : > { %v7856_v34 = vadd.f32 %v3162_v30, %v889_v18  ;;  %v3164_v4 = vpop.f32.mrb[6].mxu0  ;;  %v8994_v30 = vld [vmem:[%s10709_s22 + $0x18] sm:$0xff]  }
 0x3a9   : > { %v7857_v50 = vadd.f32 %v3164_v4, %v885_v60  ;;  %v3166_v25 = vpop.f32.mrb[7].mxu0  ;;  %v3185_v10 = vmul.f32 0.01, %v7855_v26  ;;  %vm3173_vm12 = vcmp.gt.f32.partialorder %v7855_v26, 0.0  ;;  %v3308_v60 = vmul.f32 %v9908_v42, %v9908_v42 }
 0x3aa   : > { %v3186_v21 = vmul.f32 0.01, %v7856_v34  ;;  %v7858_v49 = vadd.f32 %v3166_v25, %v889_v18  ;;  %vm3174_vm10 = vcmp.gt.f32.partialorder %v7856_v34, 0.0 }
 0x3ab   : > { %vm3179_vm11 = vcmp.gt.f32.partialorder %v7857_v50, 0.0  ;;  %v3191_v54 = vmul.f32 0.01, %v7857_v50  ;;  %v10141_v4 = vsel %vm3173_vm12, %v7855_v26, %v3185_v10  ;;  %v3320_v18 = vpack.c.bf16 %v3314_v16, %v3308_v60  ;;  %v8989_v10 = vld [vmem:[%s10709_s22 + $0x48] sm:$0xff]   ;;  %v8993_v26 = vld [vmem:[%s10709_s22 + $0x58] sm:$0xff]   ;;  %v8996_v60 = vld [vmem:[%s10709_s22 + $0x20] sm:$0xff]  }
 0x3ac   : > { %vm3180_vm13 = vcmp.gt.f32.partialorder %v7858_v49, 0.0  ;;  %v3192_v51 = vmul.f32 0.01, %v7858_v49  ;;  %v10137_v52 = vsel %vm3174_vm10, %v7856_v34, %v3186_v21  ;;  %v8988_v21 = vld [vmem:[%s10709_s22] sm:$0xff]   ;;  %v8990_v34 = vld [vmem:[%s10709_s22 + $0x8] sm:$0xff]  }
 0x3ad   : > { %v10133_v55 = vsel %vm3179_vm11, %v7857_v50, %v3191_v54  ;;  %v8995_v50 = vld [vmem:[%s10709_s22 + $0x60] sm:$0xff]  }
 0x3ae   : > { %v10139_v59 = vsel %vm3180_vm13, %v7858_v49, %v3192_v51  ;;  %v3305_v15 = vpack.c.bf16 %v10133_v55, %v10141_v4  ;;  %v8991_v49 = vld [vmem:[%s10709_s22 + $0x50] sm:$0xff]  }
 0x3af   : > { %v3306_v25 = vpack.c.bf16 %v10139_v59, %v10137_v52 }
 0x3b1   : > { %3727 = vmatprep.mubr.bf16.mxu1 %v3306_v25 }
 0x3b2   : > { %3728 = vmatmul.mubr.bf16.vlgmr.msra.gmra.mrb[12].mxu1 %v3305_v15 }
 0x3b3   : > { %7650 = vmatpush3.bf16.msra.mxu1 %v8988_v21  ;;  %3768 = vmatprep.mubr.bf16.mxu1 %v3320_v18  ;;  %v8997_v18 = vld [vmem:[%s10709_s22 + $0x68] sm:$0xff]  }
 0x3b4   : > { %7651 = vmatprep.subr.bf16.mxu1 %v8989_v10 }
 0x3b7   : > { %7652 = vmatpush3.bf16.msra.mxu1 %v8990_v34 }
 0x3b8   : > { %7653 = vmatprep.subr.bf16.mxu1 %v8991_v49  ;;  %v8998_v49 = vld [vmem:[%s10709_s22 + $0x28] sm:$0xff]  }
 0x3bb   : > { %7654 = vmatpush3.bf16.msra.mxu1 %v8992_v24  ;;  %v3313_v24 = vmul.f32 %v9906_v40, %v9906_v40 }
 0x3bc   : > { %7655 = vmatprep.subr.bf16.mxu1 %v8993_v26  ;;  %v3307_v26 = vmul.f32 %v9912_v43, %v9912_v43 }
 0x3bf   : > { %7656 = vmatpush3.bf16.msra.mxu1 %v8994_v30  ;;  %v3319_v30 = vpack.c.bf16 %v3313_v24, %v3307_v26 }
 0x3c0   : > { %7657 = vmatprep.subr.bf16.mxu1 %v8995_v50 }
 0x3c1   : > { %v7621_v54 = vpop.f32.mrb[8].mxu1 }
 0x3c2   : > { %v7622_v51 = vpop.f32.mrb[9].mxu1 }
 0x3c3   : > { %v7623_v16 = vadd.f32 %v7622_v51, %v7621_v54  ;;  %v7624_v25 = vpop.f32.mrb[10].mxu1  ;;  %7658 = vmatpush3.bf16.msra.mxu1 %v8996_v60 }
 0x3c4   : > { %v7625_v15 = vpop.f32.mrb[11].mxu1  ;;  %7659 = vmatprep.subr.bf16.mxu1 %v8997_v18 }
 0x3c5   : > { %v10179_v21 = vadd.f32 %v7623_v16, %v7601_v56  ;;  %v7626_v10 = vadd.f32 %v7625_v15, %v7624_v25  ;;  %v3310_v56 = vmul.f32 %v9952_v58, %v9952_v58 }
 0x3c7   : > { %v10181_v34 = vadd.f32 %v7626_v10, %v7604_v20  ;;  %7660 = vmatpush3.bf16.msra.mxu1 %v8998_v49  ;;  %v3316_v20 = vmul.f32 %v9960_v62, %v9960_v62 }
 0x3c8   : > { %7661 = vmatprep.subr.bf16.mxu1 %v9861_v1 }
 0x3c9   : > { %v3322_v1 = vpack.c.bf16 %v3316_v20, %v3310_v56 }
 0x3cb   : > { %7662 = vmatpush3.bf16.msra.mxu1 %v9866_v2  ;;  %v3309_v2 = vmul.f32 %v10028_v7, %v10028_v7 }
 0x3cc   : > { %7663 = vmatprep.subr.bf16.mxu1 %v9873_v5  ;;  %v3315_v5 = vmul.f32 %v10030_v28, %v10030_v28 }
 0x3cf   : > { %7664 = vmatpush3.bf16.msra.mxu1 %v9878_v9  ;;  %v3318_v9 = vmul.f32 %v10139_v59, %v10139_v59 }
 0x3d0   : > { %7671 = vmatprep.subr.bf16.mxu1 %v9885_v11  ;;  %v3312_v11 = vmul.f32 %v10137_v52, %v10137_v52 }
 0x3d2   : > { %3769 = vmatmul.mubr.bf16.vlgmr.msra.gmra.mrb[16].mxu1 %v3319_v30 }
 0x3d3   : > { %7672 = vmatpush3.bf16.msra.mxu1 %v9919_v45  ;;  %3809 = vmatprep.mubr.bf16.mxu1 %v3322_v1  ;;  %v3321_v45 = vpack.c.bf16 %v3315_v5, %v3309_v2 }
 0x3d4   : > { %7673 = vmatprep.subr.bf16.mxu1 %v9929_v0  ;;  %v3324_v0 = vpack.c.bf16 %v3318_v9, %v3312_v11 }
 0x3d7   : > { %7674 = vmatpush3.bf16.msra.mxu1 %v9937_v19  ;;  %v3317_v19 = vmul.f32 %v10133_v55, %v10133_v55 }
 0x3d8   : > { %7675 = vmatprep.subr.bf16.mxu1 %v9943_v53  ;;  %v3311_v53 = vmul.f32 %v10141_v4, %v10141_v4 }
 0x3db   : > { %7676 = vmatpush3.bf16.msra.mxu1 %v9950_v57  ;;  %v10712_v57 = vld [vmem:[#allocation25_spill] sm:$0xff] }
 0x3dc   : > { %7677 = vmatprep.subr.bf16.mxu1 %v9958_v61  ;;  %v3323_v61 = vpack.c.bf16 %v3317_v19, %v3311_v53 }
 0x3df   : > { %7678 = vmatpush3.bf16.msra.mxu1 %v9968_v63  ;;  %v3877_v63 = vld [vmem:[#allocation8] sm:$0xff] }
 0x3e0   : > { %7679 = vmatprep.subr.bf16.mxu1 %v9974_v3  ;;  %v3879_v3 = vld [vmem:[#allocation8 + $0x10] sm:$0xff] }
 0x3e3   : > { %7680 = vmatpush3.bf16.msra.mxu1 %v9981_v13  ;;  %v10242_v13 = vld [vmem:[#allocation8 + $0x8] sm:$0xff] }
 0x3e4   : > { %7681 = vmatprep.subr.bf16.mxu1 %v9987_v14  ;;  %v10244_v14 = vcombine.high %v3877_v63, %v3877_v63 }
 0x3e7   : > { %7682 = vmatpush3.bf16.msra.mxu1 %v9996_v36  ;;  %v7292_v36 = vcombine.low %v3877_v63, %v3877_v63 }
 0x3e8   : > { %7683 = vmatprep.subr.bf16.mxu1 %v10002_v17  ;;  %v10246_v17 = vcombine.high %v3879_v3, %v3879_v3 }
 0x3ea   : > { %7308 = vmatprep.subr.msk.bf16.mxu0 %vm3900_vm14, %v10246_v17 }
 0x3eb   : > { %7684 = vmatpush3.bf16.msra.mxu1 %v10008_v22  ;;  %v9354_v22 = vmov 0  }
 0x3ec   : > { %7685 = vmatprep.subr.bf16.mxu1 %v10014_v23  ;;  %v10251_v23 = vcombine.high %v10242_v13, %v10242_v13  ;;  %4170 = vmatprep.mubr.bf16.mxu0 %v9354_v22 }
 0x3ef   : > { %7686 = vmatpush3.bf16.msra.mxu1 %v10020_v27  ;;  %v7296_v27 = vcombine.low %v3879_v3, %v3879_v3 }
 0x3f0   : > { %7693 = vmatprep.subr.bf16.mxu1 %v10026_v6  ;;  %v10257_v6 = vsel %vm3900_vm14, %v7292_v36, 0 }
 0x3f2   : > { %3810 = vmatmul.mubr.bf16.vlgmr.msra.gmra.mrb[20].mxu1 %v3321_v45 }
 0x3f3   : > { %7694 = vmatpush3.bf16.msra.mxu1 %v10036_v29  ;;  %3850 = vmatprep.mubr.bf16.mxu1 %v3324_v0  ;;  %v10263_v29 = vsel %vm3900_vm14, %v7296_v27, 0  ;;  %v7294_v27 = vcombine.low %v10242_v13, %v10242_v13  ;;  %v8630_v13 = vld [vmem:[#allocation10 + $0x28] ss:$16 sps:$4 sm:$0xff]  }
 0x3f4   : > { %7695 = vmatprep.subr.bf16.mxu1 %v10044_v31  ;;  %4139 = vmatpush1.bf16.msra.mxu0 %v10263_v29 }
 0x3f7   : > { %7696 = vmatpush3.bf16.msra.mxu1 %v10050_v32 }
 0x3f8   : > { %7697 = vmatprep.subr.bf16.mxu1 %v10056_v33 }
 0x3fb   : > { %7698 = vmatpush3.bf16.msra.mxu1 %v10062_v35 }
 0x3fc   : > { %7699 = vmatprep.subr.bf16.mxu1 %v10068_v37 }
 0x3ff   : > { %7700 = vmatpush3.bf16.msra.mxu1 %v10074_v38 }
 0x400   : > { %7701 = vmatprep.subr.bf16.mxu1 %v10081_v39 }
 0x403   : > { %7702 = vmatpush3.bf16.msra.mxu1 %v10086_v8 }
 0x404   : > { %7703 = vmatprep.subr.bf16.mxu1 %v10093_v41  ;;  %v8626_v41 = vld [vmem:[#allocation10 + $0xc] ss:$16 sps:$4 sm:$0xff]  }
 0x405   : > { %5514 = vmatprep.subr.bf16.mxu0 %v8626_v41 }
 0x407   : > { %7704 = vmatpush3.bf16.msra.mxu1 %v10098_v44 }
 0x408   : > { %7705 = vmatprep.subr.bf16.mxu1 %v10105_v46 }
 0x40b   : > { %7706 = vmatpush3.bf16.msra.mxu1 %v10110_v47 }
 0x40c   : > { %7707 = vmatprep.subr.bf16.mxu1 %v10117_v48 }
 0x40f   : > { %7708 = vmatpush3.bf16.msra.mxu1 %v10712_v57 }
 0x410   : > { %7298 = vmatprep.subr.msk.bf16.mxu1 %vm3900_vm14, %v10244_v14 }
 0x412   : > { %3851 = vmatmul.mubr.bf16.vlgmr.msra.gmra.mrb[24].mxu1 %v3323_v61 }
 0x413   : > { %3951 = vmatprep.mubr.bf16.mxu1 %v9354_v22  ;;  %3920 = vmatpush1.bf16.msra.mxu1 %v10257_v6 }
 0x414   : > { %7300 = vmatprep.subr.msk.bf16.mxu1 %vm3900_vm14, %v10251_v23 }
 0x485   : > { %v7643_v31 = vpop.f32.mrb[12].mxu1 }
 0x486   : > { %v7644_v32 = vpop.f32.mrb[13].mxu1 }
 0x487   : > { %v7645_v33 = vadd.f32 %v7644_v32, %v7643_v31  ;;  %v7646_v35 = vpop.f32.mrb[14].mxu1 }
 0x488   : > { %v7647_v37 = vpop.f32.mrb[15].mxu1 }
 0x489   : > { %v3730_v38 = vadd.f32 %v7645_v33, %v10179_v21  ;;  %v7648_v39 = vadd.f32 %v7647_v37, %v7646_v35 }
 0x48b   : > { %v3733_v8 = vadd.f32 %v7648_v39, %v10181_v34  ;;  %v3859_v56 = vmul.f32 0.012345679, %v3730_v38  ;;  %v3908_v38 = vsel %vm3900_vm14, %v7294_v27, 0  ;;  %v8684_v27 = vld [vmem:[#allocation10 + $0x148] ss:$16 sps:$4 sm:$0xff]  }
 0x48d   : > { %v3860_v30 = vmul.f32 0.012345679, %v3733_v8  ;;  %v3863_v5 = vmul.f32 %v3859_v56, %v3859_v56  ;;  %v3873_v36 = vsub.f32 0.0, %v3859_v56  ;;  %v8624_v8 = vld [vmem:[#allocation10 + $0x8] ss:$16 sps:$4 sm:$0xff]  }
 0x48e   : > { %v8647_v56 = vld [vmem:[#allocation10 + $0x84] ss:$16 sps:$4 sm:$0xff]  }
 0x48f   : > { %v3864_v45 = vmul.f32 %v3860_v30, %v3860_v30  ;;  %v3874_v32 = vsub.f32 0.0, %v3860_v30  ;;  %v8659_v30 = vld [vmem:[#allocation10 + $0xc4] ss:$16 sps:$4 sm:$0xff]  }
 0x4a5   : > { %v7665_v44 = vpop.f32.mrb[16].mxu1 }
 0x4a6   : > { %v7666_v46 = vpop.f32.mrb[17].mxu1 }
 0x4a7   : > { %v7667_v47 = vadd.f32 %v7666_v46, %v7665_v44  ;;  %v7668_v48 = vpop.f32.mrb[18].mxu1  ;;  %v8632_v44 = vld [vmem:[#allocation10 + $0x2c] ss:$16 sps:$4 sm:$0xff]  }
 0x4a8   : > { %v7669_v50 = vpop.f32.mrb[19].mxu1  ;;  %v8638_v46 = vld [vmem:[#allocation10 + $0x4c] ss:$16 sps:$4 sm:$0xff]  }
 0x4a9   : > { %v7670_v54 = vadd.f32 %v7669_v50, %v7668_v48  ;;  %v8644_v48 = vld [vmem:[#allocation10 + $0x6c] ss:$16 sps:$4 sm:$0xff]   ;;  %v8642_v50 = vld [vmem:[#allocation10 + $0x68] ss:$16 sps:$4 sm:$0xff]  }
 0x4c5   : > { %v7687_v51 = vpop.f32.mrb[20].mxu1 }
 0x4c6   : > { %v7688_v16 = vpop.f32.mrb[21].mxu1 }
 0x4c7   : > { %v7689_v25 = vadd.f32 %v7688_v16, %v7687_v51  ;;  %v7690_v60 = vpop.f32.mrb[22].mxu1  ;;  %v8656_v51 = vld [vmem:[#allocation10 + $0xac] ss:$16 sps:$4 sm:$0xff]   ;;  %v8623_v16 = vld [vmem:[#allocation10 + $0x4] ss:$16 sps:$4 sm:$0xff]  }
 0x4c8   : > { %v7691_v15 = vpop.f32.mrb[23].mxu1 }
 0x4c9   : > { %v3812_v18 = vadd.f32 %v7689_v25, %v7667_v47  ;;  %v7692_v10 = vadd.f32 %v7691_v15, %v7690_v60  ;;  %v8636_v47 = vld [vmem:[#allocation10 + $0x48] ss:$16 sps:$4 sm:$0xff]   ;;  %v8668_v60 = vld [vmem:[#allocation10 + $0xec] ss:$16 sps:$4 sm:$0xff]   ;;  %v8621_v15 = vld [vmem:[#allocation10] ss:$16 sps:$4 sm:$0xff]  }
 0x4ca   : > { %v8660_v25 = vld [vmem:[#allocation10 + $0xc8] ss:$16 sps:$4 sm:$0xff]  }
 0x4cb   : > { %v3815_v49 = vadd.f32 %v7692_v10, %v7670_v54  ;;  %v8648_v54 = vld [vmem:[#allocation10 + $0x88] ss:$16 sps:$4 sm:$0xff]   ;;  %v8635_v10 = vld [vmem:[#allocation10 + $0x44] ss:$16 sps:$4 sm:$0xff]  }
 0x4e5   : > { %v7709_v21 = vpop.f32.mrb[24].mxu1 }
 0x4e6   : > { %v7710_v24 = vpop.f32.mrb[25].mxu1 }
 0x4e7   : > { %v7711_v34 = vadd.f32 %v7710_v24, %v7709_v21  ;;  %v7712_v20 = vpop.f32.mrb[26].mxu1  ;;  %v8641_v21 = vld [vmem:[#allocation10 + $0x64] ss:$16 sps:$4 sm:$0xff]   ;;  %v8639_v24 = vld [vmem:[#allocation10 + $0x60] ss:$16 sps:$4 sm:$0xff]  }
 0x4e8   : > { %v7713_v26 = vpop.f32.mrb[27].mxu1 }
 0x4e9   : > { %v3853_v1 = vadd.f32 %v7711_v34, %v3812_v18  ;;  %v7714_v2 = vadd.f32 %v7713_v26, %v7712_v20  ;;  %v8627_v18 = vld [vmem:[#allocation10 + $0x20] ss:$16 sps:$4 sm:$0xff]   ;;  %v8653_v20 = vld [vmem:[#allocation10 + $0xa4] ss:$16 sps:$4 sm:$0xff]  }
 0x4ea   : > { %v8645_v34 = vld [vmem:[#allocation10 + $0x80] ss:$16 sps:$4 sm:$0xff]  }
 0x4eb   : > { %v3861_v9 = vmul.f32 0.012345679, %v3853_v1  ;;  %v3856_v11 = vadd.f32 %v7714_v2, %v3815_v49  ;;  %v8633_v49 = vld [vmem:[#allocation10 + $0x40] ss:$16 sps:$4 sm:$0xff]   ;;  %v8665_v2 = vld [vmem:[#allocation10 + $0xe4] ss:$16 sps:$4 sm:$0xff]  }
 0x4ec   : > { %v8651_v26 = vld [vmem:[#allocation10 + $0xa0] ss:$16 sps:$4 sm:$0xff]  }
 0x4ed   : > { %v3865_v0 = vsub.f32 %v3861_v9, %v3863_v5  ;;  %v3862_v19 = vmul.f32 0.012345679, %v3856_v11  ;;  %v8657_v1 = vld [vmem:[#allocation10 + $0xc0] ss:$16 sps:$4 sm:$0xff]   ;;  %v8671_v9 = vld [vmem:[#allocation10 + $0x104] ss:$16 sps:$4 sm:$0xff]  }
 0x4ee   : > { %v8663_v5 = vld [vmem:[#allocation10 + $0xe0] ss:$16 sps:$4 sm:$0xff]   ;;  %v8674_v11 = vld [vmem:[#allocation10 + $0x10c] ss:$16 sps:$4 sm:$0xff]  }
 0x4ef   : > { %v3867_v53 = vmax.f32 %v3865_v0, 0.0  ;;  %v3866_v57 = vsub.f32 %v3862_v19, %v3864_v45  ;;  %v8669_v45 = vld [vmem:[#allocation10 + $0x100] ss:$16 sps:$4 sm:$0xff]   ;;  %v8672_v0 = vld [vmem:[#allocation10 + $0x108] ss:$16 sps:$4 sm:$0xff]  }
 0x4f0   : > { %v8677_v19 = vld [vmem:[#allocation10 + $0x124] ss:$16 sps:$4 sm:$0xff]  }
 0x4f1   : > { %v3869_v61 = vadd.f32 1e-05, %v3867_v53  ;;  %v3868_v63 = vmax.f32 %v3866_v57, 0.0  ;;  %v8680_v53 = vld [vmem:[#allocation10 + $0x12c] ss:$16 sps:$4 sm:$0xff]  }
 0x4f2   : > { %v8675_v57 = vld [vmem:[#allocation10 + $0x120] ss:$16 sps:$4 sm:$0xff]  }
 0x4f3   : > { %8979 = vrsqrt.f32 %v3869_v61  ;;  %v3870_v3 = vadd.f32 1e-05, %v3868_v63  ;;  %v8678_v61 = vld [vmem:[#allocation10 + $0x128] ss:$16 sps:$4 sm:$0xff]   ;;  %v8683_v63 = vld [vmem:[#allocation10 + $0x144] ss:$16 sps:$4 sm:$0xff]  }
 0x4f5   : > { %8981 = vrsqrt.f32 %v3870_v3  ;;  %v8686_v3 = vld [vmem:[#allocation10 + $0x14c] ss:$16 sps:$4 sm:$0xff]  }
 0x4fd   : > { %v8980_v31 = vpop.eup %8979 }
 0x4fe   : > { %v3875_v33 = vmul.f32 %v8980_v31, %v3873_v36  ;;  %v8681_v36 = vld [vmem:[#allocation10 + $0x140] ss:$16 sps:$4 sm:$0xff]  }
 0x4ff   : > { %v8982_v35 = vpop.eup %8981 }
 0x500   : > { %v3880_v37 = vpack.c.bf16 %v8982_v35, %v8980_v31  ;;  %v3876_v39 = vmul.f32 %v8982_v35, %v3874_v32  ;;  %v8689_v31 = vld [vmem:[#allocation10 + $0x164] ss:$16 sps:$4 sm:$0xff]   ;;  %v8692_v32 = vld [vmem:[#allocation10 + $0x16c] ss:$16 sps:$4 sm:$0xff]   ;;  %v8690_v35 = vld [vmem:[#allocation10 + $0x168] ss:$16 sps:$4 sm:$0xff]  }
 0x502   : > { %7299 = vmatmul.mubr.msk.bf16.vlgmr.msra.gmra.mrb[28].mxu1 %vm3896_vm15, %v3880_v37  ;;  %v4048_v41 = vpack.c.bf16 %v3876_v39, %v3875_v33  ;;  %v8687_v33 = vld [vmem:[#allocation10 + $0x160] ss:$16 sps:$4 sm:$0xff]  }
 0x503   : > { %3963 = vmatpush1.bf16.msra.mxu1 %v3908_v38  ;;  %3994 = vmatprep.mubr.bf16.mxu1 %v9354_v22  ;;  %v8693_v39 = vld [vmem:[#allocation10 + $0x180] ss:$16 sps:$4 sm:$0xff]  }
 0x504   : > { %7309 = vmatmul.mubr.msk.bf16.vlgmr.msra.gmra.mrb[8].mxu0 %vm3896_vm15, %v4048_v41  ;;  %7302 = vmatprep.subr.msk.bf16.mxu1 %vm3900_vm14, %v10246_v17  ;;  %v8650_v17 = vld [vmem:[#allocation10 + $0x8c] ss:$16 sps:$4 sm:$0xff]  }
 0x505   : > { %5515 = vmatpush1.bf16.msra.mxu0 %v8624_v8  ;;  %v8696_v8 = vld [vmem:[#allocation10 + $0x188] ss:$16 sps:$4 sm:$0xff]  }
 0x506   : > { %5516 = vmatprep.subr.bf16.mxu0 %v8632_v44  ;;  %v8704_v44 = vld [vmem:[#allocation10 + $0x1ac] ss:$16 sps:$4 sm:$0xff]  }
 0x509   : > { %5517 = vmatpush1.bf16.msra.mxu0 %v8630_v13  ;;  %v8699_v13 = vld [vmem:[#allocation10 + $0x1a0] ss:$16 sps:$4 sm:$0xff]  }
 0x50a   : > { %7301 = vmatmul.mubr.msk.bf16.vlgmr.msra.gmra.mrb[32].mxu1 %vm3896_vm15, %v3880_v37  ;;  %5518 = vmatprep.subr.bf16.mxu0 %v8638_v46  ;;  %v8702_v46 = vld [vmem:[#allocation10 + $0x1a8] ss:$16 sps:$4 sm:$0xff]  }
 0x50b   : > { %4006 = vmatpush1.bf16.msra.mxu1 %v10263_v29  ;;  %4037 = vmatprep.mubr.bf16.mxu1 %v9354_v22  ;;  %v8654_v29 = vld [vmem:[#allocation10 + $0xa8] ss:$16 sps:$4 sm:$0xff]  }
 0x50c   : > { %7304 = vmatprep.subr.msk.bf16.mxu1 %vm3900_vm14, %v10244_v14  ;;  %v8662_v14 = vld [vmem:[#allocation10 + $0xcc] ss:$16 sps:$4 sm:$0xff]  }
 0x50d   : > { %5519 = vmatpush1.bf16.msra.mxu0 %v8636_v47  ;;  %v8707_v47 = vld [vmem:[#allocation10 + $0x1c4] ss:$16 sps:$4 sm:$0xff]  }
 0x50e   : > { %5520 = vmatprep.subr.bf16.mxu0 %v8644_v48  ;;  %v8710_v48 = vld [vmem:[#allocation10 + $0x1cc] ss:$16 sps:$4 sm:$0xff]  }
 0x511   : > { %5521 = vmatpush1.bf16.msra.mxu0 %v8642_v50  ;;  %v8705_v50 = vld [vmem:[#allocation10 + $0x1c0] ss:$16 sps:$4 sm:$0xff]  }
 0x512   : > { %7303 = vmatmul.mubr.msk.bf16.vlgmr.msra.gmra.mrb[36].mxu1 %vm3896_vm15, %v3880_v37  ;;  %5522 = vmatprep.subr.bf16.mxu0 %v8650_v17  ;;  %v8695_v37 = vld [vmem:[#allocation10 + $0x184] ss:$16 sps:$4 sm:$0xff]   ;;  %v8708_v17 = vld [vmem:[#allocation10 + $0x1c8] ss:$16 sps:$4 sm:$0xff]  }
 0x513   : > { %4053 = vmatpush1.bf16.msra.mxu1 %v10257_v6  ;;  %4084 = vmatprep.mubr.bf16.mxu1 %v9354_v22  ;;  %v8666_v6 = vld [vmem:[#allocation10 + $0xe8] ss:$16 sps:$4 sm:$0xff]  }
 0x514   : > { %7306 = vmatprep.subr.msk.bf16.mxu1 %vm3900_vm14, %v10251_v23  ;;  %v8629_v23 = vld [vmem:[#allocation10 + $0x24] ss:$16 sps:$4 sm:$0xff]  }
 0x515   : > { %5523 = vmatpush1.bf16.msra.mxu0 %v8648_v54  ;;  %v8713_v54 = vld [vmem:[#allocation10 + $0x1e4] ss:$16 sps:$4 sm:$0xff]  }
 0x516   : > { %5524 = vmatprep.subr.bf16.mxu0 %v8656_v51  ;;  %v8716_v51 = vld [vmem:[#allocation10 + $0x1ec] ss:$16 sps:$4 sm:$0xff]  }
 0x519   : > { %5525 = vmatpush1.bf16.msra.mxu0 %v8654_v29  ;;  %v8711_v29 = vld [vmem:[#allocation10 + $0x1e0] ss:$16 sps:$4 sm:$0xff]  }
 0x51a   : > { %7305 = vmatmul.mubr.msk.bf16.vlgmr.msra.gmra.mrb[40].mxu1 %vm3896_vm15, %v4048_v41  ;;  %5526 = vmatprep.subr.bf16.mxu0 %v8662_v14  ;;  %v8714_v14 = vld [vmem:[#allocation10 + $0x1e8] ss:$16 sps:$4 sm:$0xff]  }
 0x51b   : > { %4096 = vmatpush1.bf16.msra.mxu1 %v3908_v38  ;;  %4127 = vmatprep.mubr.bf16.mxu1 %v9354_v22  ;;  %v8698_v38 = vld [vmem:[#allocation10 + $0x18c] ss:$16 sps:$4 sm:$0xff]  }
 0x51c   : > { %5385 = vmatprep.subr.bf16.mxu1 %v8623_v16  ;;  %v8719_v16 = vld [vmem:[#allocation10 + $0x204] ss:$16 sps:$4 sm:$0xff]  }
 0x51d   : > { %5527 = vmatpush1.bf16.msra.mxu0 %v8660_v25  ;;  %v8722_v25 = vld [vmem:[#allocation10 + $0x20c] ss:$16 sps:$4 sm:$0xff]  }
 0x51e   : > { %5528 = vmatprep.subr.bf16.mxu0 %v8668_v60 }
 0x521   : > { %5529 = vmatpush1.bf16.msra.mxu0 %v8666_v6 }
 0x522   : > { %7307 = vmatmul.mubr.msk.bf16.vlgmr.msra.gmra.mrb[44].mxu1 %vm3896_vm15, %v4048_v41  ;;  %5530 = vmatprep.subr.bf16.mxu0 %v8674_v11  ;;  %v8701_v41 = vld [vmem:[#allocation10 + $0x1a4] ss:$16 sps:$4 sm:$0xff]  }
 0x523   : > { %5386 = vmatpush1.bf16.msra.mxu1 %v8621_v15 }
 0x524   : > { %5387 = vmatprep.subr.bf16.mxu1 %v8629_v23 }
 0x525   : > { %5531 = vmatpush1.bf16.msra.mxu0 %v8672_v0 }
 0x526   : > { %5532 = vmatprep.subr.bf16.mxu0 %v8680_v53 }
 0x527   : > { %5388 = vmatpush1.bf16.msra.mxu1 %v8627_v18 }
 0x528   : > { %5389 = vmatprep.subr.bf16.mxu1 %v8635_v10 }
 0x529   : > { %5533 = vmatpush1.bf16.msra.mxu0 %v8678_v61 }
 0x52a   : > { %5534 = vmatprep.subr.bf16.mxu0 %v8686_v3 }
 0x52b   : > { %5390 = vmatpush1.bf16.msra.mxu1 %v8633_v49 }
 0x52c   : > { %5391 = vmatprep.subr.bf16.mxu1 %v8641_v21 }
 0x52d   : > { %5535 = vmatpush1.bf16.msra.mxu0 %v8684_v27 }
 0x52e   : > { %5536 = vmatprep.subr.bf16.mxu0 %v8692_v32 }
 0x52f   : > { %5392 = vmatpush1.bf16.msra.mxu1 %v8639_v24 }
 0x530   : > { %5393 = vmatprep.subr.bf16.mxu1 %v8647_v56 }
 0x531   : > { %5537 = vmatpush1.bf16.msra.mxu0 %v8690_v35 }
 0x532   : > { %5538 = vmatprep.subr.bf16.mxu0 %v8698_v38 }
 0x533   : > { %5394 = vmatpush1.bf16.msra.mxu1 %v8645_v34 }
 0x534   : > { %5395 = vmatprep.subr.bf16.mxu1 %v8653_v20 }
 0x535   : > { %5539 = vmatpush1.bf16.msra.mxu0 %v8696_v8  ;;  %v8720_v8 = vld [vmem:[#allocation10 + $0x208] ss:$16 sps:$4 sm:$0xff]  }
 0x536   : > { %5540 = vmatprep.subr.bf16.mxu0 %v8704_v44  ;;  %v8728_v44 = vld [vmem:[#allocation10 + $0x22c] ss:$16 sps:$4 sm:$0xff]  }
 0x537   : > { %5396 = vmatpush1.bf16.msra.mxu1 %v8651_v26 }
 0x538   : > { %5397 = vmatprep.subr.bf16.mxu1 %v8659_v30 }
 0x539   : > { %5541 = vmatpush1.bf16.msra.mxu0 %v8702_v46 }
 0x53a   : > { %5542 = vmatprep.subr.bf16.mxu0 %v8710_v48 }
 0x53b   : > { %5398 = vmatpush1.bf16.msra.mxu1 %v8657_v1 }
 0x53c   : > { %5399 = vmatprep.subr.bf16.mxu1 %v8665_v2 }
 0x53d   : > { %5543 = vmatpush1.bf16.msra.mxu0 %v8708_v17 }
 0x53e   : > { %5544 = vmatprep.subr.bf16.mxu0 %v8716_v51 }
 0x53f   : > { %5400 = vmatpush1.bf16.msra.mxu1 %v8663_v5 }
 0x540   : > { %5401 = vmatprep.subr.bf16.mxu1 %v8671_v9 }
 0x541   : > { %5545 = vmatpush1.bf16.msra.mxu0 %v8714_v14  ;;  %v8734_v14 = vld [vmem:[#allocation10 + $0x24c] ss:$16 sps:$4 sm:$0xff]  }
 0x542   : > { %5557 = vmatprep.subr.bf16.mxu0 %v8722_v25 }
 0x543   : > { %5402 = vmatpush1.bf16.msra.mxu1 %v8669_v45 }
 0x544   : > { %5403 = vmatprep.subr.bf16.mxu1 %v8677_v19 }
 0x547   : > { %5404 = vmatpush1.bf16.msra.mxu1 %v8675_v57 }
 0x548   : > { %5405 = vmatprep.subr.bf16.mxu1 %v8683_v63 }
 0x54b   : > { %5406 = vmatpush1.bf16.msra.mxu1 %v8681_v36 }
 0x54c   : > { %5407 = vmatprep.subr.bf16.mxu1 %v8689_v31 }
 0x54f   : > { %5408 = vmatpush1.bf16.msra.mxu1 %v8687_v33 }
 0x550   : > { %5409 = vmatprep.subr.bf16.mxu1 %v8695_v37 }
 0x553   : > { %5410 = vmatpush1.bf16.msra.mxu1 %v8693_v39  ;;  %v8717_v39 = vld [vmem:[#allocation10 + $0x200] ss:$16 sps:$4 sm:$0xff]  }
 0x554   : > { %5411 = vmatprep.subr.bf16.mxu1 %v8701_v41  ;;  %v8725_v41 = vld [vmem:[#allocation10 + $0x224] ss:$16 sps:$4 sm:$0xff]  }
 0x557   : > { %5412 = vmatpush1.bf16.msra.mxu1 %v8699_v13 }
 0x558   : > { %5413 = vmatprep.subr.bf16.mxu1 %v8707_v47 }
 0x55b   : > { %5414 = vmatpush1.bf16.msra.mxu1 %v8705_v50 }
 0x55c   : > { %5415 = vmatprep.subr.bf16.mxu1 %v8713_v54  ;;  %v8726_v54 = vld [vmem:[#allocation10 + $0x228] ss:$16 sps:$4 sm:$0xff]  }
 0x55f   : > { %5416 = vmatpush1.bf16.msra.mxu1 %v8711_v29 }
 0x560   : > { %5428 = vmatprep.subr.bf16.mxu1 %v8719_v16 }
 0x5d5   : > { %v3953_v60 = vpop.f32.mrb[28].mxu1 }
 0x5d6   : > { %v3955_v6 = vpop.f32.mrb[29].mxu1  ;;  %v4181_v61 = vmul.f32 %v3953_v60, %v9912_v43  ;;  %v8729_v60 = vld [vmem:[#allocation10 + $0x240] ss:$16 sps:$4 sm:$0xff]  }
 0x5d7   : > { %v3957_v15 = vpop.f32.mrb[30].mxu1  ;;  %v4172_v23 = vpop.f32.mrb[8].mxu0  ;;  %v4182_v3 = vmul.f32 %v3955_v6, %v9908_v42  ;;  %v8737_v6 = vld [vmem:[#allocation10 + $0x264] ss:$16 sps:$4 sm:$0xff]  }
 0x5d8   : > { %v3959_v18 = vpop.f32.mrb[31].mxu1  ;;  %v4174_v10 = vpop.f32.mrb[9].mxu0 }
 0x5d9   : > { %v4176_v49 = vpop.f32.mrb[10].mxu0 }
 0x5da   : > { %v4178_v21 = vpop.f32.mrb[11].mxu0 }
 0x5dd   : > { %v3996_v24 = vpop.f32.mrb[32].mxu1 }
 0x5de   : > { %v3998_v56 = vpop.f32.mrb[33].mxu1  ;;  %v4183_v42 = vmul.f32 %v3996_v24, %v10028_v7  ;;  %v8723_v7 = vld [vmem:[#allocation10 + $0x220] ss:$16 sps:$4 sm:$0xff]   ;;  %v8744_v24 = vld [vmem:[#allocation10 + $0x288] ss:$16 sps:$4 sm:$0xff]  }
 0x5df   : > { %v4000_v34 = vpop.f32.mrb[34].mxu1  ;;  %v4184_v13 = vmul.f32 %v3998_v56, %v9952_v58  ;;  %v8731_v58 = vld [vmem:[#allocation10 + $0x244] ss:$16 sps:$4 sm:$0xff]  }
 0x5e0   : > { %v4002_v20 = vpop.f32.mrb[35].mxu1  ;;  %v8749_v56 = vld [vmem:[#allocation10 + $0x2a4] ss:$16 sps:$4 sm:$0xff]  }
 0x5e1   : > { %v4190_v48 = vmul.f32 %v4002_v20, %v9960_v62  ;;  %v8732_v62 = vld [vmem:[#allocation10 + $0x248] ss:$16 sps:$4 sm:$0xff]   ;;  %v8747_v20 = vld [vmem:[#allocation10 + $0x2a0] ss:$16 sps:$4 sm:$0xff]  }
 0x5e5   : > { %v4039_v26 = vpop.f32.mrb[36].mxu1 }
 0x5e6   : > { %v4185_v30 = vmul.f32 %v4039_v26, %v10141_v4  ;;  %v4041_v1 = vpop.f32.mrb[37].mxu1  ;;  %v8750_v26 = vld [vmem:[#allocation10 + $0x2a8] ss:$16 sps:$4 sm:$0xff]  }
 0x5e7   : > { %v4186_v2 = vmul.f32 %v4041_v1, %v10137_v52  ;;  %v4043_v5 = vpop.f32.mrb[38].mxu1  ;;  %v4187_v52 = vmul.f32 %v3957_v15, %v9906_v40  ;;  %v8740_v15 = vld [vmem:[#allocation10 + $0x26c] ss:$16 sps:$4 sm:$0xff]  }
 0x5e8   : > { %v4197_v9 = vadd.f32 %v4185_v30, %v4172_v23  ;;  %v4191_v11 = vmul.f32 %v4043_v5, %v10133_v55  ;;  %v4045_v45 = vpop.f32.mrb[39].mxu1  ;;  %v4188_v55 = vmul.f32 %v3959_v18, %v9910_v12  ;;  %v4189_v12 = vmul.f32 %v4000_v34, %v10030_v28  ;;  %v8735_v23 = vld [vmem:[#allocation10 + $0x260] ss:$16 sps:$4 sm:$0xff]   ;;  %v8738_v18 = vld [vmem:[#allocation10 + $0x268] ss:$16 sps:$4 sm:$0xff]  }
 0x5e9   : > { %v4198_v0 = vadd.f32 %v4186_v2, %v4174_v10  ;;  %v4192_v19 = vmul.f32 %v4045_v45, %v10139_v59  ;;  %v8743_v10 = vld [vmem:[#allocation10 + $0x284] ss:$16 sps:$4 sm:$0xff]   ;;  %v8752_v34 = vld [vmem:[#allocation10 + $0x2ac] ss:$16 sps:$4 sm:$0xff]   ;;  %v8753_v2 = vld [vmem:[#allocation10 + $0x2c0] ss:$16 sps:$4 sm:$0xff]  }
 0x5ea   : > { %v4203_v53 = vadd.f32 %v4191_v11, %v4176_v49  ;;  %v8746_v49 = vld [vmem:[#allocation10 + $0x28c] ss:$16 sps:$4 sm:$0xff]   ;;  %v8755_v30 = vld [vmem:[#allocation10 + $0x2c4] ss:$16 sps:$4 sm:$0xff]   ;;  %v8756_v5 = vld [vmem:[#allocation10 + $0x2c8] ss:$16 sps:$4 sm:$0xff]  }
 0x5eb   : > { %v4204_v57 = vadd.f32 %v4192_v19, %v4178_v21  ;;  %v8741_v21 = vld [vmem:[#allocation10 + $0x280] ss:$16 sps:$4 sm:$0xff]   ;;  %v8758_v1 = vld [vmem:[#allocation10 + $0x2cc] ss:$16 sps:$4 sm:$0xff]   ;;  %v8767_v19 = vld [vmem:[#allocation10 + $0x304] ss:$16 sps:$4 sm:$0xff]  }
 0x5ec   : > { %v10296_v63 = vpack.c.bf16 %v4203_v53, %v4197_v9  ;;  %v8761_v9 = vld [vmem:[#allocation10 + $0x2e4] ss:$16 sps:$4 sm:$0xff]   ;;  %v8764_v11 = vld [vmem:[#allocation10 + $0x2ec] ss:$16 sps:$4 sm:$0xff]   ;;  %v8759_v45 = vld [vmem:[#allocation10 + $0x2e0] ss:$16 sps:$4 sm:$0xff]  }
 0x5ed   : > { %v4086_v4 = vpop.f32.mrb[40].mxu1  ;;  %v10299_v36 = vpack.c.bf16 %v4204_v57, %v4198_v0  ;;  %v8762_v0 = vld [vmem:[#allocation10 + $0x2e8] ss:$16 sps:$4 sm:$0xff]   ;;  %v8770_v53 = vld [vmem:[#allocation10 + $0x30c] ss:$16 sps:$4 sm:$0xff]  }
 0x5ee   : > { %v4193_v27 = vadd.f32 %v4181_v61, %v4086_v4  ;;  %v4088_v31 = vpop.f32.mrb[41].mxu1  ;;  %v8765_v57 = vld [vmem:[#allocation10 + $0x300] ss:$16 sps:$4 sm:$0xff]   ;;  %v8768_v61 = vld [vmem:[#allocation10 + $0x308] ss:$16 sps:$4 sm:$0xff]  }
 0x5ef   : > { %v4194_v32 = vadd.f32 %v4182_v3, %v4088_v31  ;;  %v4090_v33 = vpop.f32.mrb[42].mxu1  ;;  %v8773_v3 = vld [vmem:[#allocation10 + $0x324] ss:$16 sps:$4 sm:$0xff]   ;;  %v8776_v4 = vld [vmem:[#allocation10 + $0x32c] ss:$16 sps:$4 sm:$0xff]  }
 0x5f0   : > { %v4199_v59 = vadd.f32 %v4187_v52, %v4090_v33  ;;  %v4092_v35 = vpop.f32.mrb[43].mxu1  ;;  %v8771_v52 = vld [vmem:[#allocation10 + $0x320] ss:$16 sps:$4 sm:$0xff]   ;;  %v8779_v31 = vld [vmem:[#allocation10 + $0x344] ss:$16 sps:$4 sm:$0xff]  }
 0x5f1   : > { %v4200_v37 = vadd.f32 %v4188_v55, %v4092_v35  ;;  %v8782_v55 = vld [vmem:[#allocation10 + $0x34c] ss:$16 sps:$4 sm:$0xff]   ;;  %v8780_v33 = vld [vmem:[#allocation10 + $0x348] ss:$16 sps:$4 sm:$0xff]  }
 0x5f2   : > { %v4205_v38 = vpack.c.bf16 %v4199_v59, %v4193_v27  ;;  %v8774_v27 = vld [vmem:[#allocation10 + $0x328] ss:$16 sps:$4 sm:$0xff]   ;;  %v8785_v59 = vld [vmem:[#allocation10 + $0x364] ss:$16 sps:$4 sm:$0xff]   ;;  %v8788_v35 = vld [vmem:[#allocation10 + $0x36c] ss:$16 sps:$4 sm:$0xff]  }
 0x5f3   : > { %v4206_v43 = vpack.c.bf16 %v4200_v37, %v4194_v32  ;;  %v8777_v32 = vld [vmem:[#allocation10 + $0x340] ss:$16 sps:$4 sm:$0xff]  }
 0x5f4   : > { %v8783_v37 = vld [vmem:[#allocation10 + $0x360] ss:$16 sps:$4 sm:$0xff]  }
 0x5f5   : > { %v4129_v40 = vpop.f32.mrb[44].mxu1  ;;  %5417 = vmatprep.mubr.bf16.mxu1 %v4206_v43  ;;  %5546 = vmatprep.mubr.bf16.mxu0 %v4206_v43  ;;  %v8791_v43 = vld [vmem:[#allocation10 + $0x384] ss:$16 sps:$4 sm:$0xff]  }
 0x5f6   : > { %v4195_v46 = vadd.f32 %v4183_v42, %v4129_v40  ;;  %v4131_v47 = vpop.f32.mrb[45].mxu1  ;;  %5418 = vmatmul.mubr.bf16.vlgmr.msra.gmra.mrb[48].mxu1 %v4205_v38  ;;  %5547 = vmatmul.mubr.bf16.vlgmr.msra.gmra.mrb[12].mxu0 %v4205_v38  ;;  %v8786_v38 = vld [vmem:[#allocation10 + $0x368] ss:$16 sps:$4 sm:$0xff]  }
 0x5f7   : > { %v4196_v50 = vadd.f32 %v4184_v13, %v4131_v47  ;;  %5429 = vmatpush1.bf16.msra.mxu1 %v8717_v39  ;;  %5558 = vmatpush1.bf16.msra.mxu0 %v8720_v8  ;;  %v4133_v17 = vpop.f32.mrb[46].mxu1  ;;  %v8794_v39 = vld [vmem:[#allocation10 + $0x38c] ss:$16 sps:$4 sm:$0xff]   ;;  %v8789_v8 = vld [vmem:[#allocation10 + $0x380] ss:$16 sps:$4 sm:$0xff]  }
 0x5f8   : > { %v4201_v51 = vadd.f32 %v4189_v12, %v4133_v17  ;;  %v4135_v29 = vpop.f32.mrb[47].mxu1  ;;  %5430 = vmatprep.subr.bf16.mxu1 %v8725_v41  ;;  %5559 = vmatprep.subr.bf16.mxu0 %v8728_v44  ;;  %v8792_v42 = vld [vmem:[#allocation10 + $0x388] ss:$16 sps:$4 sm:$0xff]   ;;  %v8797_v41 = vld [vmem:[#allocation10 + $0x3a4] ss:$16 sps:$4 sm:$0xff]  }
 0x5f9   : > { %v4202_v16 = vadd.f32 %v4190_v48, %v4135_v29  ;;  %v8800_v44 = vld [vmem:[#allocation10 + $0x3ac] ss:$16 sps:$4 sm:$0xff]   ;;  %v8795_v13 = vld [vmem:[#allocation10 + $0x3a0] ss:$16 sps:$4 sm:$0xff]   ;;  %v8798_v40 = vld [vmem:[#allocation10 + $0x3a8] ss:$16 sps:$4 sm:$0xff]  }
 0x5fa   : > { %v10307_v28 = vpack.c.bf16 %v4201_v51, %v4195_v46  ;;  %v8803_v12 = vld [vmem:[#allocation10 + $0x3c4] ss:$16 sps:$4 sm:$0xff]   ;;  %v8806_v46 = vld [vmem:[#allocation10 + $0x3cc] ss:$16 sps:$4 sm:$0xff]   ;;  %v8801_v47 = vld [vmem:[#allocation10 + $0x3c0] ss:$16 sps:$4 sm:$0xff]  }
 0x5fb   : > { %v4208_v25 = vpack.c.bf16 %v4202_v16, %v4196_v50  ;;  %5431 = vmatpush1.bf16.msra.mxu1 %v8723_v7  ;;  %5560 = vmatpush1.bf16.msra.mxu0 %v8726_v54  ;;  %v8804_v48 = vld [vmem:[#allocation10 + $0x3c8] ss:$16 sps:$4 sm:$0xff]   ;;  %v8809_v50 = vld [vmem:[#allocation10 + $0x3e4] ss:$16 sps:$4 sm:$0xff]   ;;  %v8812_v17 = vld [vmem:[#allocation10 + $0x3ec] ss:$16 sps:$4 sm:$0xff]  }
 0x5fc   : > { %5432 = vmatprep.subr.bf16.mxu1 %v8731_v58  ;;  %5561 = vmatprep.subr.bf16.mxu0 %v8734_v14  ;;  %v8807_v7 = vld [vmem:[#allocation10 + $0x3e0] ss:$16 sps:$4 sm:$0xff]   ;;  %v8810_v54 = vld [vmem:[#allocation10 + $0x3e8] ss:$16 sps:$4 sm:$0xff]   ;;  %v8815_v51 = vld [vmem:[#allocation10 + $0x404] ss:$16 sps:$4 sm:$0xff]  }
 0x5fd   : > { %5460 = vmatprep.mubr.bf16.mxu1 %v4208_v25  ;;  %5589 = vmatprep.mubr.bf16.mxu0 %v4208_v25  ;;  %v8818_v29 = vld [vmem:[#allocation10 + $0x40c] ss:$16 sps:$4 sm:$0xff]   ;;  %v8813_v58 = vld [vmem:[#allocation10 + $0x400] ss:$16 sps:$4 sm:$0xff]   ;;  %v8816_v14 = vld [vmem:[#allocation10 + $0x408] ss:$16 sps:$4 sm:$0xff]  }
 0x5fe   : > { %v8821_v16 = vld [vmem:[#allocation10 + $0x424] ss:$16 sps:$4 sm:$0xff]   ;;  %v8824_v25 = vld [vmem:[#allocation10 + $0x42c] ss:$16 sps:$4 sm:$0xff]  }
 0x5ff   : > { %5433 = vmatpush1.bf16.msra.mxu1 %v8729_v60  ;;  %5562 = vmatpush1.bf16.msra.mxu0 %v8732_v62  ;;  %v8819_v60 = vld [vmem:[#allocation10 + $0x420] ss:$16 sps:$4 sm:$0xff]   ;;  %v8822_v62 = vld [vmem:[#allocation10 + $0x428] ss:$16 sps:$4 sm:$0xff]  }
 0x600   : > { %5434 = vmatprep.subr.bf16.mxu1 %v8737_v6  ;;  %5563 = vmatprep.subr.bf16.mxu0 %v8740_v15  ;;  %v8827_v6 = vld [vmem:[#allocation10 + $0x444] ss:$16 sps:$4 sm:$0xff]   ;;  %v8830_v15 = vld [vmem:[#allocation10 + $0x44c] ss:$16 sps:$4 sm:$0xff]  }
 0x603   : > { %5435 = vmatpush1.bf16.msra.mxu1 %v8735_v23  ;;  %5564 = vmatpush1.bf16.msra.mxu0 %v8738_v18  ;;  %v8825_v23 = vld [vmem:[#allocation10 + $0x440] ss:$16 sps:$4 sm:$0xff]   ;;  %v8828_v18 = vld [vmem:[#allocation10 + $0x448] ss:$16 sps:$4 sm:$0xff]  }
 0x604   : > { %5436 = vmatprep.subr.bf16.mxu1 %v8743_v10  ;;  %5565 = vmatprep.subr.bf16.mxu0 %v8746_v49  ;;  %v8833_v10 = vld [vmem:[#allocation10 + $0x464] ss:$16 sps:$4 sm:$0xff]   ;;  %v8831_v49 = vld [vmem:[#allocation10 + $0x460] ss:$16 sps:$4 sm:$0xff]  }
 0x607   : > { %5437 = vmatpush1.bf16.msra.mxu1 %v8741_v21  ;;  %5566 = vmatpush1.bf16.msra.mxu0 %v8744_v24  ;;  %v8834_v21 = vld [vmem:[#allocation10 + $0x468] ss:$16 sps:$4 sm:$0xff]   ;;  %v8839_v24 = vld [vmem:[#allocation10 + $0x484] ss:$16 sps:$4 sm:$0xff]  }
 0x608   : > { %5438 = vmatprep.subr.bf16.mxu1 %v8749_v56  ;;  %5567 = vmatprep.subr.bf16.mxu0 %v8752_v34  ;;  %v8837_v56 = vld [vmem:[#allocation10 + $0x480] ss:$16 sps:$4 sm:$0xff]   ;;  %v8840_v34 = vld [vmem:[#allocation10 + $0x488] ss:$16 sps:$4 sm:$0xff]  }
 0x60b   : > { %5439 = vmatpush1.bf16.msra.mxu1 %v8747_v20  ;;  %5568 = vmatpush1.bf16.msra.mxu0 %v8750_v26  ;;  %v8845_v20 = vld [vmem:[#allocation10 + $0x4a4] ss:$16 sps:$4 sm:$0xff]   ;;  %v8848_v26 = vld [vmem:[#allocation10 + $0x4ac] ss:$16 sps:$4 sm:$0xff]  }
 0x60c   : > { %5440 = vmatprep.subr.bf16.mxu1 %v8755_v30  ;;  %5569 = vmatprep.subr.bf16.mxu0 %v8758_v1  ;;  %v8843_v30 = vld [vmem:[#allocation10 + $0x4a0] ss:$16 sps:$4 sm:$0xff]   ;;  %v8846_v1 = vld [vmem:[#allocation10 + $0x4a8] ss:$16 sps:$4 sm:$0xff]  }
 0x60f   : > { %5441 = vmatpush1.bf16.msra.mxu1 %v8753_v2  ;;  %5570 = vmatpush1.bf16.msra.mxu0 %v8756_v5  ;;  %v8851_v2 = vld [vmem:[#allocation10 + $0x4c4] ss:$16 sps:$4 sm:$0xff]   ;;  %v8854_v5 = vld [vmem:[#allocation10 + $0x4cc] ss:$16 sps:$4 sm:$0xff]  }
 0x610   : > { %5442 = vmatprep.subr.bf16.mxu1 %v8761_v9  ;;  %5571 = vmatprep.subr.bf16.mxu0 %v8764_v11  ;;  %v8849_v9 = vld [vmem:[#allocation10 + $0x4c0] ss:$16 sps:$4 sm:$0xff]   ;;  %v8852_v11 = vld [vmem:[#allocation10 + $0x4c8] ss:$16 sps:$4 sm:$0xff]  }
 0x613   : > { %5443 = vmatpush1.bf16.msra.mxu1 %v8759_v45  ;;  %5572 = vmatpush1.bf16.msra.mxu0 %v8762_v0  ;;  %v8857_v45 = vld [vmem:[#allocation10 + $0x4e4] ss:$16 sps:$4 sm:$0xff]   ;;  %v8860_v0 = vld [vmem:[#allocation10 + $0x4ec] ss:$16 sps:$4 sm:$0xff]  }
 0x614   : > { %5444 = vmatprep.subr.bf16.mxu1 %v8767_v19  ;;  %5573 = vmatprep.subr.bf16.mxu0 %v8770_v53  ;;  %v8855_v19 = vld [vmem:[#allocation10 + $0x4e0] ss:$16 sps:$4 sm:$0xff]   ;;  %v8858_v53 = vld [vmem:[#allocation10 + $0x4e8] ss:$16 sps:$4 sm:$0xff]  }
 0x617   : > { %5445 = vmatpush1.bf16.msra.mxu1 %v8765_v57  ;;  %5574 = vmatpush1.bf16.msra.mxu0 %v8768_v61  ;;  %v8863_v57 = vld [vmem:[#allocation10 + $0x504] ss:$16 sps:$4 sm:$0xff]   ;;  %v8866_v61 = vld [vmem:[#allocation10 + $0x50c] ss:$16 sps:$4 sm:$0xff]  }
 0x618   : > { %5446 = vmatprep.subr.bf16.mxu1 %v8773_v3  ;;  %5575 = vmatprep.subr.bf16.mxu0 %v8776_v4  ;;  %v8861_v3 = vld [vmem:[#allocation10 + $0x500] ss:$16 sps:$4 sm:$0xff]   ;;  %v8864_v4 = vld [vmem:[#allocation10 + $0x508] ss:$16 sps:$4 sm:$0xff]  }
 0x61b   : > { %5447 = vmatpush1.bf16.msra.mxu1 %v8771_v52  ;;  %5576 = vmatpush1.bf16.msra.mxu0 %v8774_v27  ;;  %v8869_v52 = vld [vmem:[#allocation10 + $0x524] ss:$16 sps:$4 sm:$0xff]   ;;  %v8872_v27 = vld [vmem:[#allocation10 + $0x52c] ss:$16 sps:$4 sm:$0xff]  }
 0x61c   : > { %5448 = vmatprep.subr.bf16.mxu1 %v8779_v31  ;;  %5577 = vmatprep.subr.bf16.mxu0 %v8782_v55  ;;  %v8867_v31 = vld [vmem:[#allocation10 + $0x520] ss:$16 sps:$4 sm:$0xff]   ;;  %v8870_v55 = vld [vmem:[#allocation10 + $0x528] ss:$16 sps:$4 sm:$0xff]  }
 0x61f   : > { %5449 = vmatpush1.bf16.msra.mxu1 %v8777_v32  ;;  %5578 = vmatpush1.bf16.msra.mxu0 %v8780_v33  ;;  %v8875_v32 = vld [vmem:[#allocation10 + $0x544] ss:$16 sps:$4 sm:$0xff]   ;;  %v8878_v33 = vld [vmem:[#allocation10 + $0x54c] ss:$16 sps:$4 sm:$0xff]  }
 0x620   : > { %5450 = vmatprep.subr.bf16.mxu1 %v8785_v59  ;;  %5579 = vmatprep.subr.bf16.mxu0 %v8788_v35  ;;  %v8873_v59 = vld [vmem:[#allocation10 + $0x540] ss:$16 sps:$4 sm:$0xff]   ;;  %v8876_v35 = vld [vmem:[#allocation10 + $0x548] ss:$16 sps:$4 sm:$0xff]  }
 0x623   : > { %5451 = vmatpush1.bf16.msra.mxu1 %v8783_v37  ;;  %5580 = vmatpush1.bf16.msra.mxu0 %v8786_v38  ;;  %v8881_v37 = vld [vmem:[#allocation10 + $0x564] ss:$16 sps:$4 sm:$0xff]   ;;  %v8884_v38 = vld [vmem:[#allocation10 + $0x56c] ss:$16 sps:$4 sm:$0xff]  }
 0x624   : > { %5452 = vmatprep.subr.bf16.mxu1 %v8791_v43  ;;  %5581 = vmatprep.subr.bf16.mxu0 %v8794_v39  ;;  %v8879_v43 = vld [vmem:[#allocation10 + $0x560] ss:$16 sps:$4 sm:$0xff]   ;;  %v8882_v39 = vld [vmem:[#allocation10 + $0x568] ss:$16 sps:$4 sm:$0xff]  }
 0x627   : > { %5453 = vmatpush1.bf16.msra.mxu1 %v8789_v8  ;;  %5582 = vmatpush1.bf16.msra.mxu0 %v8792_v42  ;;  %v8887_v8 = vld [vmem:[#allocation10 + $0x584] ss:$16 sps:$4 sm:$0xff]   ;;  %v8890_v42 = vld [vmem:[#allocation10 + $0x58c] ss:$16 sps:$4 sm:$0xff]  }
 0x628   : > { %5454 = vmatprep.subr.bf16.mxu1 %v8797_v41  ;;  %5583 = vmatprep.subr.bf16.mxu0 %v8800_v44  ;;  %v8885_v41 = vld [vmem:[#allocation10 + $0x580] ss:$16 sps:$4 sm:$0xff]   ;;  %v8888_v44 = vld [vmem:[#allocation10 + $0x588] ss:$16 sps:$4 sm:$0xff]  }
 0x62b   : > { %5455 = vmatpush1.bf16.msra.mxu1 %v8795_v13  ;;  %5584 = vmatpush1.bf16.msra.mxu0 %v8798_v40  ;;  %v8893_v13 = vld [vmem:[#allocation10 + $0x5a4] ss:$16 sps:$4 sm:$0xff]   ;;  %v8896_v40 = vld [vmem:[#allocation10 + $0x5ac] ss:$16 sps:$4 sm:$0xff]  }
 0x62c   : > { %5456 = vmatprep.subr.bf16.mxu1 %v8803_v12  ;;  %5585 = vmatprep.subr.bf16.mxu0 %v8806_v46  ;;  %v8891_v12 = vld [vmem:[#allocation10 + $0x5a0] ss:$16 sps:$4 sm:$0xff]   ;;  %v8894_v46 = vld [vmem:[#allocation10 + $0x5a8] ss:$16 sps:$4 sm:$0xff]  }
 0x62f   : > { %5457 = vmatpush1.bf16.msra.mxu1 %v8801_v47  ;;  %5586 = vmatpush1.bf16.msra.mxu0 %v8804_v48  ;;  %v8899_v47 = vld [vmem:[#allocation10 + $0x5c4] ss:$16 sps:$4 sm:$0xff]   ;;  %v8902_v48 = vld [vmem:[#allocation10 + $0x5cc] ss:$16 sps:$4 sm:$0xff]  }
 0x630   : > { %5458 = vmatprep.subr.bf16.mxu1 %v8809_v50  ;;  %5587 = vmatprep.subr.bf16.mxu0 %v8812_v17  ;;  %v8897_v50 = vld [vmem:[#allocation10 + $0x5c0] ss:$16 sps:$4 sm:$0xff]   ;;  %v8900_v17 = vld [vmem:[#allocation10 + $0x5c8] ss:$16 sps:$4 sm:$0xff]  }
 0x633   : > { %5459 = vmatpush1.bf16.msra.mxu1 %v8807_v7  ;;  %5588 = vmatpush1.bf16.msra.mxu0 %v8810_v54  ;;  %v8905_v7 = vld [vmem:[#allocation10 + $0x5e4] ss:$16 sps:$4 sm:$0xff]   ;;  %v8908_v54 = vld [vmem:[#allocation10 + $0x5ec] ss:$16 sps:$4 sm:$0xff]  }
 0x634   : > { %5471 = vmatprep.subr.bf16.mxu1 %v8815_v51  ;;  %5600 = vmatprep.subr.bf16.mxu0 %v8818_v29  ;;  %v8903_v51 = vld [vmem:[#allocation10 + $0x5e0] ss:$16 sps:$4 sm:$0xff]   ;;  %v8906_v29 = vld [vmem:[#allocation10 + $0x5e8] ss:$16 sps:$4 sm:$0xff]  }
 0x636   : > { %5461 = vmatmul.mubr.bf16.vlgmr.msra.gmra.mrb[48].mxu1 %v10307_v28  ;;  %5590 = vmatmul.mubr.bf16.vlgmr.msra.gmra.mrb[12].mxu0 %v10307_v28  ;;  %v8836_v28 = vld [vmem:[#allocation10 + $0x46c] ss:$16 sps:$4 sm:$0xff]  }
 0x637   : > { %5472 = vmatpush1.bf16.msra.mxu1 %v8813_v58  ;;  %5503 = vmatprep.mubr.bf16.mxu1 %v10299_v36  ;;  %v10316_v58 = vld [vmem:[%s10713_s12 + $0x40] sm:$0xff]  }
 0x638   : > { %5601 = vmatpush1.bf16.msra.mxu0 %v8816_v14  ;;  %5632 = vmatprep.mubr.bf16.mxu0 %v10299_v36  ;;  %v8842_v36 = vld [vmem:[#allocation10 + $0x48c] ss:$16 sps:$4 sm:$0xff]  }
 0x639   : > { %5473 = vmatprep.subr.bf16.mxu1 %v8821_v16  ;;  %5602 = vmatprep.subr.bf16.mxu0 %v8824_v25  ;;  %v10321_v14 = vld [vmem:[%s10713_s12 + $0xc0] sm:$0xff]  }
 0x63a   : > { %v10326_v16 = vld [vmem:[%s10713_s12] sm:$0xff]  }
 0x63b   : > { %5474 = vmatpush1.bf16.msra.mxu1 %v8819_v60  ;;  %v10332_v25 = vld [vmem:[%s10713_s12 + $0x80] sm:$0xff]   ;;  %v10337_v60 = vld [vmem:[%s10713_s12 + $0x48] sm:$0xff]  }
 0x63c   : > { %5603 = vmatpush1.bf16.msra.mxu0 %v8822_v62  ;;  %5475 = vmatprep.subr.bf16.mxu1 %v8827_v6  ;;  %v10343_v62 = vld [vmem:[%s10713_s12 + $0xc8] sm:$0xff]  }
 0x63d   : > { %5604 = vmatprep.subr.bf16.mxu0 %v8830_v15  ;;  %v10351_v6 = vld [vmem:[%s10713_s12 + $0x8] sm:$0xff]  }
 0x63e   : > { %v10358_v15 = vld [vmem:[%s10713_s12 + $0x88] sm:$0xff]  }
 0x63f   : > { %5476 = vmatpush1.bf16.msra.mxu1 %v8825_v23  ;;  %v10369_v23 = vld [vmem:[%s10713_s12 + $0xd0] sm:$0xff]  }
 0x640   : > { %5605 = vmatpush1.bf16.msra.mxu0 %v8828_v18  ;;  %5477 = vmatprep.subr.bf16.mxu1 %v8833_v10  ;;  %v10375_v18 = vld [vmem:[%s10713_s12 + $0x10] sm:$0xff]  }
 0x641   : > { %5606 = vmatprep.subr.bf16.mxu0 %v8836_v28  ;;  %v10382_v10 = vld [vmem:[%s10713_s12 + $0x90] sm:$0xff]   ;;  %v10387_v28 = vld [vmem:[%s10713_s12 + $0x58] sm:$0xff]  }
 0x643   : > { %5478 = vmatpush1.bf16.msra.mxu1 %v8831_v49  ;;  %v10393_v49 = vld [vmem:[%s10713_s12 + $0xd8] sm:$0xff]  }
 0x644   : > { %5607 = vmatpush1.bf16.msra.mxu0 %v8834_v21  ;;  %5479 = vmatprep.subr.bf16.mxu1 %v8839_v24  ;;  %v10399_v21 = vld [vmem:[%s10713_s12 + $0x18] sm:$0xff]  }
 0x645   : > { %5608 = vmatprep.subr.bf16.mxu0 %v8842_v36  ;;  %v10406_v24 = vld [vmem:[%s10713_s12 + $0x98] sm:$0xff]   ;;  %v10411_v36 = vld [vmem:[%s10713_s12 + $0x60] sm:$0xff]  }
 0x647   : > { %5480 = vmatpush1.bf16.msra.mxu1 %v8837_v56  ;;  %v10417_v56 = vld [vmem:[%s10713_s12 + $0xe0] sm:$0xff]  }
 0x648   : > { %5609 = vmatpush1.bf16.msra.mxu0 %v8840_v34  ;;  %5481 = vmatprep.subr.bf16.mxu1 %v8845_v20  ;;  %v10423_v34 = vld [vmem:[%s10713_s12 + $0x20] sm:$0xff]  }
 0x649   : > { %5610 = vmatprep.subr.bf16.mxu0 %v8848_v26  ;;  %v10430_v20 = vld [vmem:[%s10713_s12 + $0xa0] sm:$0xff]   ;;  %v10435_v26 = vld [vmem:[%s10713_s12 + $0x68] sm:$0xff]  }
 0x64b   : > { %5482 = vmatpush1.bf16.msra.mxu1 %v8843_v30  ;;  %v10441_v30 = vld [vmem:[%s10713_s12 + $0xe8] sm:$0xff]  }
 0x64c   : > { %5611 = vmatpush1.bf16.msra.mxu0 %v8846_v1  ;;  %5483 = vmatprep.subr.bf16.mxu1 %v8851_v2  ;;  %v10450_v1 = vld [vmem:[%s10713_s12 + $0x28] sm:$0xff]  }
 0x64d   : > { %5612 = vmatprep.subr.bf16.mxu0 %v8854_v5  ;;  %v10455_v2 = vld [vmem:[%s10713_s12 + $0xa8] sm:$0xff]   ;;  %v10462_v5 = vld [vmem:[%s10713_s12 + $0x70] sm:$0xff]  }
 0x64f   : > { %5484 = vmatpush1.bf16.msra.mxu1 %v8849_v9  ;;  %v10467_v9 = vld [vmem:[%s10713_s12 + $0xf0] sm:$0xff]  }
 0x650   : > { %5613 = vmatpush1.bf16.msra.mxu0 %v8852_v11  ;;  %5485 = vmatprep.subr.bf16.mxu1 %v8857_v45  ;;  %v10472_v11 = vld [vmem:[%s10713_s12 + $0x30] sm:$0xff]  }
 0x651   : > { %5614 = vmatprep.subr.bf16.mxu0 %v8860_v0  ;;  %v10477_v45 = vld [vmem:[%s10713_s12 + $0xb0] sm:$0xff]   ;;  %v10486_v0 = vld [vmem:[%s10713_s12 + $0x78] sm:$0xff]  }
 0x653   : > { %5486 = vmatpush1.bf16.msra.mxu1 %v8855_v19  ;;  %v10491_v19 = vld [vmem:[%s10713_s12 + $0xf8] sm:$0xff]  }
 0x654   : > { %5615 = vmatpush1.bf16.msra.mxu0 %v8858_v53  ;;  %5487 = vmatprep.subr.bf16.mxu1 %v8863_v57  ;;  %v10496_v53 = vld [vmem:[%s10713_s12 + $0x38] sm:$0xff]  }
 0x655   : > { %5616 = vmatprep.subr.bf16.mxu0 %v8866_v61  ;;  %v10501_v57 = vld [vmem:[%s10713_s12 + $0xb8] sm:$0xff]  }
 0x656   : > { %v4403_v61 = vld [vmem:[#allocation11] sm:$0xf] }
 0x657   : > { %5488 = vmatpush1.bf16.msra.mxu1 %v8861_v3  ;;  %v10714_v3 = vld [vmem:[#allocation24_spill] sm:$0xff] }
 0x658   : > { %5617 = vmatpush1.bf16.msra.mxu0 %v8864_v4  ;;  %5489 = vmatprep.subr.bf16.mxu1 %v8869_v52  ;;  %v10715_v4 = vsub.s32 0, %v10714_v3 }
 0x659   : > { %5618 = vmatprep.subr.bf16.mxu0 %v8872_v27  ;;  %v10716_v27 = vsub.s32 1, %v10714_v3 }
 0x65a   : > { %v4408_v52 = vrot.slane %v4403_v61, %v10715_v4 }
 0x65b   : > { %5490 = vmatpush1.bf16.msra.mxu1 %v8867_v31  ;;  %v4412_v31 = vrot.slane %v4403_v61, %v10716_v27 }
 0x65c   : > { %5619 = vmatpush1.bf16.msra.mxu0 %v8870_v55  ;;  %5491 = vmatprep.subr.bf16.mxu1 %v8875_v32  ;;  %v10717_v55 = vsub.s32 2, %v10714_v3 }
 0x65d   : > { %5620 = vmatprep.subr.bf16.mxu0 %v8878_v33  ;;  %v10718_v33 = vsub.s32 3, %v10714_v3 }
 0x65e   : > { %v4416_v32 = vrot.slane %v4403_v61, %v10717_v55 }
 0x65f   : > { %5492 = vmatpush1.bf16.msra.mxu1 %v8873_v59  ;;  %v4420_v59 = vrot.slane %v4403_v61, %v10718_v33 }
 0x660   : > { %5621 = vmatpush1.bf16.msra.mxu0 %v8876_v35  ;;  %5493 = vmatprep.subr.bf16.mxu1 %v8881_v37 }
 0x661   : > { %5622 = vmatprep.subr.bf16.mxu0 %v8884_v38 }
 0x663   : > { %5494 = vmatpush1.bf16.msra.mxu1 %v8879_v43 }
 0x664   : > { %5623 = vmatpush1.bf16.msra.mxu0 %v8882_v39  ;;  %5495 = vmatprep.subr.bf16.mxu1 %v8887_v8 }
 0x665   : > { %5624 = vmatprep.subr.bf16.mxu0 %v8890_v42 }
 0x667   : > { %5496 = vmatpush1.bf16.msra.mxu1 %v8885_v41 }
 0x668   : > { %5625 = vmatpush1.bf16.msra.mxu0 %v8888_v44  ;;  %5497 = vmatprep.subr.bf16.mxu1 %v8893_v13 }
 0x669   : > { %5626 = vmatprep.subr.bf16.mxu0 %v8896_v40 }
 0x66b   : > { %5498 = vmatpush1.bf16.msra.mxu1 %v8891_v12 }
 0x66c   : > { %5627 = vmatpush1.bf16.msra.mxu0 %v8894_v46  ;;  %5499 = vmatprep.subr.bf16.mxu1 %v8899_v47 }
 0x66d   : > { %5628 = vmatprep.subr.bf16.mxu0 %v8902_v48 }
 0x66f   : > { %5500 = vmatpush1.bf16.msra.mxu1 %v8897_v50 }
 0x670   : > { %5629 = vmatpush1.bf16.msra.mxu0 %v8900_v17  ;;  %5501 = vmatprep.subr.bf16.mxu1 %v8905_v7 }
 0x671   : > { %5630 = vmatprep.subr.bf16.mxu0 %v8908_v54 }
 0x673   : > { %5502 = vmatpush1.bf16.msra.mxu1 %v8903_v51 }
 0x674   : > { %5631 = vmatpush1.bf16.msra.mxu0 %v8906_v29  ;;  %7715 = vmatprep.subr.bf16.mxu1 %v10316_v58 }
 0x675   : > { %7737 = vmatprep.subr.bf16.mxu0 %v10321_v14 }
 0x676   : > { %5504 = vmatmul.mubr.bf16.vlgmr.msra.gmra.mrb[48].mxu1 %v10296_v63 }
 0x677   : > { %5633 = vmatmul.mubr.bf16.vlgmr.msra.gmra.mrb[12].mxu0 %v10296_v63  ;;  %7716 = vmatpush3.bf16.msra.mxu1 %v10326_v16  ;;  %v10363_v63 = vld [vmem:[%s10713_s12 + $0x50] sm:$0xff]  }
 0x678   : > { %7738 = vmatpush3.bf16.msra.mxu0 %v10332_v25  ;;  %7717 = vmatprep.subr.bf16.mxu1 %v10337_v60 }
 0x679   : > { %7739 = vmatprep.subr.bf16.mxu0 %v10343_v62 }
 0x67b   : > { %7718 = vmatpush3.bf16.msra.mxu1 %v10351_v6 }
 0x67c   : > { %7740 = vmatpush3.bf16.msra.mxu0 %v10358_v15  ;;  %7719 = vmatprep.subr.bf16.mxu1 %v10363_v63 }
 0x67d   : > { %7741 = vmatprep.subr.bf16.mxu0 %v10369_v23 }
 0x67f   : > { %7720 = vmatpush3.bf16.msra.mxu1 %v10375_v18 }
 0x680   : > { %7742 = vmatpush3.bf16.msra.mxu0 %v10382_v10  ;;  %7721 = vmatprep.subr.bf16.mxu1 %v10387_v28 }
 0x681   : > { %7743 = vmatprep.subr.bf16.mxu0 %v10393_v49 }
 0x683   : > { %7722 = vmatpush3.bf16.msra.mxu1 %v10399_v21 }
 0x684   : > { %7744 = vmatpush3.bf16.msra.mxu0 %v10406_v24  ;;  %7723 = vmatprep.subr.bf16.mxu1 %v10411_v36 }
 0x685   : > { %7745 = vmatprep.subr.bf16.mxu0 %v10417_v56 }
 0x687   : > { %7724 = vmatpush3.bf16.msra.mxu1 %v10423_v34 }
 0x688   : > { %7746 = vmatpush3.bf16.msra.mxu0 %v10430_v20  ;;  %7725 = vmatprep.subr.bf16.mxu1 %v10435_v26 }
 0x689   : > { %7747 = vmatprep.subr.bf16.mxu0 %v10441_v30 }
 0x68b   : > { %7726 = vmatpush3.bf16.msra.mxu1 %v10450_v1 }
 0x68c   : > { %7748 = vmatpush3.bf16.msra.mxu0 %v10455_v2  ;;  %7727 = vmatprep.subr.bf16.mxu1 %v10462_v5 }
 0x68d   : > { %7749 = vmatprep.subr.bf16.mxu0 %v10467_v9 }
 0x68f   : > { %7728 = vmatpush3.bf16.msra.mxu1 %v10472_v11 }
 0x690   : > { %7750 = vmatpush3.bf16.msra.mxu0 %v10477_v45  ;;  %7729 = vmatprep.subr.bf16.mxu1 %v10486_v0 }
 0x691   : > { %7751 = vmatprep.subr.bf16.mxu0 %v10491_v19 }
 0x693   : > { %7730 = vmatpush3.bf16.msra.mxu1 %v10496_v53 }
 0x694   : > { %7752 = vmatpush3.bf16.msra.mxu0 %v10501_v57  ;;  %7759 = vmatprep.subr.bf16.mxu1 %v10316_v58 }
 0x695   : > { %7781 = vmatprep.subr.bf16.mxu0 %v10321_v14 }
 0x749   : > { %v5505_v35 = vpop.f32.mrb[48].mxu1 }
 0x74a   : > { %v5634_v37 = vpop.f32.mrb[12].mxu0  ;;  %v5507_v38 = vpop.f32.mrb[49].mxu1  ;;  %v7859_v43 = vadd.f32 %v5505_v35, %v4408_v52 }
 0x74b   : > { %v7860_v39 = vadd.f32 %v5507_v38, %v4412_v31  ;;  %v5636_v8 = vpop.f32.mrb[13].mxu0  ;;  %v5509_v42 = vpop.f32.mrb[50].mxu1  ;;  %v7863_v41 = vadd.f32 %v5634_v37, %v4416_v32 }
 0x74c   : > { %v7864_v44 = vadd.f32 %v5636_v8, %v4420_v59  ;;  %v7861_v13 = vadd.f32 %v5509_v42, %v4408_v52  ;;  %v5638_v40 = vpop.f32.mrb[14].mxu0  ;;  %v5511_v12 = vpop.f32.mrb[51].mxu1  ;;  %v5651_v50 = vmul.f32 0.01, %v7859_v43  ;;  %vm5643_vm2 = vcmp.gt.f32.partialorder %v7859_v43, 0.0 }
 0x74d   : > { %v5652_v46 = vmul.f32 0.01, %v7860_v39  ;;  %v5640_v48 = vpop.f32.mrb[15].mxu0  ;;  %vm5644_vm0 = vcmp.gt.f32.partialorder %v7860_v39, 0.0  ;;  %v5653_v17 = vmul.f32 0.01, %v7863_v41  ;;  %v7865_v54 = vadd.f32 %v5638_v40, %v4416_v32 }
 0x74e   : > { %v5654_v47 = vmul.f32 0.01, %v7864_v44  ;;  %vm5646_vm1 = vcmp.gt.f32.partialorder %v7864_v44, 0.0  ;;  %v5655_v7 = vmul.f32 0.01, %v7861_v13  ;;  %v7862_v51 = vadd.f32 %v5511_v12, %v4412_v31 }
 0x74f   : > { %vm5645_vm3 = vcmp.gt.f32.partialorder %v7863_v41, 0.0  ;;  %vm5647_vm4 = vcmp.gt.f32.partialorder %v7861_v13, 0.0  ;;  %v7866_v29 = vadd.f32 %v5640_v48, %v4420_v59  ;;  %v10517_v58 = vsel %vm5644_vm0, %v7860_v39, %v5652_v46 }
 0x750   : > { %v10519_v14 = vsel %vm5646_vm1, %v7864_v44, %v5654_v47  ;;  %vm5649_vm5 = vcmp.gt.f32.partialorder %v7865_v54, 0.0  ;;  %v5657_v61 = vmul.f32 0.01, %v7865_v54  ;;  %vm5648_vm6 = vcmp.gt.f32.partialorder %v7862_v51, 0.0 }
 0x751   : > { %v5656_v3 = vmul.f32 0.01, %v7862_v51  ;;  %vm5650_vm7 = vcmp.gt.f32.partialorder %v7866_v29, 0.0  ;;  %v5658_v4 = vmul.f32 0.01, %v7866_v29  ;;  %v10521_v52 = vsel %vm5643_vm2, %v7859_v43, %v5651_v50 }
 0x752   : > { %v10523_v27 = vsel %vm5645_vm3, %v7863_v41, %v5653_v17  ;;  %v10525_v55 = vsel %vm5647_vm4, %v7861_v13, %v5655_v7  ;;  %v10527_v31 = vsel %vm5649_vm5, %v7865_v54, %v5657_v61  ;;  %v5736_v59 = vmul.f32 %v10517_v58, %v10517_v58 }
 0x753   : > { %v10529_v32 = vsel %vm5648_vm6, %v7862_v51, %v5656_v3  ;;  %v10531_v33 = vsel %vm5650_vm7, %v7866_v29, %v5658_v4  ;;  %v5738_v35 = vmul.f32 %v10519_v14, %v10519_v14  ;;  %v5731_v8 = vpack.c.bf16 %v10525_v55, %v10521_v52 }
 0x754   : > { %v5732_v37 = vpack.c.bf16 %v10529_v32, %v10517_v58  ;;  %v5734_v38 = vpack.c.bf16 %v10531_v33, %v10519_v14  ;;  %v5740_v43 = vmul.f32 %v10529_v32, %v10529_v32  ;;  %v5742_v39 = vmul.f32 %v10531_v33, %v10531_v33 }
 0x755   : > { %v5733_v42 = vpack.c.bf16 %v10527_v31, %v10523_v27 }
 0x756   : > { %5971 = vmatprep.mubr.bf16.mxu1 %v5732_v37  ;;  %6012 = vmatprep.mubr.bf16.mxu0 %v5734_v38  ;;  %v5744_v41 = vpack.c.bf16 %v5740_v43, %v5736_v59  ;;  %v5746_v44 = vpack.c.bf16 %v5742_v39, %v5738_v35 }
 0x757   : > { %5972 = vmatmul.mubr.bf16.vlgmr.msra.gmra.mrb[52].mxu1 %v5731_v8  ;;  %6013 = vmatmul.mubr.bf16.vlgmr.msra.gmra.mrb[16].mxu0 %v5733_v42 }
 0x758   : > { %7760 = vmatpush3.bf16.msra.mxu1 %v10326_v16  ;;  %7782 = vmatpush3.bf16.msra.mxu0 %v10332_v25  ;;  %v5739_v16 = vmul.f32 %v10525_v55, %v10525_v55  ;;  %v5741_v25 = vmul.f32 %v10527_v31, %v10527_v31 }
 0x759   : > { %6053 = vmatprep.mubr.bf16.mxu1 %v5744_v41  ;;  %6094 = vmatprep.mubr.bf16.mxu0 %v5746_v44 }
 0x75a   : > { %7761 = vmatprep.subr.bf16.mxu1 %v10337_v60  ;;  %7783 = vmatprep.subr.bf16.mxu0 %v10343_v62  ;;  %v5735_v60 = vmul.f32 %v10521_v52, %v10521_v52  ;;  %v5737_v62 = vmul.f32 %v10523_v27, %v10523_v27 }
 0x75c   : > { %7762 = vmatpush3.bf16.msra.mxu1 %v10351_v6  ;;  %7784 = vmatpush3.bf16.msra.mxu0 %v10358_v15  ;;  %v5743_v6 = vpack.c.bf16 %v5739_v16, %v5735_v60  ;;  %v5745_v15 = vpack.c.bf16 %v5741_v25, %v5737_v62  ;;  %v8947_v60 = vld [vmem:[#allocation14 + $0x40] sm:$0xff]  }
 0x75d   : > { %7763 = vmatprep.subr.bf16.mxu1 %v10363_v63  ;;  %7785 = vmatprep.subr.bf16.mxu0 %v10369_v23  ;;  %v10589_v63 = vld [vmem:[#allocation13] ss:$16 sps:$4 sm:$0xff]   ;;  %v8943_v23 = vld [vmem:[#allocation13 + $0x4] ss:$16 sps:$4 sm:$0xff]  }
 0x75e   : > { %v8948_v62 = vld [vmem:[#allocation14 + $0xc0] sm:$0xff]  }
 0x760   : > { %7764 = vmatpush3.bf16.msra.mxu1 %v10375_v18  ;;  %7786 = vmatpush3.bf16.msra.mxu0 %v10382_v10  ;;  %v10591_v18 = vld [vmem:[#allocation13 + $0x8] ss:$16 sps:$4 sm:$0xff]   ;;  %v8946_v10 = vld [vmem:[#allocation13 + $0xc] ss:$16 sps:$4 sm:$0xff]  }
 0x761   : > { %7765 = vmatprep.subr.bf16.mxu1 %v10387_v28  ;;  %7787 = vmatprep.subr.bf16.mxu0 %v10393_v49 }
 0x764   : > { %7766 = vmatpush3.bf16.msra.mxu1 %v10399_v21  ;;  %7788 = vmatpush3.bf16.msra.mxu0 %v10406_v24 }
 0x765   : > { %7767 = vmatprep.subr.bf16.mxu1 %v10411_v36  ;;  %7789 = vmatprep.subr.bf16.mxu0 %v10417_v56 }
 0x768   : > { %7768 = vmatpush3.bf16.msra.mxu1 %v10423_v34  ;;  %7790 = vmatpush3.bf16.msra.mxu0 %v10430_v20 }
 0x769   : > { %7769 = vmatprep.subr.bf16.mxu1 %v10435_v26  ;;  %7791 = vmatprep.subr.bf16.mxu0 %v10441_v30 }
 0x76c   : > { %7770 = vmatpush3.bf16.msra.mxu1 %v10450_v1  ;;  %7792 = vmatpush3.bf16.msra.mxu0 %v10455_v2 }
 0x76d   : > { %7771 = vmatprep.subr.bf16.mxu1 %v10462_v5  ;;  %7793 = vmatprep.subr.bf16.mxu0 %v10467_v9 }
 0x770   : > { %7772 = vmatpush3.bf16.msra.mxu1 %v10472_v11  ;;  %7794 = vmatpush3.bf16.msra.mxu0 %v10477_v45 }
 0x771   : > { %7773 = vmatprep.subr.bf16.mxu1 %v10486_v0  ;;  %7795 = vmatprep.subr.bf16.mxu0 %v10491_v19 }
 0x774   : > { %7774 = vmatpush3.bf16.msra.mxu1 %v10496_v53  ;;  %7796 = vmatpush3.bf16.msra.mxu0 %v10501_v57 }
 0x775   : > { %6150 = vmatprep.subr.bf16.mxu1 %v8943_v23  ;;  %6193 = vmatprep.subr.bf16.mxu0 %v8946_v10 }
 0x777   : > { %6054 = vmatmul.mubr.bf16.vlgmr.msra.gmra.mrb[56].mxu1 %v5743_v6  ;;  %6095 = vmatmul.mubr.bf16.vlgmr.msra.gmra.mrb[20].mxu0 %v5745_v15  ;;  %v8949_v15 = vld [vmem:[#allocation14] sm:$0xff]  }
 0x778   : > { %6182 = vmatprep.mubr.bf16.mxu1 %v9354_v22  ;;  %6225 = vmatprep.mubr.bf16.mxu0 %v9354_v22 }
 0x779   : > { %6151 = vmatpush1.bf16.msra.mxu1 %v10589_v63  ;;  %6194 = vmatpush1.bf16.msra.mxu0 %v10591_v18 }
 0x77a   : > { %6240 = vmatprep.subr.bf16.mxu1 %v8943_v23  ;;  %6283 = vmatprep.subr.bf16.mxu0 %v8946_v10  ;;  %v8950_v23 = vld [vmem:[#allocation14 + $0x80] sm:$0xff]   ;;  %v8951_v10 = vld [vmem:[#allocation14 + $0x48] sm:$0xff]  }
 0x82a   : > { %v7731_v28 = vpop.f32.mrb[52].mxu1  ;;  %v7753_v49 = vpop.f32.mrb[16].mxu0 }
 0x82b   : > { %v7732_v21 = vpop.f32.mrb[53].mxu1  ;;  %v7754_v24 = vpop.f32.mrb[17].mxu0 }
 0x82c   : > { %v7733_v36 = vadd.f32 %v7732_v21, %v7731_v28  ;;  %v7755_v56 = vadd.f32 %v7754_v24, %v7753_v49  ;;  %v7734_v34 = vpop.f32.mrb[54].mxu1  ;;  %v7756_v20 = vpop.f32.mrb[18].mxu0  ;;  %v8952_v28 = vld [vmem:[#allocation14 + $0xc8] sm:$0xff]   ;;  %v8956_v21 = vld [vmem:[#allocation14 + $0xd0] sm:$0xff]  }
 0x82d   : > { %v7735_v26 = vpop.f32.mrb[55].mxu1  ;;  %v7757_v30 = vpop.f32.mrb[19].mxu0  ;;  %v8953_v49 = vld [vmem:[#allocation14 + $0x8] sm:$0xff]   ;;  %v8958_v24 = vld [vmem:[#allocation14 + $0x90] sm:$0xff]  }
 0x82e   : > { %v6015_v1 = vadd.f32 %v7755_v56, %v7733_v36  ;;  %v7736_v2 = vadd.f32 %v7735_v26, %v7734_v34  ;;  %v7758_v5 = vadd.f32 %v7757_v30, %v7756_v20  ;;  %v8959_v36 = vld [vmem:[#allocation14 + $0x58] sm:$0xff]   ;;  %v8963_v26 = vld [vmem:[#allocation14 + $0x60] sm:$0xff]  }
 0x82f   : > { %v8960_v56 = vld [vmem:[#allocation14 + $0xd8] sm:$0xff]   ;;  %v8964_v30 = vld [vmem:[#allocation14 + $0xe0] sm:$0xff]  }
 0x830   : > { %v6018_v9 = vadd.f32 %v7758_v5, %v7736_v2  ;;  %v6103_v53 = vmul.f32 0.04, %v6015_v1  ;;  %v8961_v34 = vld [vmem:[#allocation14 + $0x18] sm:$0xff]   ;;  %v8965_v1 = vld [vmem:[#allocation14 + $0x20] sm:$0xff]   ;;  %v8967_v5 = vld [vmem:[#allocation14 + $0x68] sm:$0xff]  }
 0x831   : > { %v8962_v20 = vld [vmem:[#allocation14 + $0x98] sm:$0xff]   ;;  %v8966_v2 = vld [vmem:[#allocation14 + $0xa0] sm:$0xff]  }
 0x832   : > { %v6104_v48 = vmul.f32 0.04, %v6018_v9  ;;  %v6107_v54 = vmul.f32 %v6103_v53, %v6103_v53  ;;  %v6117_v39 = vsub.f32 0.0, %v6103_v53  ;;  %v8968_v9 = vld [vmem:[#allocation14 + $0xe8] sm:$0xff]   ;;  %v8973_v53 = vld [vmem:[#allocation14 + $0x30] sm:$0xff]  }
 0x834   : > { %v6108_v61 = vmul.f32 %v6104_v48, %v6104_v48  ;;  %v6118_v42 = vsub.f32 0.0, %v6104_v48 }
 0x84a   : > { %v7775_v11 = vpop.f32.mrb[56].mxu1  ;;  %v7797_v45 = vpop.f32.mrb[20].mxu0 }
 0x84b   : > { %v7776_v0 = vpop.f32.mrb[57].mxu1  ;;  %v7798_v19 = vpop.f32.mrb[21].mxu0 }
 0x84c   : > { %v7777_v57 = vadd.f32 %v7776_v0, %v7775_v11  ;;  %v7799_v13 = vadd.f32 %v7798_v19, %v7797_v45  ;;  %v7778_v40 = vpop.f32.mrb[58].mxu1  ;;  %v7800_v12 = vpop.f32.mrb[22].mxu0  ;;  %v8969_v11 = vld [vmem:[#allocation14 + $0x28] sm:$0xff]   ;;  %v8971_v0 = vld [vmem:[#allocation14 + $0x70] sm:$0xff]  }
 0x84d   : > { %v7779_v46 = vpop.f32.mrb[59].mxu1  ;;  %v7801_v47 = vpop.f32.mrb[23].mxu0  ;;  %v8970_v45 = vld [vmem:[#allocation14 + $0xa8] sm:$0xff]   ;;  %v8972_v19 = vld [vmem:[#allocation14 + $0xf0] sm:$0xff]  }
 0x84e   : > { %v6097_v50 = vadd.f32 %v7799_v13, %v7777_v57  ;;  %v7780_v17 = vadd.f32 %v7779_v46, %v7778_v40  ;;  %v7802_v7 = vadd.f32 %v7801_v47, %v7800_v12  ;;  %v8974_v57 = vld [vmem:[#allocation14 + $0xb0] sm:$0xff]   ;;  %v8975_v13 = vld [vmem:[#allocation14 + $0x78] sm:$0xff]  }
 0x84f   : > { %v8976_v40 = vld [vmem:[#allocation14 + $0xf8] sm:$0xff]  }
 0x850   : > { %v6105_v51 = vmul.f32 0.04, %v6097_v50  ;;  %v6100_v29 = vadd.f32 %v7802_v7, %v7780_v17  ;;  %v8977_v12 = vld [vmem:[#allocation14 + $0x38] sm:$0xff]  }
 0x851   : > { %v8978_v46 = vld [vmem:[#allocation14 + $0xb8] sm:$0xff]  }
 0x852   : > { %v6109_v3 = vsub.f32 %v6105_v51, %v6107_v54  ;;  %v6106_v4 = vmul.f32 0.04, %v6100_v29 }
 0x854   : > { %v6111_v59 = vmax.f32 %v6109_v3, 0.0  ;;  %v6110_v35 = vsub.f32 %v6106_v4, %v6108_v61 }
 0x856   : > { %v6113_v37 = vadd.f32 1e-05, %v6111_v59  ;;  %v6112_v38 = vmax.f32 %v6110_v35, 0.0 }
 0x858   : > { %8983 = vrsqrt.f32 %v6113_v37  ;;  %v6114_v43 = vadd.f32 1e-05, %v6112_v38 }
 0x85a   : > { %8985 = vrsqrt.f32 %v6114_v43 }
 0x862   : > { %v8984_v8 = vpop.eup %8983 }
 0x863   : > { %v6119_v41 = vmul.f32 %v8984_v8, %v6117_v39 }
 0x864   : > { %v8986_v44 = vpop.eup %8985 }
 0x865   : > { %v6125_v16 = vpack.c.bf16 %v8986_v44, %v8984_v8  ;;  %v6120_v25 = vmul.f32 %v8986_v44, %v6118_v42 }
 0x867   : > { %7538 = vmatmul.mubr.msk.bf16.vlgmr.msra.gmra.mrb[60].mxu1 %vm6146_vm8, %v6125_v16  ;;  %7539 = vmatmul.mubr.msk.bf16.vlgmr.msra.gmra.mrb[24].mxu0 %vm6146_vm8, %v6125_v16  ;;  %v6236_v6 = vpack.c.bf16 %v6120_v25, %v6119_v41 }
 0x868   : > { %6241 = vmatpush1.bf16.msra.mxu1 %v10589_v63  ;;  %6284 = vmatpush1.bf16.msra.mxu0 %v10591_v18  ;;  %v8954_v63 = vld [vmem:[#allocation14 + $0x88] sm:$0xff]   ;;  %v8955_v18 = vld [vmem:[#allocation14 + $0x50] sm:$0xff]  }
 0x869   : > { %6272 = vmatprep.mubr.bf16.mxu1 %v9354_v22  ;;  %6315 = vmatprep.mubr.bf16.mxu0 %v9354_v22  ;;  %v8957_v22 = vld [vmem:[#allocation14 + $0x10] sm:$0xff]  }
 0x86a   : > { %7803 = vmatprep.subr.bf16.mxu1 %v8947_v60  ;;  %7825 = vmatprep.subr.bf16.mxu0 %v8948_v62 }
 0x86f   : > { %7540 = vmatmul.mubr.msk.bf16.vlgmr.msra.gmra.mrb[64].mxu1 %vm6146_vm8, %v6236_v6  ;;  %7541 = vmatmul.mubr.msk.bf16.vlgmr.msra.gmra.mrb[28].mxu0 %vm6146_vm8, %v6236_v6 }
 0x870   : > { %7804 = vmatpush3.bf16.msra.mxu1 %v8949_v15  ;;  %7826 = vmatpush3.bf16.msra.mxu0 %v8950_v23 }
 0x871   : > { %7805 = vmatprep.subr.bf16.mxu1 %v8951_v10  ;;  %7827 = vmatprep.subr.bf16.mxu0 %v8952_v28 }
 0x874   : > { %7806 = vmatpush3.bf16.msra.mxu1 %v8953_v49  ;;  %7828 = vmatpush3.bf16.msra.mxu0 %v8954_v63  ;;  %v7542_v49 = vld [vmem:[#allocation16] ss:$0 sm:$0xff] }
 0x875   : > { %7807 = vmatprep.subr.bf16.mxu1 %v8955_v18  ;;  %7829 = vmatprep.subr.bf16.mxu0 %v8956_v21 }
 0x878   : > { %7808 = vmatpush3.bf16.msra.mxu1 %v8957_v22  ;;  %7830 = vmatpush3.bf16.msra.mxu0 %v8958_v24 }
 0x879   : > { %7809 = vmatprep.subr.bf16.mxu1 %v8959_v36  ;;  %7831 = vmatprep.subr.bf16.mxu0 %v8960_v56 }
 0x87c   : > { %7810 = vmatpush3.bf16.msra.mxu1 %v8961_v34  ;;  %7832 = vmatpush3.bf16.msra.mxu0 %v8962_v20 }
 0x87d   : > { %7811 = vmatprep.subr.bf16.mxu1 %v8963_v26  ;;  %7833 = vmatprep.subr.bf16.mxu0 %v8964_v30 }
 0x880   : > { %7812 = vmatpush3.bf16.msra.mxu1 %v8965_v1  ;;  %7834 = vmatpush3.bf16.msra.mxu0 %v8966_v2 }
 0x881   : > { %7813 = vmatprep.subr.bf16.mxu1 %v8967_v5  ;;  %7835 = vmatprep.subr.bf16.mxu0 %v8968_v9 }
 0x884   : > { %7814 = vmatpush3.bf16.msra.mxu1 %v8969_v11  ;;  %7836 = vmatpush3.bf16.msra.mxu0 %v8970_v45 }
 0x885   : > { %7815 = vmatprep.subr.bf16.mxu1 %v8971_v0  ;;  %7837 = vmatprep.subr.bf16.mxu0 %v8972_v19 }
 0x888   : > { %7816 = vmatpush3.bf16.msra.mxu1 %v8973_v53  ;;  %7838 = vmatpush3.bf16.msra.mxu0 %v8974_v57 }
 0x889   : > { %7817 = vmatprep.subr.bf16.mxu1 %v8975_v13  ;;  %7839 = vmatprep.subr.bf16.mxu0 %v8976_v40 }
 0x88c   : > { %7818 = vmatpush3.bf16.msra.mxu1 %v8977_v12  ;;  %7840 = vmatpush3.bf16.msra.mxu0 %v8978_v46 }
 0x93a   : > { %v6184_v47 = vpop.f32.mrb[60].mxu1  ;;  %v6227_v48 = vpop.f32.mrb[24].mxu0 }
 0x93b   : > { %v6186_v50 = vpop.f32.mrb[61].mxu1  ;;  %v6229_v17 = vpop.f32.mrb[25].mxu0  ;;  %v6326_v61 = vmul.f32 %v6184_v47, %v10521_v52  ;;  %v6328_v3 = vmul.f32 %v6227_v48, %v10523_v27 }
 0x93c   : > { %v6188_v7 = vpop.f32.mrb[62].mxu1  ;;  %v6231_v54 = vpop.f32.mrb[26].mxu0  ;;  %v6327_v4 = vmul.f32 %v6186_v50, %v10517_v58  ;;  %v6329_v59 = vmul.f32 %v6229_v17, %v10519_v14 }
 0x93d   : > { %v6190_v51 = vpop.f32.mrb[63].mxu1  ;;  %v6233_v29 = vpop.f32.mrb[27].mxu0  ;;  %v6330_v38 = vmul.f32 %v6188_v7, %v10525_v55  ;;  %v6332_v43 = vmul.f32 %v6231_v54, %v10527_v31 }
 0x93e   : > { %v6331_v44 = vmul.f32 %v6190_v51, %v10529_v32  ;;  %v6333_v52 = vmul.f32 %v6233_v29, %v10531_v33 }
 0x942   : > { %v6274_v35 = vpop.f32.mrb[64].mxu1  ;;  %v6317_v37 = vpop.f32.mrb[28].mxu0 }
 0x943   : > { %v6334_v39 = vadd.f32 %v6326_v61, %v6274_v35  ;;  %v6336_v8 = vadd.f32 %v6328_v3, %v6317_v37  ;;  %v6276_v42 = vpop.f32.mrb[65].mxu1  ;;  %v6319_v41 = vpop.f32.mrb[29].mxu0 }
 0x944   : > { %v6335_v16 = vadd.f32 %v6327_v4, %v6276_v42  ;;  %v6337_v27 = vadd.f32 %v6329_v59, %v6319_v41  ;;  %v6278_v25 = vpop.f32.mrb[66].mxu1  ;;  %v6321_v58 = vpop.f32.mrb[30].mxu0 }
 0x945   : > { %v6338_v60 = vadd.f32 %v6330_v38, %v6278_v25  ;;  %v6340_v14 = vadd.f32 %v6332_v43, %v6321_v58  ;;  %v6280_v62 = vpop.f32.mrb[67].mxu1  ;;  %v6323_v6 = vpop.f32.mrb[31].mxu0 }
 0x946   : > { %v6339_v55 = vadd.f32 %v6331_v44, %v6280_v62  ;;  %v6341_v15 = vadd.f32 %v6333_v52, %v6323_v6 }
 0x947   : > { %v6342_v31 = vpack.c.bf16 %v6338_v60, %v6334_v39  ;;  %v6344_v23 = vpack.c.bf16 %v6340_v14, %v6336_v8 }
 0x948   : > { %v6343_v10 = vpack.c.bf16 %v6339_v55, %v6335_v16  ;;  %v6345_v28 = vpack.c.bf16 %v6341_v15, %v6337_v27 }
 0x94a   : > { %6641 = vmatprep.mubr.bf16.mxu1 %v6343_v10  ;;  %6682 = vmatprep.mubr.bf16.mxu0 %v6345_v28 }
 0x94b   : > { %6642 = vmatmul.mubr.bf16.vlgmr.msra.gmra.mrb[68].mxu1 %v6342_v31  ;;  %6683 = vmatmul.mubr.bf16.vlgmr.msra.gmra.mrb[32].mxu0 %v6344_v23 }
 0xa1e   : > { %v7819_v32 = vpop.f32.mrb[68].mxu1  ;;  %v7841_v33 = vpop.f32.mrb[32].mxu0 }
 0xa1f   : > { %v7820_v63 = vpop.f32.mrb[69].mxu1  ;;  %v7842_v18 = vpop.f32.mrb[33].mxu0 }
 0xa20   : > { %v7821_v21 = vadd.f32 %v7820_v63, %v7819_v32  ;;  %v7843_v22 = vadd.f32 %v7842_v18, %v7841_v33  ;;  %v7822_v24 = vpop.f32.mrb[70].mxu1  ;;  %v7844_v36 = vpop.f32.mrb[34].mxu0 }
 0xa21   : > { %v7823_v56 = vpop.f32.mrb[71].mxu1  ;;  %v7845_v34 = vpop.f32.mrb[35].mxu0 }
 0xa22   : > { %v6644_v20 = vadd.f32 %v7821_v21, %v7542_v49  ;;  %v7824_v26 = vadd.f32 %v7823_v56, %v7822_v24  ;;  %v7846_v30 = vadd.f32 %v7845_v34, %v7844_v36 }
 0xa24   : > { %v6685_v1 = vadd.f32 %v7843_v22, %v6644_v20  ;;  %v6647_v2 = vadd.f32 %v7824_v26, %v7542_v49 }
 0xa26   : > { %vm6691_vm9 = vcmp.gt.f32.partialorder %v6685_v1, 0.0  ;;  %v6693_v5 = vmul.f32 0.01, %v6685_v1  ;;  %v6688_v9 = vadd.f32 %v7846_v30, %v6647_v2 }
 0xa28   : > { %v6695_v11 = vsel %vm6691_vm9, %v6685_v1, %v6693_v5  ;;  %vm6692_vm10 = vcmp.gt.f32.partialorder %v6688_v9, 0.0  ;;  %v6694_v45 = vmul.f32 0.01, %v6688_v9 }
 0xa29   : > { %6697 = vst [vmem:[%s513_s3] sm:$0xff] %v6695_v11 }
 0xa2a   : > { %v6696_v0 = vsel %vm6692_vm10, %v6688_v9, %v6694_v45 }
 0xa2b   : > { %6698 = vst [vmem:[%s513_s3 + $0x8] sm:$0xff] %v6696_v0 }
 0xa2c   : > { %9266 = shalt.err (!%p9263_p10)
}
 0xa2d   : > { %s9267_s3 = scalar_lea.hbm %s10618_s24, 256  ;;  %s9271_s21 = scalar_lea.hbm %s10719_s30, 1024 }
 0xa2e   : > { %p9268_p11 = scmp.ne.s32.totalorder %s10618_s24, %s9267_s3  ;;  %p9272_p6 = scmp.lt.u32.totalorder %s10618_s24, %s10719_s30 }
 0xa2f   : > { %p9273_p5 = scmp.lt.u32.totalorder %s9271_s21, %s9267_s3  ;;  %p9275_p12 = scmp.lt.u32.totalorder %s9267_s3, %s10618_s24 }
 0xa30   : > { %p9269_p3 = pnand %p9268_p11, %p10720_p1 }
 0xa31   : > { %p9274_p8 = por %p9273_p5, %p9272_p6 }
 0xa32   : > { %p9270_p4 = pneg %p9269_p3 }
 0xa33   : > { %p9276_p13 = por %p9275_p12, %p9274_p8 }
 0xa35   : > { %p9277_p0 = pnand %p9276_p13, %p9270_p4 }
 0xa37   : > { %9280 = shalt.err (!%p9277_p0)
}
 0xa38   : > { %s9356_s0 = smov 128   ;;  %s9357_s27 = smov 8  }
 0xa39   : > { %7953 = dma.vmem_to_hbm [thread:$0]  (%p10720_p1), %s10613_s25, 256, %s10618_s24, %s6700_s23, %s9356_s0, %s9356_s0, %s9357_s27  }
 0xa3a PF: > { %p8005_p2 = scmp.ge.s32.totalorder %s9335_s20, 2  ;;  %s6728_s14 = sand.u32 1, %s9323_s17  }
 0xa3b   : > { %p10721_p7 = scmp.ne.s32.totalorder %s10697_s7, 0  ;;  %s6729_s3 = scalar_lea.sflag [#allocation4], %s6728_s14 }
 0xa3d   : > { %p7985_p9 = pnand %p8005_p2, %p10721_p7 }
 0xa3f   : > { %9318 = dma.done.wait (!%p7985_p9), %s6729_s3, 256  }
 0xa40   : > { %9320 = vsyncadd (!%p7985_p9), %s6729_s3, 4294967040  ;;  %p28_p10 = scmp.ge.s32.totalorder %s9644_s16, 6   ;;  %s10722_s17 = smov %s9327_s18 }
 0xa41   : > { %s10723_s18 = smov %s9331_s19  ;;  %s10724_s19 = smov %s9655_s13 }
 0xa42   : > { %s10725_s20 = smov %s9644_s16  ;;  %30 = sbr.rel (!%p28_p10) target bundleno = 14 (0xe), region = 141 }
 0xa49   :  { %6734 = vsyncpa [#allocation3], 1 }
 0xa4a   :  { %6736 = vsyncpa [#allocation3 + $0x1], 1 }
 0xa4b   :  { %6737 = vsyncpa [#allocation6], 1 }
 0xa4c   :  { %6738 = vsyncpa [#allocation9], 1 }
 0xa4d   :  { %6739 = vsyncpa [#allocation12], 1 }
 0xa4e   :  { %6740 = vsyncpa [#allocation15], 1 }
 0xa4f   :  { %6741 = vsyncpa [#allocation4], 1 }
 0xa50   :  { %6743 = vsyncpa [#allocation4 + $0x1], 1 }

</bundles_post_ra>
